<compile_context>
chip_gen: v5e
topology: v5e:2x2
jax: 0.10.0
libtpu: 0.0.40
codegen_flags: <defaults>
</compile_context>

<pallas_src>
import jax
import jax.numpy as jnp
from jax.experimental import pallas as pl
from jax.experimental.pallas import tpu as pltpu


# ---------------------------------------------------------------------------
# Fused Pallas kernel
# ---------------------------------------------------------------------------
def make_fused_cnn_kernel(B, C_in, T_in, K, C1, C2):
    T_c1 = T_in - K + 1          # conv1 output length
    T_p1 = T_c1 // 2             # after pool1
    T_c2 = T_p1 - K + 1          # conv2 output length
    T_p2 = T_c2 // 2             # after pool2
    assert T_c1 >= 1 and T_c2 >= 1, "frame_num too small for kernel_size"
    # Even conv lengths keep the batch-stacked even/odd pooling exact.
    assert T_c1 % 2 == 0 and T_c2 % 2 == 0, "conv output length must be even"
    # TODO(synk): support odd conv lengths (needs per-example pooling offsets).

    def kernel(x_ref, w1_ref, b1_ref, w2_ref, b2_ref, wl_ref, bl_ref,
               o_ref, h1_scr, p1_scr):
        # x_ref:  [B*T_in, C_in]   (batch-stacked time on sublanes, channels on lanes)
        # w1_ref: [K*C_in, C1]   b1_ref: [1, C1]
        # w2_ref: [K*C1,  C2]    b2_ref: [1, C2]
        # wl_ref: [T_p2*C2, 1]   (time-major rows)   bl_ref: [1, 1]
        # o_ref:  [B, 1]
        # h1_scr: [B*T_c1, C1] VMEM    p1_scr: [B*T_p1, C1] VMEM

        # ---- conv1: K-tap MXU accumulation, taps read straight from x_ref ---
        for b in range(B):
            acc = jnp.dot(x_ref[pl.ds(b * T_in, T_c1), :],
                          w1_ref[pl.ds(0, C_in), :],
                          preferred_element_type=jnp.float32)      # [T_c1, C1]
            for k in range(1, K):
                acc = acc + jnp.dot(x_ref[pl.ds(b * T_in + k, T_c1), :],
                                    w1_ref[pl.ds(k * C_in, C_in), :],
                                    preferred_element_type=jnp.float32)
            # bias + ReLU, one store per example
            h1_scr[pl.ds(b * T_c1, T_c1), :] = jnp.maximum(acc + b1_ref[...], 0.0)

        # ---- maxpool1 (kernel=2, stride=2): strided sublane reads -----------
        # Batch-stacked even/odd pooling is exact because T_c1 is even.
        p1_scr[...] = jnp.maximum(h1_scr[pl.ds(0, B * T_p1, stride=2), :],
                                  h1_scr[pl.ds(1, B * T_p1, stride=2), :])

        # ---- conv2 (tap accumulation) + ReLU + maxpool2 + flatten, in-register
        flat_rows = []
        for b in range(B):
            acc2 = jnp.dot(p1_scr[pl.ds(b * T_p1, T_c2), :],
                           w2_ref[pl.ds(0, C1), :],
                           preferred_element_type=jnp.float32)     # [T_c2, C2]
            for k in range(1, K):
                acc2 = acc2 + jnp.dot(p1_scr[pl.ds(b * T_p1 + k, T_c2), :],
                                      w2_ref[pl.ds(k * C1, C1), :],
                                      preferred_element_type=jnp.float32)
            h2_b = jnp.maximum(acc2 + b2_ref[...], 0.0)            # [T_c2, C2]

            if T_p2 == 1:
                # pool2 is just max of the two rows -> [1, C2]
                flat_rows.append(jnp.maximum(h2_b[0:1, :], h2_b[1:2, :]))
            else:
                # TODO(synk): unexercised at this config; time-major flatten,
                # wl rows are permuted to match in the wrapper.
                pieces = [jnp.maximum(h2_b[2 * t:2 * t + 1, :],
                                      h2_b[2 * t + 1:2 * t + 2, :])
                          for t in range(T_p2)]
                flat_rows.append(jnp.concatenate(pieces, axis=1))  # [1, T_p2*C2]

        flat = jnp.concatenate(flat_rows, axis=0)                  # [B, T_p2*C2]

        # ---- regressor (Linear -> [B, 1]) ------------------------------------
        o_ref[...] = jnp.dot(flat, wl_ref[...],
                             preferred_element_type=jnp.float32) + bl_ref[...]

    return kernel, (T_c1, T_p1, T_c2, T_p2)


# ---------------------------------------------------------------------------
# Wrapper
# ---------------------------------------------------------------------------
@jax.jit
def simple_cnn_forward(x_bct, params):
    """x_bct: [B, freq_num, frame_num] (PyTorch NCT layout) -> [B, 1]."""
    B, C_in, T_in = x_bct.shape
    K, _, C1 = params["w1"].shape
    _, _, C2 = params["w2"].shape

    kernel, (T_c1, T_p1, T_c2, T_p2) = make_fused_cnn_kernel(
        B, C_in, T_in, K, C1, C2)

    # NCT -> NTC and stack batch on sublanes: [B*T_in, C_in].
    # Tiny (~4 KiB) fused XLA op; negligible under the launch-dominated profile.
    x_tc = jnp.transpose(x_bct, (0, 2, 1)).reshape(B * T_in, C_in)

    # Conv weights in tap-major layout [K*C_in, C_out] so tap k is the aligned
    # row block w[k*C_in : (k+1)*C_in, :].
    w1f = params["w1"].reshape(K * C_in, C1)
    w2f = params["w2"].reshape(K * C1, C2)

    # Fold torch.flatten's channel-major ordering (c*T_p2 + t) into the Linear
    # weight rows so the kernel uses a trivial time-major flatten (t*C2 + c).
    # Identity when T_p2 == 1.  Free layout plumbing, done once outside the kernel.
    wl = params["wl"].reshape(C2, T_p2, 1).transpose(1, 0, 2).reshape(T_p2 * C2, 1)

    # TODO(synk): for large B, add a 'parallel' batch grid axis + BlockSpecs so
    # v7x's two TensorCores split the batch; at B=2 the gridless form avoids
    # per-step overhead (~0.35 us/step).
    return pl.pallas_call(
        kernel,
        out_shape=jax.ShapeDtypeStruct((B, 1), jnp.float32),
        scratch_shapes=[
            pltpu.VMEM((B * T_c1, C1), jnp.float32),   # conv1 pre-pool activations
            pltpu.VMEM((B * T_p1, C1), jnp.float32),   # pool1 output (conv2 input)
        ],
    )(x_tc, w1f, params["b1"], w2f, params["b2"], wl, params["bl"])


# ---------------------------------------------------------------------------
# Pure-JAX reference (same math, for verification)
# ---------------------------------------------------------------------------
def reference_forward(x_bct, params):
    def conv1d(x, w_kio, b_1o):  # x: [B, C_in, T]
        K = w_kio.shape[0]
        Tc = x.shape[2] - K + 1
        out = jnp.zeros((x.shape[0], w_kio.shape[2], Tc), jnp.float32)
        for k in range(K):
            out = out + jnp.einsum("bct,co->bot", x[:, :, k:k + Tc], w_kio[k])
        return out + b_1o[0][None, :, None]

    def pool(x):  # [B, C, T]
        Tp = x.shape[2] // 2
        return jnp.maximum(x[:, :, 0:2 * Tp:2], x[:, :, 1:2 * Tp:2])

    h = pool(jnp.maximum(conv1d(x_bct, params["w1"], params["b1"]), 0.0))
    h = pool(jnp.maximum(conv1d(h, params["w2"], params["b2"]), 0.0))
    flat = h.reshape(h.shape[0], -1)   # channel-major, like torch.flatten
    return flat @ params["wl"] + params["bl"]


# ---------------------------------------------------------------------------
# Main
# ---------------------------------------------------------------------------
if __name__ == "__main__":
    B = 2
    freq_num = 8          # input channels
    frame_num = 64        # time steps
    kernel_size = 21
    internal_ch = [32, 32]

    # Matches the PyTorch module's reg_time computation.
    reg_time = int((int((frame_num - kernel_size + 1) / 2) - kernel_size + 1) / 2)
    in_features = reg_time * internal_ch[1]

    key = jax.random.PRNGKey(0)
    k_x, k_w1, k_b1, k_w2, k_b2, k_wl, k_bl = jax.random.split(key, 7)

    x = jax.random.normal(k_x, (B, freq_num, frame_num), jnp.float32)

    params = {
        # Conv weights stored as [K, C_in, C_out] (PyTorch Conv1d weight is
        # [C_out, C_in, K]; same values, kernel-friendly layout).
        "w1": 0.1 * jax.random.normal(
            k_w1, (kernel_size, freq_num, internal_ch[0]), jnp.float32),
        "b1": 0.1 * jax.random.normal(k_b1, (1, internal_ch[0]), jnp.float32),
        "w2": 0.1 * jax.random.normal(
            k_w2, (kernel_size, internal_ch[0], internal_ch[1]), jnp.float32),
        "b2": 0.1 * jax.random.normal(k_b2, (1, internal_ch[1]), jnp.float32),
        # Linear: PyTorch weight [1, F] -> stored transposed [F, 1],
        # rows in torch's channel-major flatten order.
        "wl": 0.1 * jax.random.normal(k_wl, (in_features, 1), jnp.float32),
        "bl": 0.1 * jax.random.normal(k_bl, (1, 1), jnp.float32),
    }

    out = jax.block_until_ready(simple_cnn_forward(x, params))
    assert out.shape == (B, 1), out.shape

    ref = jax.block_until_ready(reference_forward(x, params))
    assert jnp.allclose(out, ref, rtol=1e-3, atol=1e-3), (out, ref)

    print("KERNEL_OK")
</pallas_src>

<mosaic_0001>
module attributes {stable_mosaic.version = 11 : i64} {
  func.func @kernel(%arg0: memref<128x8xf32, #tpu.memory_space<vmem>>, %arg1: memref<168x32xf32, #tpu.memory_space<vmem>>, %arg2: memref<1x32xf32, #tpu.memory_space<vmem>>, %arg3: memref<672x32xf32, #tpu.memory_space<vmem>>, %arg4: memref<1x32xf32, #tpu.memory_space<vmem>>, %arg5: memref<32x1xf32, #tpu.memory_space<vmem>>, %arg6: memref<1x1xf32, #tpu.memory_space<vmem>>, %arg7: memref<2x1xf32, #tpu.memory_space<vmem>>, %arg8: memref<88x32xf32, #tpu.memory_space<vmem>>, %arg9: memref<44x32xf32, #tpu.memory_space<vmem>>) attributes {dimension_semantics = [], scalar_prefetch = 0 : i64, scratch_operands = 2 : i64, tpu.core_type = #tpu.core_type<tc>} {
    %c0 = arith.constant 0 : index
    %c0_0 = arith.constant 0 : index
    %0 = vector.load %arg0[%c0, %c0_0] : memref<128x8xf32, #tpu.memory_space<vmem>>, vector<44x8xf32>
    %c0_1 = arith.constant 0 : index
    %c0_2 = arith.constant 0 : index
    %1 = vector.load %arg1[%c0_1, %c0_2] : memref<168x32xf32, #tpu.memory_space<vmem>>, vector<8x32xf32>
    %cst = arith.constant dense<0.000000e+00> : vector<44x32xf32>
    %2 = tpu.matmul %0, %1, %cst {dimension_numbers = #tpu.dot_dimension_numbers<[1], [0], [0], [1], [0, 0, 1, 1], [], []>} : vector<44x8xf32>, vector<8x32xf32>, vector<44x32xf32> -> vector<44x32xf32>
    %c1 = arith.constant 1 : index
    %c0_3 = arith.constant 0 : index
    %3 = vector.load %arg0[%c1, %c0_3] : memref<128x8xf32, #tpu.memory_space<vmem>>, vector<44x8xf32>
    %c8 = arith.constant 8 : index
    %c0_4 = arith.constant 0 : index
    %4 = vector.load %arg1[%c8, %c0_4] : memref<168x32xf32, #tpu.memory_space<vmem>>, vector<8x32xf32>
    %cst_5 = arith.constant dense<0.000000e+00> : vector<44x32xf32>
    %5 = tpu.matmul %3, %4, %cst_5 {dimension_numbers = #tpu.dot_dimension_numbers<[1], [0], [0], [1], [0, 0, 1, 1], [], []>} : vector<44x8xf32>, vector<8x32xf32>, vector<44x32xf32> -> vector<44x32xf32>
    %6 = arith.addf %2, %5 : vector<44x32xf32>
    %c2 = arith.constant 2 : index
    %c0_6 = arith.constant 0 : index
    %7 = vector.load %arg0[%c2, %c0_6] : memref<128x8xf32, #tpu.memory_space<vmem>>, vector<44x8xf32>
    %c16 = arith.constant 16 : index
    %c0_7 = arith.constant 0 : index
    %8 = vector.load %arg1[%c16, %c0_7] : memref<168x32xf32, #tpu.memory_space<vmem>>, vector<8x32xf32>
    %cst_8 = arith.constant dense<0.000000e+00> : vector<44x32xf32>
    %9 = tpu.matmul %7, %8, %cst_8 {dimension_numbers = #tpu.dot_dimension_numbers<[1], [0], [0], [1], [0, 0, 1, 1], [], []>} : vector<44x8xf32>, vector<8x32xf32>, vector<44x32xf32> -> vector<44x32xf32>
    %10 = arith.addf %6, %9 : vector<44x32xf32>
    %c3 = arith.constant 3 : index
    %c0_9 = arith.constant 0 : index
    %11 = vector.load %arg0[%c3, %c0_9] : memref<128x8xf32, #tpu.memory_space<vmem>>, vector<44x8xf32>
    %c24 = arith.constant 24 : index
    %c0_10 = arith.constant 0 : index
    %12 = vector.load %arg1[%c24, %c0_10] : memref<168x32xf32, #tpu.memory_space<vmem>>, vector<8x32xf32>
    %cst_11 = arith.constant dense<0.000000e+00> : vector<44x32xf32>
    %13 = tpu.matmul %11, %12, %cst_11 {dimension_numbers = #tpu.dot_dimension_numbers<[1], [0], [0], [1], [0, 0, 1, 1], [], []>} : vector<44x8xf32>, vector<8x32xf32>, vector<44x32xf32> -> vector<44x32xf32>
    %14 = arith.addf %10, %13 : vector<44x32xf32>
    %c4 = arith.constant 4 : index
    %c0_12 = arith.constant 0 : index
    %15 = vector.load %arg0[%c4, %c0_12] : memref<128x8xf32, #tpu.memory_space<vmem>>, vector<44x8xf32>
    %c32 = arith.constant 32 : index
    %c0_13 = arith.constant 0 : index
    %16 = vector.load %arg1[%c32, %c0_13] : memref<168x32xf32, #tpu.memory_space<vmem>>, vector<8x32xf32>
    %cst_14 = arith.constant dense<0.000000e+00> : vector<44x32xf32>
    %17 = tpu.matmul %15, %16, %cst_14 {dimension_numbers = #tpu.dot_dimension_numbers<[1], [0], [0], [1], [0, 0, 1, 1], [], []>} : vector<44x8xf32>, vector<8x32xf32>, vector<44x32xf32> -> vector<44x32xf32>
    %18 = arith.addf %14, %17 : vector<44x32xf32>
    %c5 = arith.constant 5 : index
    %c0_15 = arith.constant 0 : index
    %19 = vector.load %arg0[%c5, %c0_15] : memref<128x8xf32, #tpu.memory_space<vmem>>, vector<44x8xf32>
    %c40 = arith.constant 40 : index
    %c0_16 = arith.constant 0 : index
    %20 = vector.load %arg1[%c40, %c0_16] : memref<168x32xf32, #tpu.memory_space<vmem>>, vector<8x32xf32>
    %cst_17 = arith.constant dense<0.000000e+00> : vector<44x32xf32>
    %21 = tpu.matmul %19, %20, %cst_17 {dimension_numbers = #tpu.dot_dimension_numbers<[1], [0], [0], [1], [0, 0, 1, 1], [], []>} : vector<44x8xf32>, vector<8x32xf32>, vector<44x32xf32> -> vector<44x32xf32>
    %22 = arith.addf %18, %21 : vector<44x32xf32>
    %c6 = arith.constant 6 : index
    %c0_18 = arith.constant 0 : index
    %23 = vector.load %arg0[%c6, %c0_18] : memref<128x8xf32, #tpu.memory_space<vmem>>, vector<44x8xf32>
    %c48 = arith.constant 48 : index
    %c0_19 = arith.constant 0 : index
    %24 = vector.load %arg1[%c48, %c0_19] : memref<168x32xf32, #tpu.memory_space<vmem>>, vector<8x32xf32>
    %cst_20 = arith.constant dense<0.000000e+00> : vector<44x32xf32>
    %25 = tpu.matmul %23, %24, %cst_20 {dimension_numbers = #tpu.dot_dimension_numbers<[1], [0], [0], [1], [0, 0, 1, 1], [], []>} : vector<44x8xf32>, vector<8x32xf32>, vector<44x32xf32> -> vector<44x32xf32>
    %26 = arith.addf %22, %25 : vector<44x32xf32>
    %c7 = arith.constant 7 : index
    %c0_21 = arith.constant 0 : index
    %27 = vector.load %arg0[%c7, %c0_21] : memref<128x8xf32, #tpu.memory_space<vmem>>, vector<44x8xf32>
    %c56 = arith.constant 56 : index
    %c0_22 = arith.constant 0 : index
    %28 = vector.load %arg1[%c56, %c0_22] : memref<168x32xf32, #tpu.memory_space<vmem>>, vector<8x32xf32>
    %cst_23 = arith.constant dense<0.000000e+00> : vector<44x32xf32>
    %29 = tpu.matmul %27, %28, %cst_23 {dimension_numbers = #tpu.dot_dimension_numbers<[1], [0], [0], [1], [0, 0, 1, 1], [], []>} : vector<44x8xf32>, vector<8x32xf32>, vector<44x32xf32> -> vector<44x32xf32>
    %30 = arith.addf %26, %29 : vector<44x32xf32>
    %c8_24 = arith.constant 8 : index
    %c0_25 = arith.constant 0 : index
    %31 = vector.load %arg0[%c8_24, %c0_25] : memref<128x8xf32, #tpu.memory_space<vmem>>, vector<44x8xf32>
    %c64 = arith.constant 64 : index
    %c0_26 = arith.constant 0 : index
    %32 = vector.load %arg1[%c64, %c0_26] : memref<168x32xf32, #tpu.memory_space<vmem>>, vector<8x32xf32>
    %cst_27 = arith.constant dense<0.000000e+00> : vector<44x32xf32>
    %33 = tpu.matmul %31, %32, %cst_27 {dimension_numbers = #tpu.dot_dimension_numbers<[1], [0], [0], [1], [0, 0, 1, 1], [], []>} : vector<44x8xf32>, vector<8x32xf32>, vector<44x32xf32> -> vector<44x32xf32>
    %34 = arith.addf %30, %33 : vector<44x32xf32>
    %c9 = arith.constant 9 : index
    %c0_28 = arith.constant 0 : index
    %35 = vector.load %arg0[%c9, %c0_28] : memref<128x8xf32, #tpu.memory_space<vmem>>, vector<44x8xf32>
    %c72 = arith.constant 72 : index
    %c0_29 = arith.constant 0 : index
    %36 = vector.load %arg1[%c72, %c0_29] : memref<168x32xf32, #tpu.memory_space<vmem>>, vector<8x32xf32>
    %cst_30 = arith.constant dense<0.000000e+00> : vector<44x32xf32>
    %37 = tpu.matmul %35, %36, %cst_30 {dimension_numbers = #tpu.dot_dimension_numbers<[1], [0], [0], [1], [0, 0, 1, 1], [], []>} : vector<44x8xf32>, vector<8x32xf32>, vector<44x32xf32> -> vector<44x32xf32>
    %38 = arith.addf %34, %37 : vector<44x32xf32>
    %c10 = arith.constant 10 : index
    %c0_31 = arith.constant 0 : index
    %39 = vector.load %arg0[%c10, %c0_31] : memref<128x8xf32, #tpu.memory_space<vmem>>, vector<44x8xf32>
    %c80 = arith.constant 80 : index
    %c0_32 = arith.constant 0 : index
    %40 = vector.load %arg1[%c80, %c0_32] : memref<168x32xf32, #tpu.memory_space<vmem>>, vector<8x32xf32>
    %cst_33 = arith.constant dense<0.000000e+00> : vector<44x32xf32>
    %41 = tpu.matmul %39, %40, %cst_33 {dimension_numbers = #tpu.dot_dimension_numbers<[1], [0], [0], [1], [0, 0, 1, 1], [], []>} : vector<44x8xf32>, vector<8x32xf32>, vector<44x32xf32> -> vector<44x32xf32>
    %42 = arith.addf %38, %41 : vector<44x32xf32>
    %c11 = arith.constant 11 : index
    %c0_34 = arith.constant 0 : index
    %43 = vector.load %arg0[%c11, %c0_34] : memref<128x8xf32, #tpu.memory_space<vmem>>, vector<44x8xf32>
    %c88 = arith.constant 88 : index
    %c0_35 = arith.constant 0 : index
    %44 = vector.load %arg1[%c88, %c0_35] : memref<168x32xf32, #tpu.memory_space<vmem>>, vector<8x32xf32>
    %cst_36 = arith.constant dense<0.000000e+00> : vector<44x32xf32>
    %45 = tpu.matmul %43, %44, %cst_36 {dimension_numbers = #tpu.dot_dimension_numbers<[1], [0], [0], [1], [0, 0, 1, 1], [], []>} : vector<44x8xf32>, vector<8x32xf32>, vector<44x32xf32> -> vector<44x32xf32>
    %46 = arith.addf %42, %45 : vector<44x32xf32>
    %c12 = arith.constant 12 : index
    %c0_37 = arith.constant 0 : index
    %47 = vector.load %arg0[%c12, %c0_37] : memref<128x8xf32, #tpu.memory_space<vmem>>, vector<44x8xf32>
    %c96 = arith.constant 96 : index
    %c0_38 = arith.constant 0 : index
    %48 = vector.load %arg1[%c96, %c0_38] : memref<168x32xf32, #tpu.memory_space<vmem>>, vector<8x32xf32>
    %cst_39 = arith.constant dense<0.000000e+00> : vector<44x32xf32>
    %49 = tpu.matmul %47, %48, %cst_39 {dimension_numbers = #tpu.dot_dimension_numbers<[1], [0], [0], [1], [0, 0, 1, 1], [], []>} : vector<44x8xf32>, vector<8x32xf32>, vector<44x32xf32> -> vector<44x32xf32>
    %50 = arith.addf %46, %49 : vector<44x32xf32>
    %c13 = arith.constant 13 : index
    %c0_40 = arith.constant 0 : index
    %51 = vector.load %arg0[%c13, %c0_40] : memref<128x8xf32, #tpu.memory_space<vmem>>, vector<44x8xf32>
    %c104 = arith.constant 104 : index
    %c0_41 = arith.constant 0 : index
    %52 = vector.load %arg1[%c104, %c0_41] : memref<168x32xf32, #tpu.memory_space<vmem>>, vector<8x32xf32>
    %cst_42 = arith.constant dense<0.000000e+00> : vector<44x32xf32>
    %53 = tpu.matmul %51, %52, %cst_42 {dimension_numbers = #tpu.dot_dimension_numbers<[1], [0], [0], [1], [0, 0, 1, 1], [], []>} : vector<44x8xf32>, vector<8x32xf32>, vector<44x32xf32> -> vector<44x32xf32>
    %54 = arith.addf %50, %53 : vector<44x32xf32>
    %c14 = arith.constant 14 : index
    %c0_43 = arith.constant 0 : index
    %55 = vector.load %arg0[%c14, %c0_43] : memref<128x8xf32, #tpu.memory_space<vmem>>, vector<44x8xf32>
    %c112 = arith.constant 112 : index
    %c0_44 = arith.constant 0 : index
    %56 = vector.load %arg1[%c112, %c0_44] : memref<168x32xf32, #tpu.memory_space<vmem>>, vector<8x32xf32>
    %cst_45 = arith.constant dense<0.000000e+00> : vector<44x32xf32>
    %57 = tpu.matmul %55, %56, %cst_45 {dimension_numbers = #tpu.dot_dimension_numbers<[1], [0], [0], [1], [0, 0, 1, 1], [], []>} : vector<44x8xf32>, vector<8x32xf32>, vector<44x32xf32> -> vector<44x32xf32>
    %58 = arith.addf %54, %57 : vector<44x32xf32>
    %c15 = arith.constant 15 : index
    %c0_46 = arith.constant 0 : index
    %59 = vector.load %arg0[%c15, %c0_46] : memref<128x8xf32, #tpu.memory_space<vmem>>, vector<44x8xf32>
    %c120 = arith.constant 120 : index
    %c0_47 = arith.constant 0 : index
    %60 = vector.load %arg1[%c120, %c0_47] : memref<168x32xf32, #tpu.memory_space<vmem>>, vector<8x32xf32>
    %cst_48 = arith.constant dense<0.000000e+00> : vector<44x32xf32>
    %61 = tpu.matmul %59, %60, %cst_48 {dimension_numbers = #tpu.dot_dimension_numbers<[1], [0], [0], [1], [0, 0, 1, 1], [], []>} : vector<44x8xf32>, vector<8x32xf32>, vector<44x32xf32> -> vector<44x32xf32>
    %62 = arith.addf %58, %61 : vector<44x32xf32>
    %c16_49 = arith.constant 16 : index
    %c0_50 = arith.constant 0 : index
    %63 = vector.load %arg0[%c16_49, %c0_50] : memref<128x8xf32, #tpu.memory_space<vmem>>, vector<44x8xf32>
    %c128 = arith.constant 128 : index
    %c0_51 = arith.constant 0 : index
    %64 = vector.load %arg1[%c128, %c0_51] : memref<168x32xf32, #tpu.memory_space<vmem>>, vector<8x32xf32>
    %cst_52 = arith.constant dense<0.000000e+00> : vector<44x32xf32>
    %65 = tpu.matmul %63, %64, %cst_52 {dimension_numbers = #tpu.dot_dimension_numbers<[1], [0], [0], [1], [0, 0, 1, 1], [], []>} : vector<44x8xf32>, vector<8x32xf32>, vector<44x32xf32> -> vector<44x32xf32>
    %66 = arith.addf %62, %65 : vector<44x32xf32>
    %c17 = arith.constant 17 : index
    %c0_53 = arith.constant 0 : index
    %67 = vector.load %arg0[%c17, %c0_53] : memref<128x8xf32, #tpu.memory_space<vmem>>, vector<44x8xf32>
    %c136 = arith.constant 136 : index
    %c0_54 = arith.constant 0 : index
    %68 = vector.load %arg1[%c136, %c0_54] : memref<168x32xf32, #tpu.memory_space<vmem>>, vector<8x32xf32>
    %cst_55 = arith.constant dense<0.000000e+00> : vector<44x32xf32>
    %69 = tpu.matmul %67, %68, %cst_55 {dimension_numbers = #tpu.dot_dimension_numbers<[1], [0], [0], [1], [0, 0, 1, 1], [], []>} : vector<44x8xf32>, vector<8x32xf32>, vector<44x32xf32> -> vector<44x32xf32>
    %70 = arith.addf %66, %69 : vector<44x32xf32>
    %c18 = arith.constant 18 : index
    %c0_56 = arith.constant 0 : index
    %71 = vector.load %arg0[%c18, %c0_56] : memref<128x8xf32, #tpu.memory_space<vmem>>, vector<44x8xf32>
    %c144 = arith.constant 144 : index
    %c0_57 = arith.constant 0 : index
    %72 = vector.load %arg1[%c144, %c0_57] : memref<168x32xf32, #tpu.memory_space<vmem>>, vector<8x32xf32>
    %cst_58 = arith.constant dense<0.000000e+00> : vector<44x32xf32>
    %73 = tpu.matmul %71, %72, %cst_58 {dimension_numbers = #tpu.dot_dimension_numbers<[1], [0], [0], [1], [0, 0, 1, 1], [], []>} : vector<44x8xf32>, vector<8x32xf32>, vector<44x32xf32> -> vector<44x32xf32>
    %74 = arith.addf %70, %73 : vector<44x32xf32>
    %c19 = arith.constant 19 : index
    %c0_59 = arith.constant 0 : index
    %75 = vector.load %arg0[%c19, %c0_59] : memref<128x8xf32, #tpu.memory_space<vmem>>, vector<44x8xf32>
    %c152 = arith.constant 152 : index
    %c0_60 = arith.constant 0 : index
    %76 = vector.load %arg1[%c152, %c0_60] : memref<168x32xf32, #tpu.memory_space<vmem>>, vector<8x32xf32>
    %cst_61 = arith.constant dense<0.000000e+00> : vector<44x32xf32>
    %77 = tpu.matmul %75, %76, %cst_61 {dimension_numbers = #tpu.dot_dimension_numbers<[1], [0], [0], [1], [0, 0, 1, 1], [], []>} : vector<44x8xf32>, vector<8x32xf32>, vector<44x32xf32> -> vector<44x32xf32>
    %78 = arith.addf %74, %77 : vector<44x32xf32>
    %c20 = arith.constant 20 : index
    %c0_62 = arith.constant 0 : index
    %79 = vector.load %arg0[%c20, %c0_62] : memref<128x8xf32, #tpu.memory_space<vmem>>, vector<44x8xf32>
    %c160 = arith.constant 160 : index
    %c0_63 = arith.constant 0 : index
    %80 = vector.load %arg1[%c160, %c0_63] : memref<168x32xf32, #tpu.memory_space<vmem>>, vector<8x32xf32>
    %cst_64 = arith.constant dense<0.000000e+00> : vector<44x32xf32>
    %81 = tpu.matmul %79, %80, %cst_64 {dimension_numbers = #tpu.dot_dimension_numbers<[1], [0], [0], [1], [0, 0, 1, 1], [], []>} : vector<44x8xf32>, vector<8x32xf32>, vector<44x32xf32> -> vector<44x32xf32>
    %82 = arith.addf %78, %81 : vector<44x32xf32>
    %c0_65 = arith.constant 0 : index
    %c0_66 = arith.constant 0 : index
    %83 = vector.load %arg2[%c0_65, %c0_66] : memref<1x32xf32, #tpu.memory_space<vmem>>, vector<1x32xf32>
    %84 = vector.broadcast %83 : vector<1x32xf32> to vector<44x32xf32>
    %85 = arith.addf %82, %84 : vector<44x32xf32>
    %cst_67 = arith.constant 0.000000e+00 : f32
    %86 = vector.broadcast %cst_67 : f32 to vector<44x32xf32>
    %87 = arith.maximumf %85, %86 : vector<44x32xf32>
    %c0_68 = arith.constant 0 : index
    %c0_69 = arith.constant 0 : index
    %88 = vector.load %arg8[%c0_68, %c0_69] : memref<88x32xf32, #tpu.memory_space<vmem>>, vector<44x32xf32>
    tpu.vector_store %arg8[%c0_68, %c0_69], %87 {strides = array<i32>} : memref<88x32xf32, #tpu.memory_space<vmem>>, vector<44x32xf32>,
    %c64_70 = arith.constant 64 : index
    %c0_71 = arith.constant 0 : index
    %89 = vector.load %arg0[%c64_70, %c0_71] : memref<128x8xf32, #tpu.memory_space<vmem>>, vector<44x8xf32>
    %c0_72 = arith.constant 0 : index
    %c0_73 = arith.constant 0 : index
    %90 = vector.load %arg1[%c0_72, %c0_73] : memref<168x32xf32, #tpu.memory_space<vmem>>, vector<8x32xf32>
    %cst_74 = arith.constant dense<0.000000e+00> : vector<44x32xf32>
    %91 = tpu.matmul %89, %90, %cst_74 {dimension_numbers = #tpu.dot_dimension_numbers<[1], [0], [0], [1], [0, 0, 1, 1], [], []>} : vector<44x8xf32>, vector<8x32xf32>, vector<44x32xf32> -> vector<44x32xf32>
    %c65 = arith.constant 65 : index
    %c0_75 = arith.constant 0 : index
    %92 = vector.load %arg0[%c65, %c0_75] : memref<128x8xf32, #tpu.memory_space<vmem>>, vector<44x8xf32>
    %c8_76 = arith.constant 8 : index
    %c0_77 = arith.constant 0 : index
    %93 = vector.load %arg1[%c8_76, %c0_77] : memref<168x32xf32, #tpu.memory_space<vmem>>, vector<8x32xf32>
    %cst_78 = arith.constant dense<0.000000e+00> : vector<44x32xf32>
    %94 = tpu.matmul %92, %93, %cst_78 {dimension_numbers = #tpu.dot_dimension_numbers<[1], [0], [0], [1], [0, 0, 1, 1], [], []>} : vector<44x8xf32>, vector<8x32xf32>, vector<44x32xf32> -> vector<44x32xf32>
    %95 = arith.addf %91, %94 : vector<44x32xf32>
    %c66 = arith.constant 66 : index
    %c0_79 = arith.constant 0 : index
    %96 = vector.load %arg0[%c66, %c0_79] : memref<128x8xf32, #tpu.memory_space<vmem>>, vector<44x8xf32>
    %c16_80 = arith.constant 16 : index
    %c0_81 = arith.constant 0 : index
    %97 = vector.load %arg1[%c16_80, %c0_81] : memref<168x32xf32, #tpu.memory_space<vmem>>, vector<8x32xf32>
    %cst_82 = arith.constant dense<0.000000e+00> : vector<44x32xf32>
    %98 = tpu.matmul %96, %97, %cst_82 {dimension_numbers = #tpu.dot_dimension_numbers<[1], [0], [0], [1], [0, 0, 1, 1], [], []>} : vector<44x8xf32>, vector<8x32xf32>, vector<44x32xf32> -> vector<44x32xf32>
    %99 = arith.addf %95, %98 : vector<44x32xf32>
    %c67 = arith.constant 67 : index
    %c0_83 = arith.constant 0 : index
    %100 = vector.load %arg0[%c67, %c0_83] : memref<128x8xf32, #tpu.memory_space<vmem>>, vector<44x8xf32>
    %c24_84 = arith.constant 24 : index
    %c0_85 = arith.constant 0 : index
    %101 = vector.load %arg1[%c24_84, %c0_85] : memref<168x32xf32, #tpu.memory_space<vmem>>, vector<8x32xf32>
    %cst_86 = arith.constant dense<0.000000e+00> : vector<44x32xf32>
    %102 = tpu.matmul %100, %101, %cst_86 {dimension_numbers = #tpu.dot_dimension_numbers<[1], [0], [0], [1], [0, 0, 1, 1], [], []>} : vector<44x8xf32>, vector<8x32xf32>, vector<44x32xf32> -> vector<44x32xf32>
    %103 = arith.addf %99, %102 : vector<44x32xf32>
    %c68 = arith.constant 68 : index
    %c0_87 = arith.constant 0 : index
    %104 = vector.load %arg0[%c68, %c0_87] : memref<128x8xf32, #tpu.memory_space<vmem>>, vector<44x8xf32>
    %c32_88 = arith.constant 32 : index
    %c0_89 = arith.constant 0 : index
    %105 = vector.load %arg1[%c32_88, %c0_89] : memref<168x32xf32, #tpu.memory_space<vmem>>, vector<8x32xf32>
    %cst_90 = arith.constant dense<0.000000e+00> : vector<44x32xf32>
    %106 = tpu.matmul %104, %105, %cst_90 {dimension_numbers = #tpu.dot_dimension_numbers<[1], [0], [0], [1], [0, 0, 1, 1], [], []>} : vector<44x8xf32>, vector<8x32xf32>, vector<44x32xf32> -> vector<44x32xf32>
    %107 = arith.addf %103, %106 : vector<44x32xf32>
    %c69 = arith.constant 69 : index
    %c0_91 = arith.constant 0 : index
    %108 = vector.load %arg0[%c69, %c0_91] : memref<128x8xf32, #tpu.memory_space<vmem>>, vector<44x8xf32>
    %c40_92 = arith.constant 40 : index
    %c0_93 = arith.constant 0 : index
    %109 = vector.load %arg1[%c40_92, %c0_93] : memref<168x32xf32, #tpu.memory_space<vmem>>, vector<8x32xf32>
    %cst_94 = arith.constant dense<0.000000e+00> : vector<44x32xf32>
    %110 = tpu.matmul %108, %109, %cst_94 {dimension_numbers = #tpu.dot_dimension_numbers<[1], [0], [0], [1], [0, 0, 1, 1], [], []>} : vector<44x8xf32>, vector<8x32xf32>, vector<44x32xf32> -> vector<44x32xf32>
    %111 = arith.addf %107, %110 : vector<44x32xf32>
    %c70 = arith.constant 70 : index
    %c0_95 = arith.constant 0 : index
    %112 = vector.load %arg0[%c70, %c0_95] : memref<128x8xf32, #tpu.memory_space<vmem>>, vector<44x8xf32>
    %c48_96 = arith.constant 48 : index
    %c0_97 = arith.constant 0 : index
    %113 = vector.load %arg1[%c48_96, %c0_97] : memref<168x32xf32, #tpu.memory_space<vmem>>, vector<8x32xf32>
    %cst_98 = arith.constant dense<0.000000e+00> : vector<44x32xf32>
    %114 = tpu.matmul %112, %113, %cst_98 {dimension_numbers = #tpu.dot_dimension_numbers<[1], [0], [0], [1], [0, 0, 1, 1], [], []>} : vector<44x8xf32>, vector<8x32xf32>, vector<44x32xf32> -> vector<44x32xf32>
    %115 = arith.addf %111, %114 : vector<44x32xf32>
    %c71 = arith.constant 71 : index
    %c0_99 = arith.constant 0 : index
    %116 = vector.load %arg0[%c71, %c0_99] : memref<128x8xf32, #tpu.memory_space<vmem>>, vector<44x8xf32>
    %c56_100 = arith.constant 56 : index
    %c0_101 = arith.constant 0 : index
    %117 = vector.load %arg1[%c56_100, %c0_101] : memref<168x32xf32, #tpu.memory_space<vmem>>, vector<8x32xf32>
    %cst_102 = arith.constant dense<0.000000e+00> : vector<44x32xf32>
    %118 = tpu.matmul %116, %117, %cst_102 {dimension_numbers = #tpu.dot_dimension_numbers<[1], [0], [0], [1], [0, 0, 1, 1], [], []>} : vector<44x8xf32>, vector<8x32xf32>, vector<44x32xf32> -> vector<44x32xf32>
    %119 = arith.addf %115, %118 : vector<44x32xf32>
    %c72_103 = arith.constant 72 : index
    %c0_104 = arith.constant 0 : index
    %120 = vector.load %arg0[%c72_103, %c0_104] : memref<128x8xf32, #tpu.memory_space<vmem>>, vector<44x8xf32>
    %c64_105 = arith.constant 64 : index
    %c0_106 = arith.constant 0 : index
    %121 = vector.load %arg1[%c64_105, %c0_106] : memref<168x32xf32, #tpu.memory_space<vmem>>, vector<8x32xf32>
    %cst_107 = arith.constant dense<0.000000e+00> : vector<44x32xf32>
    %122 = tpu.matmul %120, %121, %cst_107 {dimension_numbers = #tpu.dot_dimension_numbers<[1], [0], [0], [1], [0, 0, 1, 1], [], []>} : vector<44x8xf32>, vector<8x32xf32>, vector<44x32xf32> -> vector<44x32xf32>
    %123 = arith.addf %119, %122 : vector<44x32xf32>
    %c73 = arith.constant 73 : index
    %c0_108 = arith.constant 0 : index
    %124 = vector.load %arg0[%c73, %c0_108] : memref<128x8xf32, #tpu.memory_space<vmem>>, vector<44x8xf32>
    %c72_109 = arith.constant 72 : index
    %c0_110 = arith.constant 0 : index
    %125 = vector.load %arg1[%c72_109, %c0_110] : memref<168x32xf32, #tpu.memory_space<vmem>>, vector<8x32xf32>
    %cst_111 = arith.constant dense<0.000000e+00> : vector<44x32xf32>
    %126 = tpu.matmul %124, %125, %cst_111 {dimension_numbers = #tpu.dot_dimension_numbers<[1], [0], [0], [1], [0, 0, 1, 1], [], []>} : vector<44x8xf32>, vector<8x32xf32>, vector<44x32xf32> -> vector<44x32xf32>
    %127 = arith.addf %123, %126 : vector<44x32xf32>
    %c74 = arith.constant 74 : index
    %c0_112 = arith.constant 0 : index
    %128 = vector.load %arg0[%c74, %c0_112] : memref<128x8xf32, #tpu.memory_space<vmem>>, vector<44x8xf32>
    %c80_113 = arith.constant 80 : index
    %c0_114 = arith.constant 0 : index
    %129 = vector.load %arg1[%c80_113, %c0_114] : memref<168x32xf32, #tpu.memory_space<vmem>>, vector<8x32xf32>
    %cst_115 = arith.constant dense<0.000000e+00> : vector<44x32xf32>
    %130 = tpu.matmul %128, %129, %cst_115 {dimension_numbers = #tpu.dot_dimension_numbers<[1], [0], [0], [1], [0, 0, 1, 1], [], []>} : vector<44x8xf32>, vector<8x32xf32>, vector<44x32xf32> -> vector<44x32xf32>
    %131 = arith.addf %127, %130 : vector<44x32xf32>
    %c75 = arith.constant 75 : index
    %c0_116 = arith.constant 0 : index
    %132 = vector.load %arg0[%c75, %c0_116] : memref<128x8xf32, #tpu.memory_space<vmem>>, vector<44x8xf32>
    %c88_117 = arith.constant 88 : index
    %c0_118 = arith.constant 0 : index
    %133 = vector.load %arg1[%c88_117, %c0_118] : memref<168x32xf32, #tpu.memory_space<vmem>>, vector<8x32xf32>
    %cst_119 = arith.constant dense<0.000000e+00> : vector<44x32xf32>
    %134 = tpu.matmul %132, %133, %cst_119 {dimension_numbers = #tpu.dot_dimension_numbers<[1], [0], [0], [1], [0, 0, 1, 1], [], []>} : vector<44x8xf32>, vector<8x32xf32>, vector<44x32xf32> -> vector<44x32xf32>
    %135 = arith.addf %131, %134 : vector<44x32xf32>
    %c76 = arith.constant 76 : index
    %c0_120 = arith.constant 0 : index
    %136 = vector.load %arg0[%c76, %c0_120] : memref<128x8xf32, #tpu.memory_space<vmem>>, vector<44x8xf32>
    %c96_121 = arith.constant 96 : index
    %c0_122 = arith.constant 0 : index
    %137 = vector.load %arg1[%c96_121, %c0_122] : memref<168x32xf32, #tpu.memory_space<vmem>>, vector<8x32xf32>
    %cst_123 = arith.constant dense<0.000000e+00> : vector<44x32xf32>
    %138 = tpu.matmul %136, %137, %cst_123 {dimension_numbers = #tpu.dot_dimension_numbers<[1], [0], [0], [1], [0, 0, 1, 1], [], []>} : vector<44x8xf32>, vector<8x32xf32>, vector<44x32xf32> -> vector<44x32xf32>
    %139 = arith.addf %135, %138 : vector<44x32xf32>
    %c77 = arith.constant 77 : index
    %c0_124 = arith.constant 0 : index
    %140 = vector.load %arg0[%c77, %c0_124] : memref<128x8xf32, #tpu.memory_space<vmem>>, vector<44x8xf32>
    %c104_125 = arith.constant 104 : index
    %c0_126 = arith.constant 0 : index
    %141 = vector.load %arg1[%c104_125, %c0_126] : memref<168x32xf32, #tpu.memory_space<vmem>>, vector<8x32xf32>
    %cst_127 = arith.constant dense<0.000000e+00> : vector<44x32xf32>
    %142 = tpu.matmul %140, %141, %cst_127 {dimension_numbers = #tpu.dot_dimension_numbers<[1], [0], [0], [1], [0, 0, 1, 1], [], []>} : vector<44x8xf32>, vector<8x32xf32>, vector<44x32xf32> -> vector<44x32xf32>
    %143 = arith.addf %139, %142 : vector<44x32xf32>
    %c78 = arith.constant 78 : index
    %c0_128 = arith.constant 0 : index
    %144 = vector.load %arg0[%c78, %c0_128] : memref<128x8xf32, #tpu.memory_space<vmem>>, vector<44x8xf32>
    %c112_129 = arith.constant 112 : index
    %c0_130 = arith.constant 0 : index
    %145 = vector.load %arg1[%c112_129, %c0_130] : memref<168x32xf32, #tpu.memory_space<vmem>>, vector<8x32xf32>
    %cst_131 = arith.constant dense<0.000000e+00> : vector<44x32xf32>
    %146 = tpu.matmul %144, %145, %cst_131 {dimension_numbers = #tpu.dot_dimension_numbers<[1], [0], [0], [1], [0, 0, 1, 1], [], []>} : vector<44x8xf32>, vector<8x32xf32>, vector<44x32xf32> -> vector<44x32xf32>
    %147 = arith.addf %143, %146 : vector<44x32xf32>
    %c79 = arith.constant 79 : index
    %c0_132 = arith.constant 0 : index
    %148 = vector.load %arg0[%c79, %c0_132] : memref<128x8xf32, #tpu.memory_space<vmem>>, vector<44x8xf32>
    %c120_133 = arith.constant 120 : index
    %c0_134 = arith.constant 0 : index
    %149 = vector.load %arg1[%c120_133, %c0_134] : memref<168x32xf32, #tpu.memory_space<vmem>>, vector<8x32xf32>
    %cst_135 = arith.constant dense<0.000000e+00> : vector<44x32xf32>
    %150 = tpu.matmul %148, %149, %cst_135 {dimension_numbers = #tpu.dot_dimension_numbers<[1], [0], [0], [1], [0, 0, 1, 1], [], []>} : vector<44x8xf32>, vector<8x32xf32>, vector<44x32xf32> -> vector<44x32xf32>
    %151 = arith.addf %147, %150 : vector<44x32xf32>
    %c80_136 = arith.constant 80 : index
    %c0_137 = arith.constant 0 : index
    %152 = vector.load %arg0[%c80_136, %c0_137] : memref<128x8xf32, #tpu.memory_space<vmem>>, vector<44x8xf32>
    %c128_138 = arith.constant 128 : index
    %c0_139 = arith.constant 0 : index
    %153 = vector.load %arg1[%c128_138, %c0_139] : memref<168x32xf32, #tpu.memory_space<vmem>>, vector<8x32xf32>
    %cst_140 = arith.constant dense<0.000000e+00> : vector<44x32xf32>
    %154 = tpu.matmul %152, %153, %cst_140 {dimension_numbers = #tpu.dot_dimension_numbers<[1], [0], [0], [1], [0, 0, 1, 1], [], []>} : vector<44x8xf32>, vector<8x32xf32>, vector<44x32xf32> -> vector<44x32xf32>
    %155 = arith.addf %151, %154 : vector<44x32xf32>
    %c81 = arith.constant 81 : index
    %c0_141 = arith.constant 0 : index
    %156 = vector.load %arg0[%c81, %c0_141] : memref<128x8xf32, #tpu.memory_space<vmem>>, vector<44x8xf32>
    %c136_142 = arith.constant 136 : index
    %c0_143 = arith.constant 0 : index
    %157 = vector.load %arg1[%c136_142, %c0_143] : memref<168x32xf32, #tpu.memory_space<vmem>>, vector<8x32xf32>
    %cst_144 = arith.constant dense<0.000000e+00> : vector<44x32xf32>
    %158 = tpu.matmul %156, %157, %cst_144 {dimension_numbers = #tpu.dot_dimension_numbers<[1], [0], [0], [1], [0, 0, 1, 1], [], []>} : vector<44x8xf32>, vector<8x32xf32>, vector<44x32xf32> -> vector<44x32xf32>
    %159 = arith.addf %155, %158 : vector<44x32xf32>
    %c82 = arith.constant 82 : index
    %c0_145 = arith.constant 0 : index
    %160 = vector.load %arg0[%c82, %c0_145] : memref<128x8xf32, #tpu.memory_space<vmem>>, vector<44x8xf32>
    %c144_146 = arith.constant 144 : index
    %c0_147 = arith.constant 0 : index
    %161 = vector.load %arg1[%c144_146, %c0_147] : memref<168x32xf32, #tpu.memory_space<vmem>>, vector<8x32xf32>
    %cst_148 = arith.constant dense<0.000000e+00> : vector<44x32xf32>
    %162 = tpu.matmul %160, %161, %cst_148 {dimension_numbers = #tpu.dot_dimension_numbers<[1], [0], [0], [1], [0, 0, 1, 1], [], []>} : vector<44x8xf32>, vector<8x32xf32>, vector<44x32xf32> -> vector<44x32xf32>
    %163 = arith.addf %159, %162 : vector<44x32xf32>
    %c83 = arith.constant 83 : index
    %c0_149 = arith.constant 0 : index
    %164 = vector.load %arg0[%c83, %c0_149] : memref<128x8xf32, #tpu.memory_space<vmem>>, vector<44x8xf32>
    %c152_150 = arith.constant 152 : index
    %c0_151 = arith.constant 0 : index
    %165 = vector.load %arg1[%c152_150, %c0_151] : memref<168x32xf32, #tpu.memory_space<vmem>>, vector<8x32xf32>
    %cst_152 = arith.constant dense<0.000000e+00> : vector<44x32xf32>
    %166 = tpu.matmul %164, %165, %cst_152 {dimension_numbers = #tpu.dot_dimension_numbers<[1], [0], [0], [1], [0, 0, 1, 1], [], []>} : vector<44x8xf32>, vector<8x32xf32>, vector<44x32xf32> -> vector<44x32xf32>
    %167 = arith.addf %163, %166 : vector<44x32xf32>
    %c84 = arith.constant 84 : index
    %c0_153 = arith.constant 0 : index
    %168 = vector.load %arg0[%c84, %c0_153] : memref<128x8xf32, #tpu.memory_space<vmem>>, vector<44x8xf32>
    %c160_154 = arith.constant 160 : index
    %c0_155 = arith.constant 0 : index
    %169 = vector.load %arg1[%c160_154, %c0_155] : memref<168x32xf32, #tpu.memory_space<vmem>>, vector<8x32xf32>
    %cst_156 = arith.constant dense<0.000000e+00> : vector<44x32xf32>
    %170 = tpu.matmul %168, %169, %cst_156 {dimension_numbers = #tpu.dot_dimension_numbers<[1], [0], [0], [1], [0, 0, 1, 1], [], []>} : vector<44x8xf32>, vector<8x32xf32>, vector<44x32xf32> -> vector<44x32xf32>
    %171 = arith.addf %167, %170 : vector<44x32xf32>
    %c0_157 = arith.constant 0 : index
    %c0_158 = arith.constant 0 : index
    %172 = vector.load %arg2[%c0_157, %c0_158] : memref<1x32xf32, #tpu.memory_space<vmem>>, vector<1x32xf32>
    %173 = vector.broadcast %172 : vector<1x32xf32> to vector<44x32xf32>
    %174 = arith.addf %171, %173 : vector<44x32xf32>
    %cst_159 = arith.constant 0.000000e+00 : f32
    %175 = vector.broadcast %cst_159 : f32 to vector<44x32xf32>
    %176 = arith.maximumf %174, %175 : vector<44x32xf32>
    %c44 = arith.constant 44 : index
    %c0_160 = arith.constant 0 : index
    %177 = vector.load %arg8[%c44, %c0_160] : memref<88x32xf32, #tpu.memory_space<vmem>>, vector<44x32xf32>
    tpu.vector_store %arg8[%c44, %c0_160], %176 {strides = array<i32>} : memref<88x32xf32, #tpu.memory_space<vmem>>, vector<44x32xf32>,
    %c0_161 = arith.constant 0 : index
    %c0_162 = arith.constant 0 : index
    %178 = tpu.strided_load %arg8[%c0_161, %c0_162] {strides = array<i32: 2, 1>} : memref<88x32xf32, #tpu.memory_space<vmem>>, vector<44x32xf32>
    %c1_163 = arith.constant 1 : index
    %c0_164 = arith.constant 0 : index
    %179 = tpu.strided_load %arg8[%c1_163, %c0_164] {strides = array<i32: 2, 1>} : memref<88x32xf32, #tpu.memory_space<vmem>>, vector<44x32xf32>
    %180 = arith.maximumf %178, %179 : vector<44x32xf32>
    %c0_165 = arith.constant 0 : index
    %c0_166 = arith.constant 0 : index
    %181 = vector.load %arg9[%c0_165, %c0_166] : memref<44x32xf32, #tpu.memory_space<vmem>>, vector<44x32xf32>
    tpu.vector_store %arg9[%c0_165, %c0_166], %180 {strides = array<i32>} : memref<44x32xf32, #tpu.memory_space<vmem>>, vector<44x32xf32>,
    %c0_167 = arith.constant 0 : index
    %c0_168 = arith.constant 0 : index
    %182 = vector.load %arg9[%c0_167, %c0_168] : memref<44x32xf32, #tpu.memory_space<vmem>>, vector<2x32xf32>
    %c0_169 = arith.constant 0 : index
    %c0_170 = arith.constant 0 : index
    %183 = vector.load %arg3[%c0_169, %c0_170] : memref<672x32xf32, #tpu.memory_space<vmem>>, vector<32x32xf32>
    %cst_171 = arith.constant dense<0.000000e+00> : vector<2x32xf32>
    %184 = tpu.matmul %182, %183, %cst_171 {dimension_numbers = #tpu.dot_dimension_numbers<[1], [0], [0], [1], [0, 0, 1, 1], [], []>} : vector<2x32xf32>, vector<32x32xf32>, vector<2x32xf32> -> vector<2x32xf32>
    %c1_172 = arith.constant 1 : index
    %c0_173 = arith.constant 0 : index
    %185 = vector.load %arg9[%c1_172, %c0_173] : memref<44x32xf32, #tpu.memory_space<vmem>>, vector<2x32xf32>
    %c32_174 = arith.constant 32 : index
    %c0_175 = arith.constant 0 : index
    %186 = vector.load %arg3[%c32_174, %c0_175] : memref<672x32xf32, #tpu.memory_space<vmem>>, vector<32x32xf32>
    %cst_176 = arith.constant dense<0.000000e+00> : vector<2x32xf32>
    %187 = tpu.matmul %185, %186, %cst_176 {dimension_numbers = #tpu.dot_dimension_numbers<[1], [0], [0], [1], [0, 0, 1, 1], [], []>} : vector<2x32xf32>, vector<32x32xf32>, vector<2x32xf32> -> vector<2x32xf32>
    %188 = arith.addf %184, %187 : vector<2x32xf32>
    %c2_177 = arith.constant 2 : index
    %c0_178 = arith.constant 0 : index
    %189 = vector.load %arg9[%c2_177, %c0_178] : memref<44x32xf32, #tpu.memory_space<vmem>>, vector<2x32xf32>
    %c64_179 = arith.constant 64 : index
    %c0_180 = arith.constant 0 : index
    %190 = vector.load %arg3[%c64_179, %c0_180] : memref<672x32xf32, #tpu.memory_space<vmem>>, vector<32x32xf32>
    %cst_181 = arith.constant dense<0.000000e+00> : vector<2x32xf32>
    %191 = tpu.matmul %189, %190, %cst_181 {dimension_numbers = #tpu.dot_dimension_numbers<[1], [0], [0], [1], [0, 0, 1, 1], [], []>} : vector<2x32xf32>, vector<32x32xf32>, vector<2x32xf32> -> vector<2x32xf32>
    %192 = arith.addf %188, %191 : vector<2x32xf32>
    %c3_182 = arith.constant 3 : index
    %c0_183 = arith.constant 0 : index
    %193 = vector.load %arg9[%c3_182, %c0_183] : memref<44x32xf32, #tpu.memory_space<vmem>>, vector<2x32xf32>
    %c96_184 = arith.constant 96 : index
    %c0_185 = arith.constant 0 : index
    %194 = vector.load %arg3[%c96_184, %c0_185] : memref<672x32xf32, #tpu.memory_space<vmem>>, vector<32x32xf32>
    %cst_186 = arith.constant dense<0.000000e+00> : vector<2x32xf32>
    %195 = tpu.matmul %193, %194, %cst_186 {dimension_numbers = #tpu.dot_dimension_numbers<[1], [0], [0], [1], [0, 0, 1, 1], [], []>} : vector<2x32xf32>, vector<32x32xf32>, vector<2x32xf32> -> vector<2x32xf32>
    %196 = arith.addf %192, %195 : vector<2x32xf32>
    %c4_187 = arith.constant 4 : index
    %c0_188 = arith.constant 0 : index
    %197 = vector.load %arg9[%c4_187, %c0_188] : memref<44x32xf32, #tpu.memory_space<vmem>>, vector<2x32xf32>
    %c128_189 = arith.constant 128 : index
    %c0_190 = arith.constant 0 : index
    %198 = vector.load %arg3[%c128_189, %c0_190] : memref<672x32xf32, #tpu.memory_space<vmem>>, vector<32x32xf32>
    %cst_191 = arith.constant dense<0.000000e+00> : vector<2x32xf32>
    %199 = tpu.matmul %197, %198, %cst_191 {dimension_numbers = #tpu.dot_dimension_numbers<[1], [0], [0], [1], [0, 0, 1, 1], [], []>} : vector<2x32xf32>, vector<32x32xf32>, vector<2x32xf32> -> vector<2x32xf32>
    %200 = arith.addf %196, %199 : vector<2x32xf32>
    %c5_192 = arith.constant 5 : index
    %c0_193 = arith.constant 0 : index
    %201 = vector.load %arg9[%c5_192, %c0_193] : memref<44x32xf32, #tpu.memory_space<vmem>>, vector<2x32xf32>
    %c160_194 = arith.constant 160 : index
    %c0_195 = arith.constant 0 : index
    %202 = vector.load %arg3[%c160_194, %c0_195] : memref<672x32xf32, #tpu.memory_space<vmem>>, vector<32x32xf32>
    %cst_196 = arith.constant dense<0.000000e+00> : vector<2x32xf32>
    %203 = tpu.matmul %201, %202, %cst_196 {dimension_numbers = #tpu.dot_dimension_numbers<[1], [0], [0], [1], [0, 0, 1, 1], [], []>} : vector<2x32xf32>, vector<32x32xf32>, vector<2x32xf32> -> vector<2x32xf32>
    %204 = arith.addf %200, %203 : vector<2x32xf32>
    %c6_197 = arith.constant 6 : index
    %c0_198 = arith.constant 0 : index
    %205 = vector.load %arg9[%c6_197, %c0_198] : memref<44x32xf32, #tpu.memory_space<vmem>>, vector<2x32xf32>
    %c192 = arith.constant 192 : index
    %c0_199 = arith.constant 0 : index
    %206 = vector.load %arg3[%c192, %c0_199] : memref<672x32xf32, #tpu.memory_space<vmem>>, vector<32x32xf32>
    %cst_200 = arith.constant dense<0.000000e+00> : vector<2x32xf32>
    %207 = tpu.matmul %205, %206, %cst_200 {dimension_numbers = #tpu.dot_dimension_numbers<[1], [0], [0], [1], [0, 0, 1, 1], [], []>} : vector<2x32xf32>, vector<32x32xf32>, vector<2x32xf32> -> vector<2x32xf32>
    %208 = arith.addf %204, %207 : vector<2x32xf32>
    %c7_201 = arith.constant 7 : index
    %c0_202 = arith.constant 0 : index
    %209 = vector.load %arg9[%c7_201, %c0_202] : memref<44x32xf32, #tpu.memory_space<vmem>>, vector<2x32xf32>
    %c224 = arith.constant 224 : index
    %c0_203 = arith.constant 0 : index
    %210 = vector.load %arg3[%c224, %c0_203] : memref<672x32xf32, #tpu.memory_space<vmem>>, vector<32x32xf32>
    %cst_204 = arith.constant dense<0.000000e+00> : vector<2x32xf32>
    %211 = tpu.matmul %209, %210, %cst_204 {dimension_numbers = #tpu.dot_dimension_numbers<[1], [0], [0], [1], [0, 0, 1, 1], [], []>} : vector<2x32xf32>, vector<32x32xf32>, vector<2x32xf32> -> vector<2x32xf32>
    %212 = arith.addf %208, %211 : vector<2x32xf32>
    %c8_205 = arith.constant 8 : index
    %c0_206 = arith.constant 0 : index
    %213 = vector.load %arg9[%c8_205, %c0_206] : memref<44x32xf32, #tpu.memory_space<vmem>>, vector<2x32xf32>
    %c256 = arith.constant 256 : index
    %c0_207 = arith.constant 0 : index
    %214 = vector.load %arg3[%c256, %c0_207] : memref<672x32xf32, #tpu.memory_space<vmem>>, vector<32x32xf32>
    %cst_208 = arith.constant dense<0.000000e+00> : vector<2x32xf32>
    %215 = tpu.matmul %213, %214, %cst_208 {dimension_numbers = #tpu.dot_dimension_numbers<[1], [0], [0], [1], [0, 0, 1, 1], [], []>} : vector<2x32xf32>, vector<32x32xf32>, vector<2x32xf32> -> vector<2x32xf32>
    %216 = arith.addf %212, %215 : vector<2x32xf32>
    %c9_209 = arith.constant 9 : index
    %c0_210 = arith.constant 0 : index
    %217 = vector.load %arg9[%c9_209, %c0_210] : memref<44x32xf32, #tpu.memory_space<vmem>>, vector<2x32xf32>
    %c288 = arith.constant 288 : index
    %c0_211 = arith.constant 0 : index
    %218 = vector.load %arg3[%c288, %c0_211] : memref<672x32xf32, #tpu.memory_space<vmem>>, vector<32x32xf32>
    %cst_212 = arith.constant dense<0.000000e+00> : vector<2x32xf32>
    %219 = tpu.matmul %217, %218, %cst_212 {dimension_numbers = #tpu.dot_dimension_numbers<[1], [0], [0], [1], [0, 0, 1, 1], [], []>} : vector<2x32xf32>, vector<32x32xf32>, vector<2x32xf32> -> vector<2x32xf32>
    %220 = arith.addf %216, %219 : vector<2x32xf32>
    %c10_213 = arith.constant 10 : index
    %c0_214 = arith.constant 0 : index
    %221 = vector.load %arg9[%c10_213, %c0_214] : memref<44x32xf32, #tpu.memory_space<vmem>>, vector<2x32xf32>
    %c320 = arith.constant 320 : index
    %c0_215 = arith.constant 0 : index
    %222 = vector.load %arg3[%c320, %c0_215] : memref<672x32xf32, #tpu.memory_space<vmem>>, vector<32x32xf32>
    %cst_216 = arith.constant dense<0.000000e+00> : vector<2x32xf32>
    %223 = tpu.matmul %221, %222, %cst_216 {dimension_numbers = #tpu.dot_dimension_numbers<[1], [0], [0], [1], [0, 0, 1, 1], [], []>} : vector<2x32xf32>, vector<32x32xf32>, vector<2x32xf32> -> vector<2x32xf32>
    %224 = arith.addf %220, %223 : vector<2x32xf32>
    %c11_217 = arith.constant 11 : index
    %c0_218 = arith.constant 0 : index
    %225 = vector.load %arg9[%c11_217, %c0_218] : memref<44x32xf32, #tpu.memory_space<vmem>>, vector<2x32xf32>
    %c352 = arith.constant 352 : index
    %c0_219 = arith.constant 0 : index
    %226 = vector.load %arg3[%c352, %c0_219] : memref<672x32xf32, #tpu.memory_space<vmem>>, vector<32x32xf32>
    %cst_220 = arith.constant dense<0.000000e+00> : vector<2x32xf32>
    %227 = tpu.matmul %225, %226, %cst_220 {dimension_numbers = #tpu.dot_dimension_numbers<[1], [0], [0], [1], [0, 0, 1, 1], [], []>} : vector<2x32xf32>, vector<32x32xf32>, vector<2x32xf32> -> vector<2x32xf32>
    %228 = arith.addf %224, %227 : vector<2x32xf32>
    %c12_221 = arith.constant 12 : index
    %c0_222 = arith.constant 0 : index
    %229 = vector.load %arg9[%c12_221, %c0_222] : memref<44x32xf32, #tpu.memory_space<vmem>>, vector<2x32xf32>
    %c384 = arith.constant 384 : index
    %c0_223 = arith.constant 0 : index
    %230 = vector.load %arg3[%c384, %c0_223] : memref<672x32xf32, #tpu.memory_space<vmem>>, vector<32x32xf32>
    %cst_224 = arith.constant dense<0.000000e+00> : vector<2x32xf32>
    %231 = tpu.matmul %229, %230, %cst_224 {dimension_numbers = #tpu.dot_dimension_numbers<[1], [0], [0], [1], [0, 0, 1, 1], [], []>} : vector<2x32xf32>, vector<32x32xf32>, vector<2x32xf32> -> vector<2x32xf32>
    %232 = arith.addf %228, %231 : vector<2x32xf32>
    %c13_225 = arith.constant 13 : index
    %c0_226 = arith.constant 0 : index
    %233 = vector.load %arg9[%c13_225, %c0_226] : memref<44x32xf32, #tpu.memory_space<vmem>>, vector<2x32xf32>
    %c416 = arith.constant 416 : index
    %c0_227 = arith.constant 0 : index
    %234 = vector.load %arg3[%c416, %c0_227] : memref<672x32xf32, #tpu.memory_space<vmem>>, vector<32x32xf32>
    %cst_228 = arith.constant dense<0.000000e+00> : vector<2x32xf32>
    %235 = tpu.matmul %233, %234, %cst_228 {dimension_numbers = #tpu.dot_dimension_numbers<[1], [0], [0], [1], [0, 0, 1, 1], [], []>} : vector<2x32xf32>, vector<32x32xf32>, vector<2x32xf32> -> vector<2x32xf32>
    %236 = arith.addf %232, %235 : vector<2x32xf32>
    %c14_229 = arith.constant 14 : index
    %c0_230 = arith.constant 0 : index
    %237 = vector.load %arg9[%c14_229, %c0_230] : memref<44x32xf32, #tpu.memory_space<vmem>>, vector<2x32xf32>
    %c448 = arith.constant 448 : index
    %c0_231 = arith.constant 0 : index
    %238 = vector.load %arg3[%c448, %c0_231] : memref<672x32xf32, #tpu.memory_space<vmem>>, vector<32x32xf32>
    %cst_232 = arith.constant dense<0.000000e+00> : vector<2x32xf32>
    %239 = tpu.matmul %237, %238, %cst_232 {dimension_numbers = #tpu.dot_dimension_numbers<[1], [0], [0], [1], [0, 0, 1, 1], [], []>} : vector<2x32xf32>, vector<32x32xf32>, vector<2x32xf32> -> vector<2x32xf32>
    %240 = arith.addf %236, %239 : vector<2x32xf32>
    %c15_233 = arith.constant 15 : index
    %c0_234 = arith.constant 0 : index
    %241 = vector.load %arg9[%c15_233, %c0_234] : memref<44x32xf32, #tpu.memory_space<vmem>>, vector<2x32xf32>
    %c480 = arith.constant 480 : index
    %c0_235 = arith.constant 0 : index
    %242 = vector.load %arg3[%c480, %c0_235] : memref<672x32xf32, #tpu.memory_space<vmem>>, vector<32x32xf32>
    %cst_236 = arith.constant dense<0.000000e+00> : vector<2x32xf32>
    %243 = tpu.matmul %241, %242, %cst_236 {dimension_numbers = #tpu.dot_dimension_numbers<[1], [0], [0], [1], [0, 0, 1, 1], [], []>} : vector<2x32xf32>, vector<32x32xf32>, vector<2x32xf32> -> vector<2x32xf32>
    %244 = arith.addf %240, %243 : vector<2x32xf32>
    %c16_237 = arith.constant 16 : index
    %c0_238 = arith.constant 0 : index
    %245 = vector.load %arg9[%c16_237, %c0_238] : memref<44x32xf32, #tpu.memory_space<vmem>>, vector<2x32xf32>
    %c512 = arith.constant 512 : index
    %c0_239 = arith.constant 0 : index
    %246 = vector.load %arg3[%c512, %c0_239] : memref<672x32xf32, #tpu.memory_space<vmem>>, vector<32x32xf32>
    %cst_240 = arith.constant dense<0.000000e+00> : vector<2x32xf32>
    %247 = tpu.matmul %245, %246, %cst_240 {dimension_numbers = #tpu.dot_dimension_numbers<[1], [0], [0], [1], [0, 0, 1, 1], [], []>} : vector<2x32xf32>, vector<32x32xf32>, vector<2x32xf32> -> vector<2x32xf32>
    %248 = arith.addf %244, %247 : vector<2x32xf32>
    %c17_241 = arith.constant 17 : index
    %c0_242 = arith.constant 0 : index
    %249 = vector.load %arg9[%c17_241, %c0_242] : memref<44x32xf32, #tpu.memory_space<vmem>>, vector<2x32xf32>
    %c544 = arith.constant 544 : index
    %c0_243 = arith.constant 0 : index
    %250 = vector.load %arg3[%c544, %c0_243] : memref<672x32xf32, #tpu.memory_space<vmem>>, vector<32x32xf32>
    %cst_244 = arith.constant dense<0.000000e+00> : vector<2x32xf32>
    %251 = tpu.matmul %249, %250, %cst_244 {dimension_numbers = #tpu.dot_dimension_numbers<[1], [0], [0], [1], [0, 0, 1, 1], [], []>} : vector<2x32xf32>, vector<32x32xf32>, vector<2x32xf32> -> vector<2x32xf32>
    %252 = arith.addf %248, %251 : vector<2x32xf32>
    %c18_245 = arith.constant 18 : index
    %c0_246 = arith.constant 0 : index
    %253 = vector.load %arg9[%c18_245, %c0_246] : memref<44x32xf32, #tpu.memory_space<vmem>>, vector<2x32xf32>
    %c576 = arith.constant 576 : index
    %c0_247 = arith.constant 0 : index
    %254 = vector.load %arg3[%c576, %c0_247] : memref<672x32xf32, #tpu.memory_space<vmem>>, vector<32x32xf32>
    %cst_248 = arith.constant dense<0.000000e+00> : vector<2x32xf32>
    %255 = tpu.matmul %253, %254, %cst_248 {dimension_numbers = #tpu.dot_dimension_numbers<[1], [0], [0], [1], [0, 0, 1, 1], [], []>} : vector<2x32xf32>, vector<32x32xf32>, vector<2x32xf32> -> vector<2x32xf32>
    %256 = arith.addf %252, %255 : vector<2x32xf32>
    %c19_249 = arith.constant 19 : index
    %c0_250 = arith.constant 0 : index
    %257 = vector.load %arg9[%c19_249, %c0_250] : memref<44x32xf32, #tpu.memory_space<vmem>>, vector<2x32xf32>
    %c608 = arith.constant 608 : index
    %c0_251 = arith.constant 0 : index
    %258 = vector.load %arg3[%c608, %c0_251] : memref<672x32xf32, #tpu.memory_space<vmem>>, vector<32x32xf32>
    %cst_252 = arith.constant dense<0.000000e+00> : vector<2x32xf32>
    %259 = tpu.matmul %257, %258, %cst_252 {dimension_numbers = #tpu.dot_dimension_numbers<[1], [0], [0], [1], [0, 0, 1, 1], [], []>} : vector<2x32xf32>, vector<32x32xf32>, vector<2x32xf32> -> vector<2x32xf32>
    %260 = arith.addf %256, %259 : vector<2x32xf32>
    %c20_253 = arith.constant 20 : index
    %c0_254 = arith.constant 0 : index
    %261 = vector.load %arg9[%c20_253, %c0_254] : memref<44x32xf32, #tpu.memory_space<vmem>>, vector<2x32xf32>
    %c640 = arith.constant 640 : index
    %c0_255 = arith.constant 0 : index
    %262 = vector.load %arg3[%c640, %c0_255] : memref<672x32xf32, #tpu.memory_space<vmem>>, vector<32x32xf32>
    %cst_256 = arith.constant dense<0.000000e+00> : vector<2x32xf32>
    %263 = tpu.matmul %261, %262, %cst_256 {dimension_numbers = #tpu.dot_dimension_numbers<[1], [0], [0], [1], [0, 0, 1, 1], [], []>} : vector<2x32xf32>, vector<32x32xf32>, vector<2x32xf32> -> vector<2x32xf32>
    %264 = arith.addf %260, %263 : vector<2x32xf32>
    %c0_257 = arith.constant 0 : index
    %c0_258 = arith.constant 0 : index
    %265 = vector.load %arg4[%c0_257, %c0_258] : memref<1x32xf32, #tpu.memory_space<vmem>>, vector<1x32xf32>
    %266 = vector.broadcast %265 : vector<1x32xf32> to vector<2x32xf32>
    %267 = arith.addf %264, %266 : vector<2x32xf32>
    %cst_259 = arith.constant 0.000000e+00 : f32
    %268 = vector.broadcast %cst_259 : f32 to vector<2x32xf32>
    %269 = arith.maximumf %267, %268 : vector<2x32xf32>
    %270 = vector.extract_strided_slice %269 {offsets = [0, 0], sizes = [1, 32], strides = [1, 1]} : vector<2x32xf32> to vector<1x32xf32>
    %271 = vector.extract_strided_slice %269 {offsets = [1, 0], sizes = [1, 32], strides = [1, 1]} : vector<2x32xf32> to vector<1x32xf32>
    %272 = arith.maximumf %270, %271 : vector<1x32xf32>
    %c22 = arith.constant 22 : index
    %c0_260 = arith.constant 0 : index
    %273 = vector.load %arg9[%c22, %c0_260] : memref<44x32xf32, #tpu.memory_space<vmem>>, vector<2x32xf32>
    %c0_261 = arith.constant 0 : index
    %c0_262 = arith.constant 0 : index
    %274 = vector.load %arg3[%c0_261, %c0_262] : memref<672x32xf32, #tpu.memory_space<vmem>>, vector<32x32xf32>
    %cst_263 = arith.constant dense<0.000000e+00> : vector<2x32xf32>
    %275 = tpu.matmul %273, %274, %cst_263 {dimension_numbers = #tpu.dot_dimension_numbers<[1], [0], [0], [1], [0, 0, 1, 1], [], []>} : vector<2x32xf32>, vector<32x32xf32>, vector<2x32xf32> -> vector<2x32xf32>
    %c23 = arith.constant 23 : index
    %c0_264 = arith.constant 0 : index
    %276 = vector.load %arg9[%c23, %c0_264] : memref<44x32xf32, #tpu.memory_space<vmem>>, vector<2x32xf32>
    %c32_265 = arith.constant 32 : index
    %c0_266 = arith.constant 0 : index
    %277 = vector.load %arg3[%c32_265, %c0_266] : memref<672x32xf32, #tpu.memory_space<vmem>>, vector<32x32xf32>
    %cst_267 = arith.constant dense<0.000000e+00> : vector<2x32xf32>
    %278 = tpu.matmul %276, %277, %cst_267 {dimension_numbers = #tpu.dot_dimension_numbers<[1], [0], [0], [1], [0, 0, 1, 1], [], []>} : vector<2x32xf32>, vector<32x32xf32>, vector<2x32xf32> -> vector<2x32xf32>
    %279 = arith.addf %275, %278 : vector<2x32xf32>
    %c24_268 = arith.constant 24 : index
    %c0_269 = arith.constant 0 : index
    %280 = vector.load %arg9[%c24_268, %c0_269] : memref<44x32xf32, #tpu.memory_space<vmem>>, vector<2x32xf32>
    %c64_270 = arith.constant 64 : index
    %c0_271 = arith.constant 0 : index
    %281 = vector.load %arg3[%c64_270, %c0_271] : memref<672x32xf32, #tpu.memory_space<vmem>>, vector<32x32xf32>
    %cst_272 = arith.constant dense<0.000000e+00> : vector<2x32xf32>
    %282 = tpu.matmul %280, %281, %cst_272 {dimension_numbers = #tpu.dot_dimension_numbers<[1], [0], [0], [1], [0, 0, 1, 1], [], []>} : vector<2x32xf32>, vector<32x32xf32>, vector<2x32xf32> -> vector<2x32xf32>
    %283 = arith.addf %279, %282 : vector<2x32xf32>
    %c25 = arith.constant 25 : index
    %c0_273 = arith.constant 0 : index
    %284 = vector.load %arg9[%c25, %c0_273] : memref<44x32xf32, #tpu.memory_space<vmem>>, vector<2x32xf32>
    %c96_274 = arith.constant 96 : index
    %c0_275 = arith.constant 0 : index
    %285 = vector.load %arg3[%c96_274, %c0_275] : memref<672x32xf32, #tpu.memory_space<vmem>>, vector<32x32xf32>
    %cst_276 = arith.constant dense<0.000000e+00> : vector<2x32xf32>
    %286 = tpu.matmul %284, %285, %cst_276 {dimension_numbers = #tpu.dot_dimension_numbers<[1], [0], [0], [1], [0, 0, 1, 1], [], []>} : vector<2x32xf32>, vector<32x32xf32>, vector<2x32xf32> -> vector<2x32xf32>
    %287 = arith.addf %283, %286 : vector<2x32xf32>
    %c26 = arith.constant 26 : index
    %c0_277 = arith.constant 0 : index
    %288 = vector.load %arg9[%c26, %c0_277] : memref<44x32xf32, #tpu.memory_space<vmem>>, vector<2x32xf32>
    %c128_278 = arith.constant 128 : index
    %c0_279 = arith.constant 0 : index
    %289 = vector.load %arg3[%c128_278, %c0_279] : memref<672x32xf32, #tpu.memory_space<vmem>>, vector<32x32xf32>
    %cst_280 = arith.constant dense<0.000000e+00> : vector<2x32xf32>
    %290 = tpu.matmul %288, %289, %cst_280 {dimension_numbers = #tpu.dot_dimension_numbers<[1], [0], [0], [1], [0, 0, 1, 1], [], []>} : vector<2x32xf32>, vector<32x32xf32>, vector<2x32xf32> -> vector<2x32xf32>
    %291 = arith.addf %287, %290 : vector<2x32xf32>
    %c27 = arith.constant 27 : index
    %c0_281 = arith.constant 0 : index
    %292 = vector.load %arg9[%c27, %c0_281] : memref<44x32xf32, #tpu.memory_space<vmem>>, vector<2x32xf32>
    %c160_282 = arith.constant 160 : index
    %c0_283 = arith.constant 0 : index
    %293 = vector.load %arg3[%c160_282, %c0_283] : memref<672x32xf32, #tpu.memory_space<vmem>>, vector<32x32xf32>
    %cst_284 = arith.constant dense<0.000000e+00> : vector<2x32xf32>
    %294 = tpu.matmul %292, %293, %cst_284 {dimension_numbers = #tpu.dot_dimension_numbers<[1], [0], [0], [1], [0, 0, 1, 1], [], []>} : vector<2x32xf32>, vector<32x32xf32>, vector<2x32xf32> -> vector<2x32xf32>
    %295 = arith.addf %291, %294 : vector<2x32xf32>
    %c28 = arith.constant 28 : index
    %c0_285 = arith.constant 0 : index
    %296 = vector.load %arg9[%c28, %c0_285] : memref<44x32xf32, #tpu.memory_space<vmem>>, vector<2x32xf32>
    %c192_286 = arith.constant 192 : index
    %c0_287 = arith.constant 0 : index
    %297 = vector.load %arg3[%c192_286, %c0_287] : memref<672x32xf32, #tpu.memory_space<vmem>>, vector<32x32xf32>
    %cst_288 = arith.constant dense<0.000000e+00> : vector<2x32xf32>
    %298 = tpu.matmul %296, %297, %cst_288 {dimension_numbers = #tpu.dot_dimension_numbers<[1], [0], [0], [1], [0, 0, 1, 1], [], []>} : vector<2x32xf32>, vector<32x32xf32>, vector<2x32xf32> -> vector<2x32xf32>
    %299 = arith.addf %295, %298 : vector<2x32xf32>
    %c29 = arith.constant 29 : index
    %c0_289 = arith.constant 0 : index
    %300 = vector.load %arg9[%c29, %c0_289] : memref<44x32xf32, #tpu.memory_space<vmem>>, vector<2x32xf32>
    %c224_290 = arith.constant 224 : index
    %c0_291 = arith.constant 0 : index
    %301 = vector.load %arg3[%c224_290, %c0_291] : memref<672x32xf32, #tpu.memory_space<vmem>>, vector<32x32xf32>
    %cst_292 = arith.constant dense<0.000000e+00> : vector<2x32xf32>
    %302 = tpu.matmul %300, %301, %cst_292 {dimension_numbers = #tpu.dot_dimension_numbers<[1], [0], [0], [1], [0, 0, 1, 1], [], []>} : vector<2x32xf32>, vector<32x32xf32>, vector<2x32xf32> -> vector<2x32xf32>
    %303 = arith.addf %299, %302 : vector<2x32xf32>
    %c30 = arith.constant 30 : index
    %c0_293 = arith.constant 0 : index
    %304 = vector.load %arg9[%c30, %c0_293] : memref<44x32xf32, #tpu.memory_space<vmem>>, vector<2x32xf32>
    %c256_294 = arith.constant 256 : index
    %c0_295 = arith.constant 0 : index
    %305 = vector.load %arg3[%c256_294, %c0_295] : memref<672x32xf32, #tpu.memory_space<vmem>>, vector<32x32xf32>
    %cst_296 = arith.constant dense<0.000000e+00> : vector<2x32xf32>
    %306 = tpu.matmul %304, %305, %cst_296 {dimension_numbers = #tpu.dot_dimension_numbers<[1], [0], [0], [1], [0, 0, 1, 1], [], []>} : vector<2x32xf32>, vector<32x32xf32>, vector<2x32xf32> -> vector<2x32xf32>
    %307 = arith.addf %303, %306 : vector<2x32xf32>
    %c31 = arith.constant 31 : index
    %c0_297 = arith.constant 0 : index
    %308 = vector.load %arg9[%c31, %c0_297] : memref<44x32xf32, #tpu.memory_space<vmem>>, vector<2x32xf32>
    %c288_298 = arith.constant 288 : index
    %c0_299 = arith.constant 0 : index
    %309 = vector.load %arg3[%c288_298, %c0_299] : memref<672x32xf32, #tpu.memory_space<vmem>>, vector<32x32xf32>
    %cst_300 = arith.constant dense<0.000000e+00> : vector<2x32xf32>
    %310 = tpu.matmul %308, %309, %cst_300 {dimension_numbers = #tpu.dot_dimension_numbers<[1], [0], [0], [1], [0, 0, 1, 1], [], []>} : vector<2x32xf32>, vector<32x32xf32>, vector<2x32xf32> -> vector<2x32xf32>
    %311 = arith.addf %307, %310 : vector<2x32xf32>
    %c32_301 = arith.constant 32 : index
    %c0_302 = arith.constant 0 : index
    %312 = vector.load %arg9[%c32_301, %c0_302] : memref<44x32xf32, #tpu.memory_space<vmem>>, vector<2x32xf32>
    %c320_303 = arith.constant 320 : index
    %c0_304 = arith.constant 0 : index
    %313 = vector.load %arg3[%c320_303, %c0_304] : memref<672x32xf32, #tpu.memory_space<vmem>>, vector<32x32xf32>
    %cst_305 = arith.constant dense<0.000000e+00> : vector<2x32xf32>
    %314 = tpu.matmul %312, %313, %cst_305 {dimension_numbers = #tpu.dot_dimension_numbers<[1], [0], [0], [1], [0, 0, 1, 1], [], []>} : vector<2x32xf32>, vector<32x32xf32>, vector<2x32xf32> -> vector<2x32xf32>
    %315 = arith.addf %311, %314 : vector<2x32xf32>
    %c33 = arith.constant 33 : index
    %c0_306 = arith.constant 0 : index
    %316 = vector.load %arg9[%c33, %c0_306] : memref<44x32xf32, #tpu.memory_space<vmem>>, vector<2x32xf32>
    %c352_307 = arith.constant 352 : index
    %c0_308 = arith.constant 0 : index
    %317 = vector.load %arg3[%c352_307, %c0_308] : memref<672x32xf32, #tpu.memory_space<vmem>>, vector<32x32xf32>
    %cst_309 = arith.constant dense<0.000000e+00> : vector<2x32xf32>
    %318 = tpu.matmul %316, %317, %cst_309 {dimension_numbers = #tpu.dot_dimension_numbers<[1], [0], [0], [1], [0, 0, 1, 1], [], []>} : vector<2x32xf32>, vector<32x32xf32>, vector<2x32xf32> -> vector<2x32xf32>
    %319 = arith.addf %315, %318 : vector<2x32xf32>
    %c34 = arith.constant 34 : index
    %c0_310 = arith.constant 0 : index
    %320 = vector.load %arg9[%c34, %c0_310] : memref<44x32xf32, #tpu.memory_space<vmem>>, vector<2x32xf32>
    %c384_311 = arith.constant 384 : index
    %c0_312 = arith.constant 0 : index
    %321 = vector.load %arg3[%c384_311, %c0_312] : memref<672x32xf32, #tpu.memory_space<vmem>>, vector<32x32xf32>
    %cst_313 = arith.constant dense<0.000000e+00> : vector<2x32xf32>
    %322 = tpu.matmul %320, %321, %cst_313 {dimension_numbers = #tpu.dot_dimension_numbers<[1], [0], [0], [1], [0, 0, 1, 1], [], []>} : vector<2x32xf32>, vector<32x32xf32>, vector<2x32xf32> -> vector<2x32xf32>
    %323 = arith.addf %319, %322 : vector<2x32xf32>
    %c35 = arith.constant 35 : index
    %c0_314 = arith.constant 0 : index
    %324 = vector.load %arg9[%c35, %c0_314] : memref<44x32xf32, #tpu.memory_space<vmem>>, vector<2x32xf32>
    %c416_315 = arith.constant 416 : index
    %c0_316 = arith.constant 0 : index
    %325 = vector.load %arg3[%c416_315, %c0_316] : memref<672x32xf32, #tpu.memory_space<vmem>>, vector<32x32xf32>
    %cst_317 = arith.constant dense<0.000000e+00> : vector<2x32xf32>
    %326 = tpu.matmul %324, %325, %cst_317 {dimension_numbers = #tpu.dot_dimension_numbers<[1], [0], [0], [1], [0, 0, 1, 1], [], []>} : vector<2x32xf32>, vector<32x32xf32>, vector<2x32xf32> -> vector<2x32xf32>
    %327 = arith.addf %323, %326 : vector<2x32xf32>
    %c36 = arith.constant 36 : index
    %c0_318 = arith.constant 0 : index
    %328 = vector.load %arg9[%c36, %c0_318] : memref<44x32xf32, #tpu.memory_space<vmem>>, vector<2x32xf32>
    %c448_319 = arith.constant 448 : index
    %c0_320 = arith.constant 0 : index
    %329 = vector.load %arg3[%c448_319, %c0_320] : memref<672x32xf32, #tpu.memory_space<vmem>>, vector<32x32xf32>
    %cst_321 = arith.constant dense<0.000000e+00> : vector<2x32xf32>
    %330 = tpu.matmul %328, %329, %cst_321 {dimension_numbers = #tpu.dot_dimension_numbers<[1], [0], [0], [1], [0, 0, 1, 1], [], []>} : vector<2x32xf32>, vector<32x32xf32>, vector<2x32xf32> -> vector<2x32xf32>
    %331 = arith.addf %327, %330 : vector<2x32xf32>
    %c37 = arith.constant 37 : index
    %c0_322 = arith.constant 0 : index
    %332 = vector.load %arg9[%c37, %c0_322] : memref<44x32xf32, #tpu.memory_space<vmem>>, vector<2x32xf32>
    %c480_323 = arith.constant 480 : index
    %c0_324 = arith.constant 0 : index
    %333 = vector.load %arg3[%c480_323, %c0_324] : memref<672x32xf32, #tpu.memory_space<vmem>>, vector<32x32xf32>
    %cst_325 = arith.constant dense<0.000000e+00> : vector<2x32xf32>
    %334 = tpu.matmul %332, %333, %cst_325 {dimension_numbers = #tpu.dot_dimension_numbers<[1], [0], [0], [1], [0, 0, 1, 1], [], []>} : vector<2x32xf32>, vector<32x32xf32>, vector<2x32xf32> -> vector<2x32xf32>
    %335 = arith.addf %331, %334 : vector<2x32xf32>
    %c38 = arith.constant 38 : index
    %c0_326 = arith.constant 0 : index
    %336 = vector.load %arg9[%c38, %c0_326] : memref<44x32xf32, #tpu.memory_space<vmem>>, vector<2x32xf32>
    %c512_327 = arith.constant 512 : index
    %c0_328 = arith.constant 0 : index
    %337 = vector.load %arg3[%c512_327, %c0_328] : memref<672x32xf32, #tpu.memory_space<vmem>>, vector<32x32xf32>
    %cst_329 = arith.constant dense<0.000000e+00> : vector<2x32xf32>
    %338 = tpu.matmul %336, %337, %cst_329 {dimension_numbers = #tpu.dot_dimension_numbers<[1], [0], [0], [1], [0, 0, 1, 1], [], []>} : vector<2x32xf32>, vector<32x32xf32>, vector<2x32xf32> -> vector<2x32xf32>
    %339 = arith.addf %335, %338 : vector<2x32xf32>
    %c39 = arith.constant 39 : index
    %c0_330 = arith.constant 0 : index
    %340 = vector.load %arg9[%c39, %c0_330] : memref<44x32xf32, #tpu.memory_space<vmem>>, vector<2x32xf32>
    %c544_331 = arith.constant 544 : index
    %c0_332 = arith.constant 0 : index
    %341 = vector.load %arg3[%c544_331, %c0_332] : memref<672x32xf32, #tpu.memory_space<vmem>>, vector<32x32xf32>
    %cst_333 = arith.constant dense<0.000000e+00> : vector<2x32xf32>
    %342 = tpu.matmul %340, %341, %cst_333 {dimension_numbers = #tpu.dot_dimension_numbers<[1], [0], [0], [1], [0, 0, 1, 1], [], []>} : vector<2x32xf32>, vector<32x32xf32>, vector<2x32xf32> -> vector<2x32xf32>
    %343 = arith.addf %339, %342 : vector<2x32xf32>
    %c40_334 = arith.constant 40 : index
    %c0_335 = arith.constant 0 : index
    %344 = vector.load %arg9[%c40_334, %c0_335] : memref<44x32xf32, #tpu.memory_space<vmem>>, vector<2x32xf32>
    %c576_336 = arith.constant 576 : index
    %c0_337 = arith.constant 0 : index
    %345 = vector.load %arg3[%c576_336, %c0_337] : memref<672x32xf32, #tpu.memory_space<vmem>>, vector<32x32xf32>
    %cst_338 = arith.constant dense<0.000000e+00> : vector<2x32xf32>
    %346 = tpu.matmul %344, %345, %cst_338 {dimension_numbers = #tpu.dot_dimension_numbers<[1], [0], [0], [1], [0, 0, 1, 1], [], []>} : vector<2x32xf32>, vector<32x32xf32>, vector<2x32xf32> -> vector<2x32xf32>
    %347 = arith.addf %343, %346 : vector<2x32xf32>
    %c41 = arith.constant 41 : index
    %c0_339 = arith.constant 0 : index
    %348 = vector.load %arg9[%c41, %c0_339] : memref<44x32xf32, #tpu.memory_space<vmem>>, vector<2x32xf32>
    %c608_340 = arith.constant 608 : index
    %c0_341 = arith.constant 0 : index
    %349 = vector.load %arg3[%c608_340, %c0_341] : memref<672x32xf32, #tpu.memory_space<vmem>>, vector<32x32xf32>
    %cst_342 = arith.constant dense<0.000000e+00> : vector<2x32xf32>
    %350 = tpu.matmul %348, %349, %cst_342 {dimension_numbers = #tpu.dot_dimension_numbers<[1], [0], [0], [1], [0, 0, 1, 1], [], []>} : vector<2x32xf32>, vector<32x32xf32>, vector<2x32xf32> -> vector<2x32xf32>
    %351 = arith.addf %347, %350 : vector<2x32xf32>
    %c42 = arith.constant 42 : index
    %c0_343 = arith.constant 0 : index
    %352 = vector.load %arg9[%c42, %c0_343] : memref<44x32xf32, #tpu.memory_space<vmem>>, vector<2x32xf32>
    %c640_344 = arith.constant 640 : index
    %c0_345 = arith.constant 0 : index
    %353 = vector.load %arg3[%c640_344, %c0_345] : memref<672x32xf32, #tpu.memory_space<vmem>>, vector<32x32xf32>
    %cst_346 = arith.constant dense<0.000000e+00> : vector<2x32xf32>
    %354 = tpu.matmul %352, %353, %cst_346 {dimension_numbers = #tpu.dot_dimension_numbers<[1], [0], [0], [1], [0, 0, 1, 1], [], []>} : vector<2x32xf32>, vector<32x32xf32>, vector<2x32xf32> -> vector<2x32xf32>
    %355 = arith.addf %351, %354 : vector<2x32xf32>
    %c0_347 = arith.constant 0 : index
    %c0_348 = arith.constant 0 : index
    %356 = vector.load %arg4[%c0_347, %c0_348] : memref<1x32xf32, #tpu.memory_space<vmem>>, vector<1x32xf32>
    %357 = vector.broadcast %356 : vector<1x32xf32> to vector<2x32xf32>
    %358 = arith.addf %355, %357 : vector<2x32xf32>
    %cst_349 = arith.constant 0.000000e+00 : f32
    %359 = vector.broadcast %cst_349 : f32 to vector<2x32xf32>
    %360 = arith.maximumf %358, %359 : vector<2x32xf32>
    %361 = vector.extract_strided_slice %360 {offsets = [0, 0], sizes = [1, 32], strides = [1, 1]} : vector<2x32xf32> to vector<1x32xf32>
    %362 = vector.extract_strided_slice %360 {offsets = [1, 0], sizes = [1, 32], strides = [1, 1]} : vector<2x32xf32> to vector<1x32xf32>
    %363 = arith.maximumf %361, %362 : vector<1x32xf32>
    %364 = tpu.concatenate %272, %363 in 0 : vector<1x32xf32>, vector<1x32xf32> -> vector<2x32xf32>
    %c0_350 = arith.constant 0 : index
    %c0_351 = arith.constant 0 : index
    %365 = vector.load %arg5[%c0_350, %c0_351] : memref<32x1xf32, #tpu.memory_space<vmem>>, vector<32x1xf32>
    %cst_352 = arith.constant dense<0.000000e+00> : vector<2x1xf32>
    %366 = tpu.matmul %364, %365, %cst_352 {dimension_numbers = #tpu.dot_dimension_numbers<[1], [0], [0], [1], [0, 0, 1, 1], [], []>} : vector<2x32xf32>, vector<32x1xf32>, vector<2x1xf32> -> vector<2x1xf32>
    %c0_353 = arith.constant 0 : index
    %c0_354 = arith.constant 0 : index
    %367 = vector.load %arg6[%c0_353, %c0_354] : memref<1x1xf32, #tpu.memory_space<vmem>>, vector<1x1xf32>
    %368 = vector.broadcast %367 : vector<1x1xf32> to vector<2x1xf32>
    %369 = arith.addf %366, %368 : vector<2x1xf32>
    %c0_355 = arith.constant 0 : index
    %c0_356 = arith.constant 0 : index
    %370 = vector.load %arg7[%c0_355, %c0_356] : memref<2x1xf32, #tpu.memory_space<vmem>>, vector<2x1xf32>
    tpu.vector_store %arg7[%c0_355, %c0_356], %369 {strides = array<i32>} : memref<2x1xf32, #tpu.memory_space<vmem>>, vector<2x1xf32>,
    return
  }
}

</mosaic_0001>

<bundles_post_ra>
// kernel: simple_cnn_forward.1
= control target key start
LH: loop header
LB: loop body
LE: loop exit
PB: predicated region body
PF: predicated region fallthrough
CT: control target
= control target key end

     0   :  { %s6395_s0 = inlined_call_operand.vmem [shape: f32[128,8], index: 0, kind: input, shape index: {}]   ;;  %s6396_s1 = inlined_call_operand.hbm [shape: f32[168,32], index: 1, kind: input, shape index: {}]   ;;  %s6397_s2 = inlined_call_operand.vmem [shape: f32[1,32], index: 2, kind: input, shape index: {}]   ;;  %s6398_s3 = inlined_call_operand.hbm [shape: f32[672,32], index: 3, kind: input, shape index: {}]   ;;  %s6399_s4 = inlined_call_operand.vmem [shape: f32[1,32], index: 4, kind: input, shape index: {}]   ;;  %s6400_s5 = inlined_call_operand.vmem [shape: f32[32,1], index: 5, kind: input, shape index: {}]   ;;  %s6401_s6 = inlined_call_operand.<no memory space> [shape: f32[1,1], index: 6, kind: input, shape index: {}]   ;;  %s6402_s7 = inlined_call_operand.vmem [shape: f32[2,1], index: 7, kind: output, shape index: {}]  }
   0x1   :  { %v12_v0 = vstv %s6401_s6 }
   0x2   :  { %13 = vst [vmem:[#allocation4] sm:$0x1] %v12_v0 }
   0x3   :  { %14 = vsyncpa [#allocation6], 0  ;;  %s22_s28 = sshll.u32 %s6396_s1, 4  ;;  %s23_s28 = int_to_ptr.hbm [resolvable:$true] %s22_s28 }
   0x4   :  { %15 = vsyncpa [#allocation8], 0  ;;  %s4435_s29 = smov [#allocation5]   ;;  %s37_s10 = sshll.u32 %s6398_s3, 4  ;;  %s38_s10 = int_to_ptr.hbm [resolvable:$true] %s37_s10 }
   0x5   :  { %s24_s30 = sshll.u32 %s4435_s29, 4  ;;  %s4436_s11 = smov 128   ;;  %s25_s30 = int_to_ptr.vmem [resolvable:$true] %s24_s30 }
   0x6   :  { %s4437_s12 = smov 8   ;;  %s4438_s6 = smov [#allocation7]  }
   0x7   :  { %30 = dma.hbm_to_vmem [thread:$0]  %s23_s28, 2688, %s25_s30, [#allocation6], %s4436_s11, %s4436_s11, %s4437_s12  }
   0x8   :  { %s39_s13 = sshll.u32 %s4438_s6, 4  ;;  %s40_s13 = int_to_ptr.vmem [resolvable:$true] %s39_s13 }
   0x9   :  { %45 = dma.hbm_to_vmem [thread:$0]  %s38_s10, 10752, %s40_s13, [#allocation8], %s4436_s11, %s4436_s11, %s4437_s12  }
   0xa   :  { %4431 = dma.done.wait [#allocation6], 2688  }
   0xb   :  { %4432 = vsyncadd [#allocation6], 4294964608 }
   0xc   :  { %4433 = dma.done.wait [#allocation8], 10752  }
   0xd   :  { %4434 = vsyncadd [#allocation8], 4294956544  ;;  %v4488_v1 = vld [vmem:[#allocation5 + $0x8] sm:$0xff]  ;;  %v4490_v2 = vld [vmem:[#allocation5] sm:$0xff]  ;;  %vm74_vm0 = vcmask 64512   ;;  %vm1451_vm1 = vcmask 261120  }
   0xe   :  { %v4492_v3 = vld [vmem:[#allocation5 + $0x10] sm:$0xff]  ;;  %108 = vmatpush.msra.mxu0 %v4488_v1  ;;  %161 = vmatpush.msra.mxu1 %v4490_v2  ;;  %v4496_v4 = vld [vmem:[#allocation5 + $0x18] sm:$0xff]  ;;  %v4512_v9 = vld [vmem:[#allocation5 + $0x20] sm:$0xff]  ;;  %vm1457_vm2 = vcmask 257024   ;;  %vm4039_vm3 = vcmask 1040384   ;;  %vm4072_vm4 = vcmask 1024  }
   0xf   :  { %v67_v5 = vld [vmem:[%s6395_s0 + $0x1] sm:$0xff]  ;;  %221 = vmatpush.msra.mxu2 %v4492_v3  ;;  %287 = vmatpush.msra.mxu3 %v4496_v4  ;;  %v4516_v10 = vld [vmem:[#allocation5 + $0x28] sm:$0xff]  ;;  %v4525_v11 = vld [vmem:[%s6395_s0 + $0x9] sm:$0xff] }
  0x10   :  { %v60_v6 = vld [vmem:[%s6395_s0] sm:$0xff]  ;;  %4080 = vmatmul.msk.f32.vlgmr.msra.gmra.mxu0 %vm74_vm0, %v67_v5  ;;  %419 = vmatpush.msrb.mxu1 %v4516_v10  ;;  %v4530_v12 = vld [vmem:[%s6395_s0 + $0x8] sm:$0xff]  ;;  %v4559_v17 = vld [vmem:[%s6395_s0 + $0x11] sm:$0xff] }
  0x11   :  { %v181_v7 = vld [vmem:[%s6395_s0 + $0x2] sm:$0xff]  ;;  %4086 = vmatmul.msk.f32.vlgmr.msra.gmra.mxu1 %vm74_vm0, %v60_v6  ;;  %353 = vmatpush.msrb.mxu0 %v4512_v9  ;;  %v4535_v13 = vld [vmem:[%s6395_s0 + $0xa] sm:$0xff]  ;;  %v4537_v14 = vld [vmem:[#allocation5 + $0x30] sm:$0xff] }
  0x12   :  { %v247_v8 = vld [vmem:[%s6395_s0 + $0x3] sm:$0xff]  ;;  %4092 = vmatmul.msk.f32.vlgmr.msra.gmra.mxu2 %vm74_vm0, %v181_v7  ;;  %v4542_v15 = vld [vmem:[%s6395_s0 + $0xb] sm:$0xff]  ;;  %v4574_v20 = vld [vmem:[%s6395_s0 + $0x13] sm:$0xff] }
  0x13   :  { %4098 = vmatmul.msk.f32.vlgmr.msra.gmra.mxu3 %vm74_vm0, %v247_v8  ;;  %485 = vmatpush.msrb.mxu2 %v4537_v14  ;;  %v4553_v16 = vld [vmem:[#allocation5 + $0x38] sm:$0xff]  ;;  %v4564_v18 = vld [vmem:[%s6395_s0 + $0x10] sm:$0xff]  ;;  %v4593_v23 = vld [vmem:[%s6395_s0 + $0x19] sm:$0xff] }
  0x14   :  { %551 = vmatpush.msrb.mxu3 %v4553_v16  ;;  %v4569_v19 = vld [vmem:[%s6395_s0 + $0x12] sm:$0xff]  ;;  %v4584_v21 = vld [vmem:[#allocation5 + $0x40] sm:$0xff]  ;;  %v4603_v25 = vld [vmem:[%s6395_s0 + $0x1a] sm:$0xff] }
  0x15   :  { %v4586_v22 = vld [vmem:[#allocation5 + $0x48] sm:$0xff]  ;;  %617 = vmatpush.msra.mxu0 %v4584_v21  ;;  %v4608_v26 = vld [vmem:[%s6395_s0 + $0x1b] sm:$0xff]  ;;  %v4636_v30 = vld [vmem:[%s6395_s0 + $0x23] sm:$0xff] }
  0x16   :  { %683 = vmatpush.msra.mxu1 %v4586_v22  ;;  %v4598_v24 = vld [vmem:[%s6395_s0 + $0x18] sm:$0xff]  ;;  %v4621_v27 = vld [vmem:[%s6395_s0 + $0x21] sm:$0xff]  ;;  %v72_v31 = vld [vmem:[%s6395_s0 + $0x29] sm:$0xf] }
  0x17   :  { %v4626_v28 = vld [vmem:[%s6395_s0 + $0x20] sm:$0xff]  ;;  %v65_v32 = vld [vmem:[%s6395_s0 + $0x28] sm:$0xf]  ;;  %v4684_v40 = vld [vmem:[%s6395_s0 + $0xc] sm:$0xff] }
  0x18   :  { %4081 = vmatmul.msk.f32.gmra.mxu0 %vm74_vm0, %v4525_v11  ;;  %v4631_v29 = vld [vmem:[%s6395_s0 + $0x22] sm:$0xff]  ;;  %v186_v33 = vld [vmem:[%s6395_s0 + $0x2a] sm:$0xf]  ;;  %v4678_v39 = vld [vmem:[#allocation5 + $0x50] sm:$0xff] }
  0x19   :  { %4087 = vmatmul.msk.f32.gmra.mxu1 %vm74_vm0, %v4530_v12  ;;  %v252_v34 = vld [vmem:[%s6395_s0 + $0x2b] sm:$0xf]  ;;  %749 = vmatpush.msra.mxu2 %v4678_v39  ;;  %v4699_v43 = vld [vmem:[%s6395_s0 + $0xf] sm:$0xff]  ;;  %v4709_v44 = vld [vmem:[#allocation5 + $0x58] sm:$0xff] }
  0x1a   :  { %4093 = vmatmul.msk.f32.gmra.mxu2 %vm74_vm0, %v4535_v13  ;;  %v313_v35 = vld [vmem:[%s6395_s0 + $0x4] sm:$0xff]  ;;  %v4689_v41 = vld [vmem:[%s6395_s0 + $0xd] sm:$0xff]  ;;  %815 = vmatpush.msra.mxu3 %v4709_v44  ;;  %v4720_v46 = vld [vmem:[%s6395_s0 + $0x15] sm:$0xff] }
  0x1b   :  { %4099 = vmatmul.msk.f32.gmra.mxu3 %vm74_vm0, %v4542_v15  ;;  %v379_v36 = vld [vmem:[%s6395_s0 + $0x5] sm:$0xff]  ;;  %v4694_v42 = vld [vmem:[%s6395_s0 + $0xe] sm:$0xff]  ;;  %v4725_v47 = vld [vmem:[%s6395_s0 + $0x16] sm:$0xff] }
  0x1c   :  { %v445_v37 = vld [vmem:[%s6395_s0 + $0x6] sm:$0xff]  ;;  %v4715_v45 = vld [vmem:[%s6395_s0 + $0x14] sm:$0xff]  ;;  %v4746_v51 = vld [vmem:[%s6395_s0 + $0x1c] sm:$0xff] }
  0x1d   :  { %v511_v38 = vld [vmem:[%s6395_s0 + $0x7] sm:$0xff]  ;;  %v4730_v48 = vld [vmem:[%s6395_s0 + $0x17] sm:$0xff]  ;;  %v4761_v54 = vld [vmem:[%s6395_s0 + $0x1f] sm:$0xff] }
  0x1e   :  { %v4740_v49 = vld [vmem:[#allocation5 + $0x60] sm:$0xff]  ;;  %v913_v50 = vld [vmem:[#allocation5 + $0x68] sm:$0xff]  ;;  %v4751_v52 = vld [vmem:[%s6395_s0 + $0x1d] sm:$0xff] }
  0x1f   :  { %v4756_v53 = vld [vmem:[%s6395_s0 + $0x1e] sm:$0xff]  ;;  %v4784_v57 = vld [vmem:[%s6395_s0 + $0x26] sm:$0xff]  ;;  %v450_v61 = vld [vmem:[%s6395_s0 + $0x2e] sm:$0xf] }
  0x20   :  { %4082 = vmatmul.msk.f32.gmra.mxu0 %vm74_vm0, %v4559_v17  ;;  %v4774_v55 = vld [vmem:[%s6395_s0 + $0x24] sm:$0xff]  ;;  %v318_v59 = vld [vmem:[%s6395_s0 + $0x2c] sm:$0xf]  ;;  %v979_v63 = vld [vmem:[#allocation5 + $0x70] sm:$0xff] }
  0x21   :  { %4088 = vmatmul.msk.f32.gmra.mxu1 %vm74_vm0, %v4564_v18  ;;  %v4779_v56 = vld [vmem:[%s6395_s0 + $0x25] sm:$0xff]  ;;  %v384_v60 = vld [vmem:[%s6395_s0 + $0x2d] sm:$0xf]  ;;  %v1177_v6 = vld [vmem:[#allocation5 + $0x88] sm:$0xff] }
  0x22   :  { %4094 = vmatmul.msk.f32.gmra.mxu2 %vm74_vm0, %v4569_v19  ;;  %v4789_v58 = vld [vmem:[%s6395_s0 + $0x27] sm:$0xff]  ;;  %v516_v62 = vld [vmem:[%s6395_s0 + $0x2f] sm:$0xf] }
  0x23   :  { %4100 = vmatmul.msk.f32.gmra.mxu3 %vm74_vm0, %v4574_v20  ;;  %v1045_v0 = vld [vmem:[#allocation5 + $0x78] sm:$0xff]  ;;  %v1111_v5 = vld [vmem:[#allocation5 + $0x80] sm:$0xff] }
  0x28   :  { %4083 = vmatmul.msk.f32.gmra.mxu0 %vm74_vm0, %v4593_v23 }
  0x29   :  { %4089 = vmatmul.msk.f32.gmra.mxu1 %vm74_vm0, %v4598_v24 }
  0x2a   :  { %4095 = vmatmul.msk.f32.gmra.mxu2 %vm74_vm0, %v4603_v25 }
  0x2b   :  { %4101 = vmatmul.msk.f32.gmra.mxu3 %vm74_vm0, %v4608_v26 }
  0x30   :  { %4084 = vmatmul.msk.f32.gmra.mxu0 %vm74_vm0, %v4621_v27 }
  0x31   :  { %4090 = vmatmul.msk.f32.gmra.mxu1 %vm74_vm0, %v4626_v28 }
  0x32   :  { %4096 = vmatmul.msk.f32.gmra.mxu2 %vm74_vm0, %v4631_v29 }
  0x33   :  { %4102 = vmatmul.msk.f32.gmra.mxu3 %vm74_vm0, %v4636_v30 }
  0x38   :  { %4085 = vmatmul.msk.f32.gmra.mxu0 %vm74_vm0, %v72_v31 }
  0x39   :  { %4091 = vmatmul.msk.f32.gmra.mxu1 %vm74_vm0, %v65_v32 }
  0x3a   :  { %4097 = vmatmul.msk.f32.gmra.mxu2 %vm74_vm0, %v186_v33 }
  0x3b   :  { %4103 = vmatmul.msk.f32.gmra.mxu3 %vm74_vm0, %v252_v34 }
  0x40   :  { %4104 = vmatmul.msk.f32.vlgmr.msrb.gmra.mxu0 %vm74_vm0, %v313_v35 }
  0x41   :  { %4110 = vmatmul.msk.f32.vlgmr.msrb.gmra.mxu1 %vm74_vm0, %v379_v36  ;;  %881 = vmatpush.msrb.mxu0 %v4740_v49 }
  0x42   :  { %4116 = vmatmul.msk.f32.vlgmr.msrb.gmra.mxu2 %vm74_vm0, %v445_v37  ;;  %947 = vmatpush.msrb.mxu1 %v913_v50  ;;  %v582_v37 = vld [vmem:[%s6395_s0 + $0x30] sm:$0xf] }
  0x43   :  { %4122 = vmatmul.msk.f32.vlgmr.msrb.gmra.mxu3 %vm74_vm0, %v511_v38  ;;  %1013 = vmatpush.msrb.mxu2 %v979_v63  ;;  %v648_v38 = vld [vmem:[%s6395_s0 + $0x31] sm:$0xf] }
  0x44   :  { %1079 = vmatpush.msrb.mxu3 %v1045_v0  ;;  %v714_v50 = vld [vmem:[%s6395_s0 + $0x32] sm:$0xf] }
  0x48   :  { %4105 = vmatmul.msk.f32.gmra.mxu0 %vm74_vm0, %v4684_v40 }
  0x49   :  { %4111 = vmatmul.msk.f32.gmra.mxu1 %vm74_vm0, %v4689_v41 }
  0x4a   :  { %4117 = vmatmul.msk.f32.gmra.mxu2 %vm74_vm0, %v4694_v42 }
  0x4b   :  { %4123 = vmatmul.msk.f32.gmra.mxu3 %vm74_vm0, %v4699_v43 }
  0x50   :  { %4106 = vmatmul.msk.f32.gmra.mxu0 %vm74_vm0, %v4715_v45 }
  0x51   :  { %4112 = vmatmul.msk.f32.gmra.mxu1 %vm74_vm0, %v4720_v46 }
  0x52   :  { %4118 = vmatmul.msk.f32.gmra.mxu2 %vm74_vm0, %v4725_v47 }
  0x53   :  { %4124 = vmatmul.msk.f32.gmra.mxu3 %vm74_vm0, %v4730_v48 }
  0x58   :  { %4107 = vmatmul.msk.f32.gmra.mxu0 %vm74_vm0, %v4746_v51 }
  0x59   :  { %4113 = vmatmul.msk.f32.gmra.mxu1 %vm74_vm0, %v4751_v52 }
  0x5a   :  { %4119 = vmatmul.msk.f32.gmra.mxu2 %vm74_vm0, %v4756_v53 }
  0x5b   :  { %4125 = vmatmul.msk.f32.gmra.mxu3 %vm74_vm0, %v4761_v54 }
  0x60   :  { %4108 = vmatmul.msk.f32.gmra.mxu0 %vm74_vm0, %v4774_v55 }
  0x61   :  { %4114 = vmatmul.msk.f32.gmra.mxu1 %vm74_vm0, %v4779_v56 }
  0x62   :  { %4120 = vmatmul.msk.f32.gmra.mxu2 %vm74_vm0, %v4784_v57 }
  0x63   :  { %4126 = vmatmul.msk.f32.gmra.mxu3 %vm74_vm0, %v4789_v58 }
  0x68   :  { %4109 = vmatmul.msk.f32.gmra.mxu0 %vm74_vm0, %v318_v59  ;;  %v780_v59 = vld [vmem:[%s6395_s0 + $0x33] sm:$0xf] }
  0x69   :  { %4115 = vmatmul.msk.f32.gmra.mxu1 %vm74_vm0, %v384_v60 }
  0x6a   :  { %4121 = vmatmul.msk.f32.gmra.mxu2 %vm74_vm0, %v450_v61 }
  0x6b   :  { %4127 = vmatmul.msk.f32.gmra.mxu3 %vm74_vm0, %v516_v62 }
  0x70   :  { %4128 = vmatmul.msk.f32.vlgmr.msra.gmra.mxu0 %vm74_vm0, %v4530_v12  ;;  %v4855_v12 = vld [vmem:[%s6395_s0 + $0x29] sm:$0xff] }
  0x71   :  { %4134 = vmatmul.msk.f32.vlgmr.msra.gmra.mxu1 %vm74_vm0, %v4525_v11  ;;  %1145 = vmatpush.msra.mxu0 %v1111_v5  ;;  %v4850_v11 = vld [vmem:[%s6395_s0 + $0x28] sm:$0xff] }
  0x72   :  { %4140 = vmatmul.msk.f32.vlgmr.msra.gmra.mxu2 %vm74_vm0, %v4535_v13  ;;  %1211 = vmatpush.msra.mxu1 %v1177_v6  ;;  %v4860_v13 = vld [vmem:[%s6395_s0 + $0x2a] sm:$0xff] }
  0x73   :  { %4146 = vmatmul.msk.f32.vlgmr.msra.gmra.mxu3 %vm74_vm0, %v4542_v15  ;;  %v4865_v15 = vld [vmem:[%s6395_s0 + $0x2b] sm:$0xff] }
  0x78   :  { %4129 = vmatmul.msk.f32.gmra.mxu0 %vm74_vm0, %v4564_v18 }
  0x79   :  { %4135 = vmatmul.msk.f32.gmra.mxu1 %vm74_vm0, %v4559_v17 }
  0x7a   :  { %4141 = vmatmul.msk.f32.gmra.mxu2 %vm74_vm0, %v4569_v19 }
  0x7b   :  { %4147 = vmatmul.msk.f32.gmra.mxu3 %vm74_vm0, %v4574_v20 }
  0x80   :  { %4130 = vmatmul.msk.f32.gmra.mxu0 %vm74_vm0, %v4598_v24 }
  0x81   :  { %4136 = vmatmul.msk.f32.gmra.mxu1 %vm74_vm0, %v4593_v23 }
  0x82   :  { %4142 = vmatmul.msk.f32.gmra.mxu2 %vm74_vm0, %v4603_v25 }
  0x83   :  { %4148 = vmatmul.msk.f32.gmra.mxu3 %vm74_vm0, %v4608_v26 }
  0x88   :  { %4131 = vmatmul.msk.f32.gmra.mxu0 %vm74_vm0, %v4626_v28 }
  0x89   :  { %4137 = vmatmul.msk.f32.gmra.mxu1 %vm74_vm0, %v4621_v27 }
  0x8a   :  { %4143 = vmatmul.msk.f32.gmra.mxu2 %vm74_vm0, %v4631_v29 }
  0x8b   :  { %4149 = vmatmul.msk.f32.gmra.mxu3 %vm74_vm0, %v4636_v30 }
  0x8d   :  { %v110_v7 = vpop.f32.mrf.mxu0 }
  0x8e   :  { %v163_v8 = vpop.f32.mrf.mxu1 }
  0x8f   :  { %v164_v31 = vadd.f32 %v163_v8, %v110_v7 }
  0x90   :  { %4132 = vmatmul.msk.f32.gmra.mxu0 %vm74_vm0, %v4850_v11 }
  0x91   :  { %4138 = vmatmul.msk.f32.gmra.mxu1 %vm74_vm0, %v4855_v12 }
  0x92   :  { %4144 = vmatmul.msk.f32.gmra.mxu2 %vm74_vm0, %v4860_v13 }
  0x93   :  { %4150 = vmatmul.msk.f32.gmra.mxu3 %vm74_vm0, %v4865_v15 }
  0x95   :  { %v223_v32 = vpop.f32.mrf.mxu2  ;;  %v113_v35 = vpop.f32.mrf.mxu0 }
  0x96   :  { %v289_v33 = vpop.f32.mrf.mxu3  ;;  %v241_v34 = vadd.f32 %v223_v32, %v164_v31  ;;  %v166_v36 = vpop.f32.mrf.mxu1 }
  0x97   :  { %v167_v61 = vadd.f32 %v166_v36, %v113_v35 }
  0x98   :  { %v4887_v60 = vadd.f32 %v289_v33, %v241_v34  ;;  %4133 = vmatmul.msk.f32.gmra.mxu0 %vm74_vm0, %v582_v37 }
  0x99   :  { %4139 = vmatmul.msk.f32.gmra.mxu1 %vm74_vm0, %v648_v38 }
  0x9a   :  { %4145 = vmatmul.msk.f32.gmra.mxu2 %vm74_vm0, %v714_v50 }
  0x9b   :  { %4151 = vmatmul.msk.f32.gmra.mxu3 %vm74_vm0, %v780_v59 }
  0x9d   :  { %v226_v62 = vpop.f32.mrf.mxu2  ;;  %v116_v5 = vpop.f32.mrf.mxu0 }
  0x9e   :  { %v292_v63 = vpop.f32.mrf.mxu3  ;;  %v242_v0 = vadd.f32 %v226_v62, %v167_v61  ;;  %v169_v6 = vpop.f32.mrf.mxu1 }
  0x9f   :  { %v170_v8 = vadd.f32 %v169_v6, %v116_v5 }
  0xa0   :  { %v4893_v7 = vadd.f32 %v292_v63, %v242_v0  ;;  %4152 = vmatmul.msk.f32.vlgmr.msrb.gmra.mxu0 %vm74_vm0, %v4684_v40  ;;  %v1243_v40 = vld [vmem:[#allocation5 + $0x90] sm:$0xff] }
  0xa1   :  { %4158 = vmatmul.msk.f32.vlgmr.msrb.gmra.mxu1 %vm74_vm0, %v4689_v41  ;;  %1277 = vmatpush.msra.mxu2 %v1243_v40 }
  0xa2   :  { %4164 = vmatmul.msk.f32.vlgmr.msrb.gmra.mxu2 %vm74_vm0, %v4694_v42  ;;  %1506 = vmatpush.msrb.mxu1 %v4488_v1  ;;  %v1309_v1 = vld [vmem:[#allocation5 + $0x98] sm:$0xff] }
  0xa3   :  { %4170 = vmatmul.msk.f32.vlgmr.msrb.gmra.mxu3 %vm74_vm0, %v4699_v43  ;;  %1559 = vmatpush.msrb.mxu2 %v4490_v2  ;;  %v1375_v2 = vld [vmem:[#allocation5 + $0xa0] sm:$0xff] }
  0xa4   :  { %1343 = vmatpush.msra.mxu3 %v1309_v1  ;;  %1409 = vmatpush.msrb.mxu0 %v1375_v2 }
  0xa5   :  { %v229_v31 = vpop.f32.mrf.mxu2  ;;  %v119_v34 = vpop.f32.mrf.mxu0 }
  0xa6   :  { %v295_v32 = vpop.f32.mrf.mxu3  ;;  %v243_v33 = vadd.f32 %v229_v31, %v170_v8  ;;  %v172_v35 = vpop.f32.mrf.mxu1  ;;  %1619 = vmatpush.msrb.mxu3 %v4492_v3  ;;  %v4939_v8 = vld [vmem:[%s6395_s0 + $0x2c] sm:$0xff] }
  0xa7   :  { %v173_v41 = vadd.f32 %v172_v35, %v119_v34  ;;  %v1043_v31 = vld [vmem:[%s6395_s0 + $0x2f] sm:$0xff] }
  0xa8   :  { %v4904_v36 = vadd.f32 %v295_v32, %v243_v33  ;;  %4153 = vmatmul.msk.f32.gmra.mxu0 %vm74_vm0, %v4715_v45 }
  0xa9   :  { %4159 = vmatmul.msk.f32.gmra.mxu1 %vm74_vm0, %v4720_v46 }
  0xaa   :  { %4165 = vmatmul.msk.f32.gmra.mxu2 %vm74_vm0, %v4725_v47 }
  0xab   :  { %4171 = vmatmul.msk.f32.gmra.mxu3 %vm74_vm0, %v4730_v48 }
  0xad   :  { %v232_v42 = vpop.f32.mrf.mxu2  ;;  %v122_v38 = vpop.f32.mrf.mxu0 }
  0xae   :  { %v298_v43 = vpop.f32.mrf.mxu3  ;;  %v244_v37 = vadd.f32 %v232_v42, %v173_v41  ;;  %v175_v46 = vpop.f32.mrf.mxu1  ;;  %v846_v41 = vld [vmem:[%s6395_s0 + $0x34] sm:$0xf] }
  0xaf   :  { %v176_v3 = vadd.f32 %v175_v46, %v122_v38  ;;  %v912_v42 = vld [vmem:[%s6395_s0 + $0x35] sm:$0xf] }
  0xb0   :  { %v4916_v50 = vadd.f32 %v298_v43, %v244_v37  ;;  %4154 = vmatmul.msk.f32.gmra.mxu0 %vm74_vm0, %v4746_v51  ;;  %v978_v37 = vld [vmem:[%s6395_s0 + $0x36] sm:$0xf] }
  0xb1   :  { %4160 = vmatmul.msk.f32.gmra.mxu1 %vm74_vm0, %v4751_v52  ;;  %v1044_v38 = vld [vmem:[%s6395_s0 + $0x37] sm:$0xf] }
  0xb2   :  { %4166 = vmatmul.msk.f32.gmra.mxu2 %vm74_vm0, %v4756_v53 }
  0xb3   :  { %4172 = vmatmul.msk.f32.gmra.mxu3 %vm74_vm0, %v4761_v54 }
  0xb5   :  { %v235_v47 = vpop.f32.mrf.mxu2  ;;  %v125_v61 = vpop.f32.mrf.mxu0 }
  0xb6   :  { %v301_v48 = vpop.f32.mrf.mxu3  ;;  %v245_v59 = vadd.f32 %v235_v47, %v176_v3  ;;  %v178_v62 = vpop.f32.mrf.mxu1 }
  0xb7   :  { %v179_v52 = vadd.f32 %v178_v62, %v125_v61 }
  0xb8   :  { %v4926_v63 = vadd.f32 %v301_v48, %v245_v59  ;;  %4155 = vmatmul.msk.f32.gmra.mxu0 %vm74_vm0, %v4774_v55 }
  0xb9   :  { %4161 = vmatmul.msk.f32.gmra.mxu1 %vm74_vm0, %v4779_v56  ;;  %v911_v56 = vld [vmem:[%s6395_s0 + $0x2d] sm:$0xff] }
  0xba   :  { %4167 = vmatmul.msk.f32.gmra.mxu2 %vm74_vm0, %v4784_v57 }
  0xbb   :  { %4173 = vmatmul.msk.f32.gmra.mxu3 %vm74_vm0, %v4789_v58  ;;  %v977_v58 = vld [vmem:[%s6395_s0 + $0x2e] sm:$0xff] }
  0xbd   :  { %v238_v53 = vpop.f32.mrf.mxu2  ;;  %v355_v5 = vpop.f32.mrf.mxu0 }
  0xbe   :  { %v304_v54 = vpop.f32.mrf.mxu3  ;;  %v246_v0 = vadd.f32 %v238_v53, %v179_v52  ;;  %v421_v6 = vpop.f32.mrf.mxu1  ;;  %v373_v57 = vadd.f32 %v355_v5, %v4887_v60 }
  0xc0   :  { %v4951_v32 = vadd.f32 %v304_v54, %v246_v0  ;;  %v439_v33 = vadd.f32 %v421_v6, %v373_v57  ;;  %4156 = vmatmul.msk.f32.gmra.mxu0 %vm74_vm0, %v4939_v8 }
  0xc1   :  { %4162 = vmatmul.msk.f32.gmra.mxu1 %vm74_vm0, %v911_v56 }
  0xc2   :  { %4168 = vmatmul.msk.f32.gmra.mxu2 %vm74_vm0, %v977_v58 }
  0xc3   :  { %4174 = vmatmul.msk.f32.gmra.mxu3 %vm74_vm0, %v1043_v31 }
  0xc5   :  { %v487_v60 = vpop.f32.mrf.mxu2  ;;  %v358_v40 = vpop.f32.mrf.mxu0 }
  0xc6   :  { %v553_v34 = vpop.f32.mrf.mxu3  ;;  %v505_v35 = vadd.f32 %v487_v60, %v439_v33  ;;  %v424_v1 = vpop.f32.mrf.mxu1  ;;  %v374_v43 = vadd.f32 %v358_v40, %v4893_v7  ;;  %v1109_v33 = vld [vmem:[%s6395_s0 + $0x30] sm:$0xff] }
  0xc8   :  { %v4971_v46 = vadd.f32 %v553_v34, %v505_v35  ;;  %v440_v2 = vadd.f32 %v424_v1, %v374_v43  ;;  %4157 = vmatmul.msk.f32.gmra.mxu0 %vm74_vm0, %v846_v41  ;;  %v1110_v43 = vld [vmem:[%s6395_s0 + $0x38] sm:$0xf] }
  0xc9   :  { %4163 = vmatmul.msk.f32.gmra.mxu1 %vm74_vm0, %v912_v42 }
  0xca   :  { %4169 = vmatmul.msk.f32.gmra.mxu2 %vm74_vm0, %v978_v37  ;;  %v1176_v37 = vld [vmem:[%s6395_s0 + $0x39] sm:$0xf] }
  0xcb   :  { %4175 = vmatmul.msk.f32.gmra.mxu3 %vm74_vm0, %v1044_v38 }
  0xcd   :  { %v490_v7 = vpop.f32.mrf.mxu2  ;;  %v361_v48 = vpop.f32.mrf.mxu0 }
  0xce   :  { %v556_v3 = vpop.f32.mrf.mxu3  ;;  %v506_v47 = vadd.f32 %v490_v7, %v440_v2  ;;  %v427_v59 = vpop.f32.mrf.mxu1  ;;  %v375_v61 = vadd.f32 %v361_v48, %v4904_v36  ;;  %v1308_v2 = vld [vmem:[%s6395_s0 + $0x3b] sm:$0xf] }
  0xd0   :  { %v4978_v62 = vadd.f32 %v556_v3, %v506_v47  ;;  %v441_v52 = vadd.f32 %v427_v59, %v375_v61  ;;  %4176 = vmatmul.msk.f32.vlgmr.msra.gmra.mxu0 %vm74_vm0, %v4564_v18 }
  0xd1   :  { %4182 = vmatmul.msk.f32.vlgmr.msra.gmra.mxu1 %vm74_vm0, %v4559_v17  ;;  %1685 = vmatpush.msra.mxu0 %v4496_v4 }
  0xd2   :  { %4188 = vmatmul.msk.f32.vlgmr.msra.gmra.mxu2 %vm74_vm0, %v4569_v19  ;;  %1751 = vmatpush.msra.mxu1 %v4512_v9 }
  0xd3   :  { %4194 = vmatmul.msk.f32.vlgmr.msra.gmra.mxu3 %vm74_vm0, %v4574_v20  ;;  %1817 = vmatpush.msra.mxu2 %v4516_v10 }
  0xd4   :  { %1883 = vmatpush.msra.mxu3 %v4537_v14 }
  0xd5   :  { %v493_v36 = vpop.f32.mrf.mxu2  ;;  %v364_v54 = vpop.f32.mrf.mxu0 }
  0xd6   :  { %v559_v53 = vpop.f32.mrf.mxu3  ;;  %v507_v18 = vadd.f32 %v493_v36, %v441_v52  ;;  %v430_v0 = vpop.f32.mrf.mxu1  ;;  %v376_v17 = vadd.f32 %v364_v54, %v4916_v50  ;;  %v1466_v52 = vld [vmem:[%s6395_s0 + $0x41] sm:$0xff] }
  0xd8   :  { %v4993_v5 = vadd.f32 %v559_v53, %v507_v18  ;;  %v442_v19 = vadd.f32 %v430_v0, %v376_v17  ;;  %4177 = vmatmul.msk.f32.gmra.mxu0 %vm74_vm0, %v4598_v24  ;;  %v1459_v53 = vld [vmem:[%s6395_s0 + $0x40] sm:$0xff] }
  0xd9   :  { %4183 = vmatmul.msk.f32.gmra.mxu1 %vm74_vm0, %v4593_v23  ;;  %v1579_v18 = vld [vmem:[%s6395_s0 + $0x42] sm:$0xff] }
  0xda   :  { %4189 = vmatmul.msk.f32.gmra.mxu2 %vm74_vm0, %v4603_v25 }
  0xdb   :  { %4195 = vmatmul.msk.f32.gmra.mxu3 %vm74_vm0, %v4608_v26 }
  0xdd   :  { %v496_v4 = vpop.f32.mrf.mxu2  ;;  %v367_v14 = vpop.f32.mrf.mxu0 }
  0xde   :  { %v562_v9 = vpop.f32.mrf.mxu3  ;;  %v508_v10 = vadd.f32 %v496_v4, %v442_v19  ;;  %v433_v20 = vpop.f32.mrf.mxu1  ;;  %v377_v50 = vadd.f32 %v367_v14, %v4926_v63 }
  0xe0   :  { %v5004_v6 = vadd.f32 %v562_v9, %v508_v10  ;;  %v443_v56 = vadd.f32 %v433_v20, %v377_v50  ;;  %4178 = vmatmul.msk.f32.gmra.mxu0 %vm74_vm0, %v4626_v28 }
  0xe1   :  { %4184 = vmatmul.msk.f32.gmra.mxu1 %vm74_vm0, %v4621_v27 }
  0xe2   :  { %4190 = vmatmul.msk.f32.gmra.mxu2 %vm74_vm0, %v4631_v29 }
  0xe3   :  { %4196 = vmatmul.msk.f32.gmra.mxu3 %vm74_vm0, %v4636_v30 }
  0xe5   :  { %v499_v23 = vpop.f32.mrf.mxu2  ;;  %v370_v26 = vpop.f32.mrf.mxu0 }
  0xe6   :  { %v565_v24 = vpop.f32.mrf.mxu3  ;;  %v509_v25 = vadd.f32 %v499_v23, %v443_v56  ;;  %v436_v63 = vpop.f32.mrf.mxu1  ;;  %v378_v57 = vadd.f32 %v370_v26, %v4951_v32  ;;  %v5113_v23 = vld [vmem:[%s6395_s0 + $0x51] sm:$0xff] }
  0xe7   :  { %6466 = vst [vmem:[#allocation11_spill] sm:$0xff] %v5113_v23 }
  0xe8   :  { %v5015_v58 = vadd.f32 %v565_v24, %v509_v25  ;;  %v444_v31 = vadd.f32 %v436_v63, %v378_v57  ;;  %4179 = vmatmul.msk.f32.gmra.mxu0 %vm74_vm0, %v4850_v11  ;;  %v1175_v11 = vld [vmem:[%s6395_s0 + $0x31] sm:$0xff] }
  0xe9   :  { %4185 = vmatmul.msk.f32.gmra.mxu1 %vm74_vm0, %v4855_v12  ;;  %v5119_v24 = vld [vmem:[%s6395_s0 + $0x50] sm:$0xff] }
  0xea   :  { %4191 = vmatmul.msk.f32.gmra.mxu2 %vm74_vm0, %v4860_v13  ;;  %v1241_v13 = vld [vmem:[%s6395_s0 + $0x32] sm:$0xff]  ;;  %6467 = vst [vmem:[#allocation12_spill] sm:$0xff] %v5119_v24 }
  0xeb   :  { %4197 = vmatmul.msk.f32.gmra.mxu3 %vm74_vm0, %v4865_v15  ;;  %v1307_v15 = vld [vmem:[%s6395_s0 + $0x33] sm:$0xff] }
  0xec   :  { %v5124_v25 = vld [vmem:[%s6395_s0 + $0x52] sm:$0xff] }
  0xed   :  { %v502_v27 = vpop.f32.mrf.mxu2  ;;  %v619_v30 = vpop.f32.mrf.mxu0  ;;  %6468 = vst [vmem:[#allocation13_spill] sm:$0xff] %v5124_v25 }
  0xee   :  { %v568_v28 = vpop.f32.mrf.mxu3  ;;  %v510_v29 = vadd.f32 %v502_v27, %v444_v31  ;;  %v685_v32 = vpop.f32.mrf.mxu1  ;;  %v637_v12 = vadd.f32 %v619_v30, %v4971_v46  ;;  %v1242_v46 = vld [vmem:[%s6395_s0 + $0x3a] sm:$0xf] }
  0xef   :  { %v5145_v30 = vld [vmem:[%s6395_s0 + $0x58] sm:$0xff] }
  0xf0   :  { %v5038_v60 = vadd.f32 %v568_v28, %v510_v29  ;;  %v703_v34 = vadd.f32 %v685_v32, %v637_v12  ;;  %4180 = vmatmul.msk.f32.gmra.mxu0 %vm74_vm0, %v1109_v33  ;;  %v5139_v29 = vld [vmem:[%s6395_s0 + $0x59] sm:$0xff] }
  0xf1   :  { %4186 = vmatmul.msk.f32.gmra.mxu1 %vm74_vm0, %v1175_v11  ;;  %6469 = vst [vmem:[#allocation14_spill] sm:$0xff] %v5139_v29  ;;  %v5150_v32 = vld [vmem:[%s6395_s0 + $0x5a] sm:$0xff] }
  0xf2   :  { %4192 = vmatmul.msk.f32.gmra.mxu2 %vm74_vm0, %v1241_v13  ;;  %6470 = vst [vmem:[#allocation15_spill] sm:$0xff] %v5150_v32 }
  0xf3   :  { %4198 = vmatmul.msk.f32.gmra.mxu3 %vm74_vm0, %v1307_v15 }
  0xf5   :  { %v751_v35 = vpop.f32.mrf.mxu2  ;;  %v622_v41 = vpop.f32.mrf.mxu0 }
  0xf6   :  { %v817_v40 = vpop.f32.mrf.mxu3  ;;  %v769_v1 = vadd.f32 %v751_v35, %v703_v34  ;;  %v688_v42 = vpop.f32.mrf.mxu1  ;;  %v638_v38 = vadd.f32 %v622_v41, %v4978_v62  ;;  %v1373_v35 = vld [vmem:[%s6395_s0 + $0x34] sm:$0xff]  ;;  %v5179_v41 = vld [vmem:[%s6395_s0 + $0x62] sm:$0xff] }
  0xf7   :  { %6471 = vst [vmem:[#allocation16_spill] sm:$0xff] %v5179_v41 }
  0xf8   :  { %v5057_v7 = vadd.f32 %v817_v40, %v769_v1  ;;  %v704_v3 = vadd.f32 %v688_v42, %v638_v38  ;;  %4181 = vmatmul.msk.f32.gmra.mxu0 %vm74_vm0, %v1110_v43  ;;  %v5174_v1 = vld [vmem:[%s6395_s0 + $0x60] sm:$0xff] }
  0xf9   :  { %4187 = vmatmul.msk.f32.gmra.mxu1 %vm74_vm0, %v1176_v37 }
  0xfa   :  { %4193 = vmatmul.msk.f32.gmra.mxu2 %vm74_vm0, %v1242_v46 }
  0xfb   :  { %4199 = vmatmul.msk.f32.gmra.mxu3 %vm74_vm0, %v1308_v2 }
  0xfd   :  { %v754_v47 = vpop.f32.mrf.mxu2  ;;  %v625_v61 = vpop.f32.mrf.mxu0 }
  0xfe   :  { %v820_v48 = vpop.f32.mrf.mxu3  ;;  %v770_v59 = vadd.f32 %v754_v47, %v704_v3  ;;  %v691_v62 = vpop.f32.mrf.mxu1  ;;  %v639_v36 = vadd.f32 %v625_v61, %v4993_v5  ;;  %v1471_v3 = vld [vmem:[%s6395_s0 + $0x69] sm:$0xf] }
 0x100   :  { %v5073_v54 = vadd.f32 %v820_v48, %v770_v59  ;;  %v705_v0 = vadd.f32 %v691_v62, %v639_v36  ;;  %4200 = vmatmul.msk.f32.vlgmr.msrb.gmra.mxu0 %vm74_vm0, %v4715_v45  ;;  %v5087_v45 = vld [vmem:[%s6395_s0 + $0x49] sm:$0xff] }
 0x101   :  { %4206 = vmatmul.msk.f32.vlgmr.msrb.gmra.mxu1 %vm74_vm0, %v1466_v52  ;;  %1949 = vmatpush.msrb.mxu0 %v4553_v16  ;;  %v5093_v16 = vld [vmem:[%s6395_s0 + $0x48] sm:$0xff] }
 0x102   :  { %4212 = vmatmul.msk.f32.vlgmr.msrb.gmra.mxu2 %vm74_vm0, %v1459_v53  ;;  %2015 = vmatpush.msrb.mxu1 %v4584_v21  ;;  %v5098_v21 = vld [vmem:[%s6395_s0 + $0x4a] sm:$0xff] }
 0x103   :  { %4218 = vmatmul.msk.f32.vlgmr.msrb.gmra.mxu3 %vm74_vm0, %v1579_v18  ;;  %2081 = vmatpush.msrb.mxu2 %v4586_v22  ;;  %v1464_v48 = vld [vmem:[%s6395_s0 + $0x68] sm:$0xf] }
 0x104   :  { %2147 = vmatpush.msrb.mxu3 %v4678_v39  ;;  %v1584_v59 = vld [vmem:[%s6395_s0 + $0x6a] sm:$0xf] }
 0x105   :  { %v757_v17 = vpop.f32.mrf.mxu2  ;;  %v628_v4 = vpop.f32.mrf.mxu0  ;;  %v1645_v18 = vld [vmem:[%s6395_s0 + $0x43] sm:$0xff] }
 0x106   :  { %v823_v5 = vpop.f32.mrf.mxu3  ;;  %v771_v19 = vadd.f32 %v757_v17, %v705_v0  ;;  %v694_v9 = vpop.f32.mrf.mxu1  ;;  %v640_v10 = vadd.f32 %v628_v4, %v5004_v6  ;;  %v1777_v17 = vld [vmem:[%s6395_s0 + $0x45] sm:$0xff] }
 0x108   :  { %v5100_v22 = vadd.f32 %v823_v5, %v771_v19  ;;  %v706_v39 = vadd.f32 %v694_v9, %v640_v10  ;;  %4201 = vmatmul.msk.f32.gmra.mxu0 %vm74_vm0, %v4746_v51  ;;  %v1843_v5 = vld [vmem:[%s6395_s0 + $0x46] sm:$0xff] }
 0x109   :  { %4207 = vmatmul.msk.f32.gmra.mxu1 %vm74_vm0, %v5087_v45 }
 0x10a   :  { %4213 = vmatmul.msk.f32.gmra.mxu2 %vm74_vm0, %v5093_v16 }
 0x10b   :  { %4219 = vmatmul.msk.f32.gmra.mxu3 %vm74_vm0, %v5098_v21 }
 0x10d   :  { %v760_v14 = vpop.f32.mrf.mxu2  ;;  %v631_v6 = vpop.f32.mrf.mxu0 }
 0x10e   :  { %v826_v20 = vpop.f32.mrf.mxu3  ;;  %v772_v50 = vadd.f32 %v760_v14, %v706_v39  ;;  %v697_v56 = vpop.f32.mrf.mxu1  ;;  %v641_v51 = vadd.f32 %v631_v6, %v5015_v58  ;;  %v5247_v39 = vld [vmem:[%s6395_s0 + $0x4b] sm:$0xff] }
 0x10f   :  { %v5252_v14 = vld [vmem:[%s6395_s0 + $0x4c] sm:$0xff] }
 0x110   :  { %v5126_v26 = vadd.f32 %v826_v20, %v772_v50  ;;  %v707_v63 = vadd.f32 %v697_v56, %v641_v51  ;;  %4202 = vmatmul.msk.f32.gmra.mxu0 %vm74_vm0, %v4774_v55  ;;  %v5263_v20 = vld [vmem:[%s6395_s0 + $0x4e] sm:$0xff] }
 0x111   :  { %4208 = vmatmul.msk.f32.gmra.mxu1 %vm74_vm0, %v5113_v23 }
 0x112   :  { %4214 = vmatmul.msk.f32.gmra.mxu2 %vm74_vm0, %v5119_v24 }
 0x113   :  { %4220 = vmatmul.msk.f32.gmra.mxu3 %vm74_vm0, %v5124_v25 }
 0x115   :  { %v763_v57 = vpop.f32.mrf.mxu2  ;;  %v634_v27 = vpop.f32.mrf.mxu0 }
 0x116   :  { %v829_v58 = vpop.f32.mrf.mxu3  ;;  %v773_v31 = vadd.f32 %v763_v57, %v707_v63  ;;  %v700_v28 = vpop.f32.mrf.mxu1  ;;  %v642_v55 = vadd.f32 %v634_v27, %v5038_v60  ;;  %v5282_v63 = vld [vmem:[%s6395_s0 + $0x53] sm:$0xff] }
 0x117   :  { %v5287_v57 = vld [vmem:[%s6395_s0 + $0x54] sm:$0xff] }
 0x118   :  { %v5152_v33 = vadd.f32 %v829_v58, %v773_v31  ;;  %v708_v11 = vadd.f32 %v700_v28, %v642_v55  ;;  %4203 = vmatmul.msk.f32.gmra.mxu0 %vm74_vm0, %v4939_v8  ;;  %v5168_v8 = vld [vmem:[%s6395_s0 + $0x61] sm:$0xff]  ;;  %v5293_v31 = vld [vmem:[%s6395_s0 + $0x55] sm:$0xff] }
 0x119   :  { %4209 = vmatmul.msk.f32.gmra.mxu1 %vm74_vm0, %v5139_v29  ;;  %v5298_v27 = vld [vmem:[%s6395_s0 + $0x56] sm:$0xff] }
 0x11a   :  { %4215 = vmatmul.msk.f32.gmra.mxu2 %vm74_vm0, %v5145_v30 }
 0x11b   :  { %4221 = vmatmul.msk.f32.gmra.mxu3 %vm74_vm0, %v5150_v32 }
 0x11d   :  { %v766_v12 = vpop.f32.mrf.mxu2  ;;  %v883_v60 = vpop.f32.mrf.mxu0 }
 0x11e   :  { %v832_v13 = vpop.f32.mrf.mxu3  ;;  %v774_v15 = vadd.f32 %v766_v12, %v708_v11  ;;  %v949_v34 = vpop.f32.mrf.mxu1  ;;  %v901_v40 = vadd.f32 %v883_v60, %v5057_v7  ;;  %v1374_v7 = vld [vmem:[%s6395_s0 + $0x3c] sm:$0xf] }
 0x120   :  { %v5181_v42 = vadd.f32 %v832_v13, %v774_v15  ;;  %v5183_v43 = vadd.f32 %v949_v34, %v901_v40  ;;  %4204 = vmatmul.msk.f32.gmra.mxu0 %vm74_vm0, %v1373_v35  ;;  %v5317_v13 = vld [vmem:[%s6395_s0 + $0x5b] sm:$0xff] }
 0x121   :  { %4210 = vmatmul.msk.f32.gmra.mxu1 %vm74_vm0, %v5168_v8  ;;  %v5322_v15 = vld [vmem:[%s6395_s0 + $0x5c] sm:$0xff] }
 0x122   :  { %4216 = vmatmul.msk.f32.gmra.mxu2 %vm74_vm0, %v5174_v1  ;;  %v5328_v34 = vld [vmem:[%s6395_s0 + $0x5d] sm:$0xff] }
 0x123   :  { %4222 = vmatmul.msk.f32.gmra.mxu3 %vm74_vm0, %v5179_v41  ;;  %v5333_v35 = vld [vmem:[%s6395_s0 + $0x5e] sm:$0xff] }
 0x125   :  { %v5192_v37 = vpop.f32.mrf.mxu2  ;;  %v886_v46 = vpop.f32.mrf.mxu0 }
 0x126   :  { %v5194_v38 = vpop.f32.mrf.mxu3  ;;  %v952_v2 = vpop.f32.mrf.mxu1  ;;  %v902_v47 = vadd.f32 %v886_v46, %v5073_v54  ;;  %v1711_v54 = vld [vmem:[%s6395_s0 + $0x44] sm:$0xff] }
 0x128   :  { %v5209_v61 = vadd.f32 %v952_v2, %v902_v47  ;;  %4205 = vmatmul.msk.f32.gmra.mxu0 %vm74_vm0, %v1374_v7  ;;  %v5357_v47 = vld [vmem:[%s6395_s0 + $0x64] sm:$0xff] }
 0x129   :  { %4211 = vmatmul.msk.f32.gmra.mxu1 %vm74_vm0, %v1471_v3  ;;  %v5352_v3 = vld [vmem:[%s6395_s0 + $0x63] sm:$0xff] }
 0x12a   :  { %4217 = vmatmul.msk.f32.gmra.mxu2 %vm74_vm0, %v1464_v48  ;;  %v5362_v48 = vld [vmem:[%s6395_s0 + $0x65] sm:$0xff] }
 0x12b   :  { %4223 = vmatmul.msk.f32.gmra.mxu3 %vm74_vm0, %v1584_v59  ;;  %v5367_v59 = vld [vmem:[%s6395_s0 + $0x66] sm:$0xff] }
 0x12d   :  { %v5215_v62 = vpop.f32.mrf.mxu2  ;;  %v889_v36 = vpop.f32.mrf.mxu0 }
 0x12e   :  { %v5217_v52 = vpop.f32.mrf.mxu3  ;;  %v955_v53 = vpop.f32.mrf.mxu1  ;;  %v903_v0 = vadd.f32 %v889_v36, %v5100_v22 }
 0x130   :  { %v5232_v19 = vadd.f32 %v955_v53, %v903_v0  ;;  %4224 = vmatmul.msk.f32.vlgmr.msra.gmra.mxu0 %vm74_vm0, %v1645_v18  ;;  %v1650_v0 = vld [vmem:[%s6395_s0 + $0x6b] sm:$0xf] }
 0x131   :  { %4230 = vmatmul.msk.f32.vlgmr.msra.gmra.mxu1 %vm74_vm0, %v1711_v54  ;;  %2213 = vmatpush.msra.mxu0 %v4709_v44 }
 0x132   :  { %4236 = vmatmul.msk.f32.vlgmr.msra.gmra.mxu2 %vm74_vm0, %v1777_v17  ;;  %2279 = vmatpush.msra.mxu1 %v4740_v49  ;;  %v5258_v49 = vld [vmem:[%s6395_s0 + $0x4d] sm:$0xff] }
 0x133   :  { %4242 = vmatmul.msk.f32.vlgmr.msra.gmra.mxu3 %vm74_vm0, %v1843_v5  ;;  %v1716_v17 = vld [vmem:[%s6395_s0 + $0x6c] sm:$0xf] }
 0x134   :  { %v1782_v5 = vld [vmem:[%s6395_s0 + $0x6d] sm:$0xf] }
 0x135   :  { %v5240_v4 = vpop.f32.mrf.mxu2  ;;  %v892_v10 = vpop.f32.mrf.mxu0 }
 0x136   :  { %v5242_v9 = vpop.f32.mrf.mxu3  ;;  %v958_v22 = vpop.f32.mrf.mxu1  ;;  %v904_v44 = vadd.f32 %v892_v10, %v5126_v26  ;;  %v1848_v10 = vld [vmem:[%s6395_s0 + $0x6e] sm:$0xf] }
 0x138   :  { %v5265_v50 = vadd.f32 %v958_v22, %v904_v44  ;;  %4225 = vmatmul.msk.f32.gmra.mxu0 %vm74_vm0, %v5247_v39 }
 0x139   :  { %4231 = vmatmul.msk.f32.gmra.mxu1 %vm74_vm0, %v5252_v14 }
 0x13a   :  { %4237 = vmatmul.msk.f32.gmra.mxu2 %vm74_vm0, %v5258_v49 }
 0x13b   :  { %4243 = vmatmul.msk.f32.gmra.mxu3 %vm74_vm0, %v5263_v20 }
 0x13d   :  { %v5275_v6 = vpop.f32.mrf.mxu2  ;;  %v895_v51 = vpop.f32.mrf.mxu0 }
 0x13e   :  { %v5277_v56 = vpop.f32.mrf.mxu3  ;;  %v961_v26 = vpop.f32.mrf.mxu1  ;;  %v905_v58 = vadd.f32 %v895_v51, %v5152_v33 }
 0x140   :  { %v5300_v28 = vadd.f32 %v961_v26, %v905_v58  ;;  %4226 = vmatmul.msk.f32.gmra.mxu0 %vm74_vm0, %v5282_v63  ;;  %v1909_v58 = vld [vmem:[%s6395_s0 + $0x47] sm:$0xff] }
 0x141   :  { %4232 = vmatmul.msk.f32.gmra.mxu1 %vm74_vm0, %v5287_v57 }
 0x142   :  { %4238 = vmatmul.msk.f32.gmra.mxu2 %vm74_vm0, %v5293_v31 }
 0x143   :  { %4244 = vmatmul.msk.f32.gmra.mxu3 %vm74_vm0, %v5298_v27 }
 0x145   :  { %v5310_v55 = vpop.f32.mrf.mxu2  ;;  %v898_v11 = vpop.f32.mrf.mxu0 }
 0x146   :  { %v5312_v33 = vpop.f32.mrf.mxu3  ;;  %v964_v12 = vpop.f32.mrf.mxu1  ;;  %v906_v60 = vadd.f32 %v898_v11, %v5181_v42 }
 0x148   :  { %v5335_v40 = vadd.f32 %v964_v12, %v906_v60  ;;  %4227 = vmatmul.msk.f32.gmra.mxu0 %vm74_vm0, %v5317_v13 }
 0x149   :  { %4233 = vmatmul.msk.f32.gmra.mxu1 %vm74_vm0, %v5322_v15 }
 0x14a   :  { %4239 = vmatmul.msk.f32.gmra.mxu2 %vm74_vm0, %v5328_v34 }
 0x14b   :  { %4245 = vmatmul.msk.f32.gmra.mxu3 %vm74_vm0, %v5333_v35 }
 0x14d   :  { %v5345_v42 = vpop.f32.mrf.mxu2  ;;  %v1147_v2 = vpop.f32.mrf.mxu0 }
 0x14e   :  { %v5347_v46 = vpop.f32.mrf.mxu3  ;;  %v1213_v7 = vpop.f32.mrf.mxu1 }
 0x150   :  { %4228 = vmatmul.msk.f32.gmra.mxu0 %vm74_vm0, %v5352_v3 }
 0x151   :  { %4234 = vmatmul.msk.f32.gmra.mxu1 %vm74_vm0, %v5357_v47 }
 0x152   :  { %4240 = vmatmul.msk.f32.gmra.mxu2 %vm74_vm0, %v5362_v48 }
 0x153   :  { %4246 = vmatmul.msk.f32.gmra.mxu3 %vm74_vm0, %v5367_v59 }
 0x155   :  { %v1279_v36 = vpop.f32.mrf.mxu2  ;;  %v1150_v18 = vpop.f32.mrf.mxu0 }
 0x156   :  { %v5377_v53 = vpop.f32.mrf.mxu3  ;;  %v5379_v54 = vpop.f32.mrf.mxu1 }
 0x158   :  { %4229 = vmatmul.msk.f32.gmra.mxu0 %vm74_vm0, %v1650_v0 }
 0x159   :  { %4235 = vmatmul.msk.f32.gmra.mxu1 %vm74_vm0, %v1716_v17  ;;  %v5426_v17 = vld [vmem:[%s6395_s0 + $0x4f] sm:$0xff] }
 0x15a   :  { %4241 = vmatmul.msk.f32.gmra.mxu2 %vm74_vm0, %v1782_v5  ;;  %6472 = vst [vmem:[#allocation17_spill] sm:$0xff] %v5426_v17 }
 0x15b   :  { %4247 = vmatmul.msk.f32.gmra.mxu3 %vm74_vm0, %v1848_v10 }
 0x15d   :  { %v5397_v22 = vpop.f32.mrf.mxu2  ;;  %v5401_v51 = vpop.f32.mrf.mxu0 }
 0x15e   :  { %v5399_v44 = vpop.f32.mrf.mxu3  ;;  %v5403_v26 = vpop.f32.mrf.mxu1 }
 0x160   :  { %4248 = vmatmul.msk.f32.vlgmr.msrb.gmra.mxu0 %vm74_vm0, %v1909_v58  ;;  %v5449_v58 = vld [vmem:[%s6395_s0 + $0x57] sm:$0xff] }
 0x161   :  { %4254 = vmatmul.msk.f32.vlgmr.msrb.gmra.mxu1 %vm74_vm0, %v5093_v16  ;;  %6473 = vst [vmem:[#allocation18_spill] sm:$0xff] %v5449_v58 }
 0x162   :  { %4260 = vmatmul.msk.f32.vlgmr.msrb.gmra.mxu2 %vm74_vm0, %v5087_v45  ;;  %v1033_v45 = vadd.f32 %v5192_v37, %v5183_v43  ;;  %v1034_v37 = vadd.f32 %v5215_v62, %v5209_v61 }
 0x163   :  { %4266 = vmatmul.msk.f32.vlgmr.msrb.gmra.mxu3 %vm74_vm0, %v5098_v21 }
 0x165   :  { %v5415_v11 = vpop.f32.mrf.mxu2  ;;  %v5419_v60 = vpop.f32.mrf.mxu0 }
 0x166   :  { %v5417_v12 = vpop.f32.mrf.mxu3  ;;  %v5421_v0 = vpop.f32.mrf.mxu1 }
 0x168   :  { %4249 = vmatmul.msk.f32.gmra.mxu0 %vm74_vm0, %v5426_v17 }
 0x169   :  { %4255 = vmatmul.msk.f32.gmra.mxu1 %vm74_vm0, %v5119_v24  ;;  %v2377_v24 = vld [vmem:[#allocation5 + $0x70] sm:$0xff] }
 0x16a   :  { %4261 = vmatmul.msk.f32.gmra.mxu2 %vm74_vm0, %v5113_v23  ;;  %v2311_v23 = vld [vmem:[#allocation5 + $0x68] sm:$0xff]  ;;  %2411 = vmatpush.msra.mxu3 %v2377_v24  ;;  %v1100_v24 = vadd.f32 %v5217_v52, %v1034_v37 }
 0x16b   :  { %4267 = vmatmul.msk.f32.gmra.mxu3 %vm74_vm0, %v5124_v25  ;;  %v1099_v25 = vadd.f32 %v5194_v38, %v1033_v45  ;;  %2345 = vmatpush.msra.mxu2 %v2311_v23  ;;  %v2509_v23 = vld [vmem:[#allocation5 + $0x80] sm:$0xff] }
 0x16c   :  { %2543 = vmatpush.msrb.mxu1 %v2509_v23  ;;  %v1166_v62 = vadd.f32 %v1150_v18, %v1100_v24  ;;  %v5499_v18 = vld [vmem:[%s6395_s0 + $0x67] sm:$0xff] }
 0x16d   :  { %v5438_v16 = vpop.f32.mrf.mxu2  ;;  %v5442_v5 = vpop.f32.mrf.mxu0  ;;  %v1165_v43 = vadd.f32 %v1147_v2, %v1099_v25  ;;  %v2443_v25 = vld [vmem:[#allocation5 + $0x78] sm:$0xff]  ;;  %v1035_v2 = vadd.f32 %v5240_v4, %v5232_v19  ;;  %v5515_v23 = vld [vmem:[%s6395_s0 + $0x6a] sm:$0xff] }
 0x16e   :  { %v5440_v21 = vpop.f32.mrf.mxu3  ;;  %v5444_v10 = vpop.f32.mrf.mxu1  ;;  %2477 = vmatpush.msrb.mxu0 %v2443_v25  ;;  %v5504_v19 = vld [vmem:[%s6395_s0 + $0x68] sm:$0xff]  ;;  %v1232_v4 = vadd.f32 %v5379_v54, %v1166_v62 }
 0x16f   :  { %v5510_v25 = vld [vmem:[%s6395_s0 + $0x69] sm:$0xff]  ;;  %v1101_v24 = vadd.f32 %v5242_v9, %v1035_v2 }
 0x170   :  { %4250 = vmatmul.msk.f32.gmra.mxu0 %vm74_vm0, %v5449_v58  ;;  %6474 = vst [vmem:[#allocation19_spill] sm:$0xff] %v5510_v25 }
 0x171   :  { %4256 = vmatmul.msk.f32.gmra.mxu1 %vm74_vm0, %v5145_v30  ;;  %v1167_v54 = vadd.f32 %v5401_v51, %v1101_v24 }
 0x172   :  { %4262 = vmatmul.msk.f32.gmra.mxu2 %vm74_vm0, %v5139_v29  ;;  %v5473_v29 = vld [vmem:[%s6395_s0 + $0x5f] sm:$0xff] }
 0x173   :  { %4268 = vmatmul.msk.f32.gmra.mxu3 %vm74_vm0, %v5150_v32  ;;  %v1231_v32 = vadd.f32 %v1213_v7, %v1165_v43  ;;  %v1233_v51 = vadd.f32 %v5403_v26, %v1167_v54 }
 0x175   :  { %v5462_v17 = vpop.f32.mrf.mxu2  ;;  %v5466_v45 = vpop.f32.mrf.mxu0  ;;  %v1297_v61 = vadd.f32 %v1279_v36, %v1231_v32  ;;  %v5494_v36 = vld [vmem:[%s6397_s2] ss:$0 sm:$0xff] }
 0x176   :  { %v5464_v38 = vpop.f32.mrf.mxu3  ;;  %v5468_v58 = vpop.f32.mrf.mxu1 }
 0x177   :  { %v1363_v7 = vadd.f32 %v5377_v53, %v1297_v61  ;;  %v1298_v61 = vadd.f32 %v5397_v22, %v1232_v4  ;;  %v1036_v22 = vadd.f32 %v5275_v6, %v5265_v50  ;;  %v2046_v6 = vld [vmem:[%s6395_s0 + $0x71] sm:$0xf] }
 0x178   :  { %4251 = vmatmul.msk.f32.gmra.mxu0 %vm74_vm0, %v5473_v29 }
 0x179   :  { %4257 = vmatmul.msk.f32.gmra.mxu1 %vm74_vm0, %v5174_v1  ;;  %v1364_v62 = vadd.f32 %v5399_v44, %v1298_v61  ;;  %v2112_v44 = vld [vmem:[%s6395_s0 + $0x72] sm:$0xf]  ;;  %v1102_v24 = vadd.f32 %v5277_v56, %v1036_v22  ;;  %v1299_v61 = vadd.f32 %v5415_v11, %v1233_v51 }
 0x17a   :  { %4263 = vmatmul.msk.f32.gmra.mxu2 %vm74_vm0, %v5168_v8 }
 0x17b   :  { %4269 = vmatmul.msk.f32.gmra.mxu3 %vm74_vm0, %v5179_v41  ;;  %v1168_v26 = vadd.f32 %v5419_v60, %v1102_v24  ;;  %v1365_v56 = vadd.f32 %v5417_v12, %v1299_v61 }
 0x17d   :  { %v5487_v52 = vpop.f32.mrf.mxu2  ;;  %v1411_v43 = vpop.f32.mrf.mxu0 }
 0x17e   :  { %v5489_v32 = vpop.f32.mrf.mxu3  ;;  %v1508_v37 = vpop.f32.mrf.mxu1  ;;  %v1429_v53 = vadd.f32 %v1411_v43, %v1363_v7 }
 0x180   :  { %v1439_v41 = vadd.f32 %v5494_v36, %v1429_v53  ;;  %4252 = vmatmul.msk.f32.gmra.mxu0 %vm74_vm0, %v5499_v18 }
 0x181   :  { %4258 = vmatmul.msk.f32.gmra.mxu1 %vm74_vm0, %v5504_v19 }
 0x182   :  { %4264 = vmatmul.msk.f32.gmra.mxu2 %vm74_vm0, %v5510_v25  ;;  %v1445_v9 = vmax.f32 %v1439_v41, 0.0  ;;  %v1914_v25 = vld [vmem:[%s6395_s0 + $0x6f] sm:$0xf] }
 0x183   :  { %4270 = vmatmul.msk.f32.gmra.mxu3 %vm74_vm0, %v5515_v23  ;;  %v1980_v41 = vld [vmem:[%s6395_s0 + $0x70] sm:$0xf] }
 0x184   :  { %1452 = vst.msk [vmem:[#allocation2] sm:$0xff] %vm1451_vm1, %v1445_v9 }
 0x185   :  { %v1561_v2 = vpop.f32.mrf.mxu2  ;;  %v1414_v4 = vpop.f32.mrf.mxu0 }
 0x186   :  { %v1621_v7 = vpop.f32.mrf.mxu3  ;;  %v1562_v43 = vadd.f32 %v1561_v2, %v1508_v37  ;;  %v1511_v53 = vpop.f32.mrf.mxu1  ;;  %v1430_v50 = vadd.f32 %v1414_v4, %v1364_v62  ;;  %v1037_v62 = vadd.f32 %v5310_v55, %v5300_v28 }
 0x188   :  { %v5546_v37 = vadd.f32 %v1621_v7, %v1562_v43  ;;  %v1440_v9 = vadd.f32 %v5494_v36, %v1430_v50  ;;  %4253 = vmatmul.msk.f32.gmra.mxu0 %vm74_vm0, %v1914_v25  ;;  %v1234_v43 = vadd.f32 %v5421_v0, %v1168_v26  ;;  %v1103_v60 = vadd.f32 %v5312_v33, %v1037_v62 }
 0x189   :  { %4259 = vmatmul.msk.f32.gmra.mxu1 %vm74_vm0, %v1980_v41 }
 0x18a   :  { %4265 = vmatmul.msk.f32.gmra.mxu2 %vm74_vm0, %v2046_v6  ;;  %v1446_v54 = vmax.f32 %v1440_v9, 0.0  ;;  %v1300_v51 = vadd.f32 %v5438_v16, %v1234_v43  ;;  %v1169_v55 = vadd.f32 %v5442_v5, %v1103_v60  ;;  %v1038_v16 = vadd.f32 %v5345_v42, %v5335_v40 }
 0x18b   :  { %4271 = vmatmul.msk.f32.gmra.mxu3 %vm74_vm0, %v2112_v44 }
 0x18c   :  { %1453 = vst.msk [vmem:[#allocation2 + $0x8] sm:$0xff] %vm1451_vm1, %v1446_v54  ;;  %v1104_v61 = vadd.f32 %v5347_v46, %v1038_v16 }
 0x18d   :  { %v1564_v11 = vpop.f32.mrf.mxu2  ;;  %v1417_v25 = vpop.f32.mrf.mxu0 }
 0x18e   :  { %v1624_v22 = vpop.f32.mrf.mxu3  ;;  %v1565_v2 = vadd.f32 %v1564_v11, %v1511_v53  ;;  %v1514_v7 = vpop.f32.mrf.mxu1  ;;  %v1431_v4 = vadd.f32 %v1417_v25, %v1365_v56  ;;  %v1366_v53 = vadd.f32 %v5440_v21, %v1300_v51  ;;  %v2575_v21 = vld [vmem:[#allocation5 + $0x88] sm:$0xff]  ;;  %v1170_v46 = vadd.f32 %v5466_v45, %v1104_v61 }
 0x18f   :  { %2609 = vmatpush.msrb.mxu2 %v2575_v21  ;;  %v2244_v21 = vld [vmem:[%s6395_s0 + $0x74] sm:$0xf] }
 0x190   :  { %v5561_v41 = vadd.f32 %v1624_v22, %v1565_v2  ;;  %v1441_v28 = vadd.f32 %v5494_v36, %v1431_v4  ;;  %4272 = vmatmul.msk.f32.vlgmr.msra.gmra.mxu0 %vm74_vm0, %v5247_v39 }
 0x191   :  { %4278 = vmatmul.msk.f32.vlgmr.msra.gmra.mxu1 %vm74_vm0, %v5252_v14 }
 0x192   :  { %4284 = vmatmul.msk.f32.vlgmr.msra.gmra.mxu2 %vm74_vm0, %v5258_v49  ;;  %v1447_v12 = vmax.f32 %v1441_v28, 0.0 }
 0x193   :  { %4290 = vmatmul.msk.f32.vlgmr.msra.gmra.mxu3 %vm74_vm0, %v5263_v20  ;;  %v2855_v33 = vld [vmem:[#allocation2] ss:$2 sm:$0xff]  ;;  %v2867_v0 = vld [vmem:[#allocation2 + $0x1] ss:$2 sm:$0xff]  ;;  %v1235_v20 = vadd.f32 %v5444_v10, %v1169_v55 }
 0x194   :  { %v2878_v39 = vmax.f32 %v2855_v33, %v2867_v0  ;;  %1454 = vst.msk [vmem:[#allocation2 + $0x10] sm:$0xff] %vm1451_vm1, %v1447_v12  ;;  %v2641_v10 = vld [vmem:[#allocation5 + $0x90] sm:$0xff] }
 0x195   :  { %v1567_v14 = vpop.f32.mrf.mxu2  ;;  %v1420_v49 = vpop.f32.mrf.mxu0  ;;  %v1301_v40 = vadd.f32 %v5462_v17, %v1235_v20  ;;  %2675 = vmatpush.msrb.mxu3 %v2641_v10 }
 0x196   :  { %v1627_v50 = vpop.f32.mrf.mxu3  ;;  %v1568_v6 = vadd.f32 %v1567_v14, %v1514_v7  ;;  %v1517_v44 = vpop.f32.mrf.mxu1  ;;  %2884 = vst.msk [vmem:[#allocation3] sm:$0xff] %vm1451_vm1, %v2878_v39  ;;  %v1432_v5 = vadd.f32 %v1420_v49, %v1366_v53  ;;  %v5628_v14 = vld [vmem:[%s6395_s0 + $0x6b] sm:$0xff] }
 0x197   :  { %v1367_v17 = vadd.f32 %v5464_v38, %v1301_v40  ;;  %v2773_v38 = vld [vmem:[#allocation5 + $0xa0] sm:$0xff] }
 0x198   :  { %v5581_v24 = vadd.f32 %v1627_v50, %v1568_v6  ;;  %v1442_v42 = vadd.f32 %v5494_v36, %v1432_v5  ;;  %4273 = vmatmul.msk.f32.gmra.mxu0 %vm74_vm0, %v5282_v63  ;;  %2807 = vmatpush.msra.mxu1 %v2773_v38  ;;  %v2309_v50 = vld [vmem:[%s6395_s0 + $0x6d] sm:$0xff] }
 0x199   :  { %4279 = vmatmul.msk.f32.gmra.mxu1 %vm74_vm0, %v5287_v57  ;;  %v2375_v6 = vld [vmem:[%s6395_s0 + $0x6e] sm:$0xff] }
 0x19a   :  { %4285 = vmatmul.msk.f32.gmra.mxu2 %vm74_vm0, %v5293_v31  ;;  %v1448_v9 = vmax.f32 %v1442_v42, 0.0  ;;  %v1236_v31 = vadd.f32 %v5468_v58, %v1170_v46  ;;  %v2707_v58 = vld [vmem:[#allocation5 + $0x98] sm:$0xff]  ;;  %v2178_v42 = vld [vmem:[%s6395_s0 + $0x73] sm:$0xf] }
 0x19b   :  { %4291 = vmatmul.msk.f32.gmra.mxu3 %vm74_vm0, %v5298_v27  ;;  %2741 = vmatpush.msra.mxu0 %v2707_v58  ;;  %v2310_v46 = vld [vmem:[%s6395_s0 + $0x75] sm:$0xf]  ;;  %v6476_v58 = vld [vmem:[#allocation12_spill] sm:$0xff] }
 0x19c   :  { %1455 = vst.msk [vmem:[#allocation2 + $0x18] sm:$0xff] %vm1451_vm1, %v1448_v9  ;;  %v1302_v27 = vadd.f32 %v5487_v52, %v1236_v31  ;;  %v2376_v9 = vld [vmem:[%s6395_s0 + $0x76] sm:$0xf] }
 0x19d   :  { %v1570_v26 = vpop.f32.mrf.mxu2  ;;  %v1423_v56 = vpop.f32.mrf.mxu0  ;;  %v6477_v38 = vld [vmem:[#allocation11_spill] sm:$0xff] }
 0x19e   :  { %v1630_v54 = vpop.f32.mrf.mxu3  ;;  %v1571_v62 = vadd.f32 %v1570_v26, %v1517_v44  ;;  %v1520_v11 = vpop.f32.mrf.mxu1  ;;  %v1433_v22 = vadd.f32 %v1423_v56, %v1367_v17  ;;  %v1368_v43 = vadd.f32 %v5489_v32, %v1302_v27 }
 0x1a0   :  { %v5598_v2 = vadd.f32 %v1630_v54, %v1571_v62  ;;  %v1443_v45 = vadd.f32 %v5494_v36, %v1433_v22  ;;  %4274 = vmatmul.msk.f32.gmra.mxu0 %vm74_vm0, %v5317_v13 }
 0x1a1   :  { %4280 = vmatmul.msk.f32.gmra.mxu1 %vm74_vm0, %v5322_v15 }
 0x1a2   :  { %4286 = vmatmul.msk.f32.gmra.mxu2 %vm74_vm0, %v5328_v34  ;;  %v1449_v25 = vmax.f32 %v1443_v45, 0.0  ;;  %v6475_v45 = vld [vmem:[#allocation17_spill] sm:$0xff] }
 0x1a3   :  { %4292 = vmatmul.msk.f32.gmra.mxu3 %vm74_vm0, %v5333_v35  ;;  %v2857_v52 = vld [vmem:[#allocation2 + $0x10] ss:$2 sm:$0xff]  ;;  %v2869_v7 = vld [vmem:[#allocation2 + $0x11] ss:$2 sm:$0xff] }
 0x1a4   :  { %v2879_v4 = vmax.f32 %v2857_v52, %v2869_v7  ;;  %1456 = vst.msk [vmem:[#allocation2 + $0x20] sm:$0xff] %vm1451_vm1, %v1449_v25  ;;  %v6478_v25 = vld [vmem:[#allocation13_spill] sm:$0xff] }
 0x1a5   :  { %v1573_v60 = vpop.f32.mrf.mxu2  ;;  %v1426_v55 = vpop.f32.mrf.mxu0 }
 0x1a6   :  { %v1633_v51 = vpop.f32.mrf.mxu3  ;;  %v1574_v28 = vadd.f32 %v1573_v60, %v1520_v11  ;;  %v1523_v34 = vpop.f32.mrf.mxu1  ;;  %2885 = vst.msk [vmem:[#allocation3 + $0x8] sm:$0xff] %vm1451_vm1, %v2879_v4  ;;  %v1434_v35 = vadd.f32 %v1426_v55, %v1368_v43  ;;  %v6479_v55 = vld [vmem:[#allocation18_spill] sm:$0xff] }
 0x1a8   :  { %v5613_v12 = vadd.f32 %v1633_v51, %v1574_v28  ;;  %v1444_v33 = vadd.f32 %v5494_v36, %v1434_v35  ;;  %4275 = vmatmul.msk.f32.gmra.mxu0 %vm74_vm0, %v5352_v3  ;;  %v6481_v35 = vld [vmem:[#allocation15_spill] sm:$0xff] }
 0x1a9   :  { %4281 = vmatmul.msk.f32.gmra.mxu1 %vm74_vm0, %v5357_v47 }
 0x1aa   :  { %4287 = vmatmul.msk.f32.gmra.mxu2 %vm74_vm0, %v5362_v48  ;;  %v1450_v32 = vmax.f32 %v1444_v33, 0.0  ;;  %v5633_v48 = vld [vmem:[%s6395_s0 + $0x6c] sm:$0xff] }
 0x1ab   :  { %4293 = vmatmul.msk.f32.gmra.mxu3 %vm74_vm0, %v5367_v59  ;;  %v5691_v33 = vld [vmem:[#allocation7 + $0x38] sm:$0xff] }
 0x1ac   :  { %1458 = vst.msk [vmem:[#allocation2 + $0x28] sm:$0xf] %vm1457_vm2, %v1450_v32  ;;  %v5693_v32 = vld [vmem:[#allocation7 + $0x18] sm:$0xff]  ;;  %2915 = vmatpush.msra.mxu2 %v5691_v33 }
 0x1ad   :  { %v1576_v0 = vpop.f32.mrf.mxu2  ;;  %v1687_v36 = vpop.f32.mrf.mxu0  ;;  %2938 = vmatpush.msra.mxu3 %v5693_v32 }
 0x1ae   :  { %v1636_v16 = vpop.f32.mrf.mxu3  ;;  %v1577_v53 = vadd.f32 %v1576_v0, %v1523_v34  ;;  %v1753_v39 = vpop.f32.mrf.mxu1  ;;  %v1705_v59 = vadd.f32 %v1687_v36, %v5546_v37  ;;  %v6480_v34 = vld [vmem:[#allocation14_spill] sm:$0xff]  ;;  %v5699_v0 = vld [vmem:[#allocation7 + $0x10] sm:$0xff] }
 0x1af   :  { %2939 = vmatpush.msra.mxu3 %v5699_v0 }
 0x1b0   :  { %v5642_v49 = vadd.f32 %v1636_v16, %v1577_v53  ;;  %v1771_v44 = vadd.f32 %v1753_v39, %v1705_v59  ;;  %4276 = vmatmul.msk.f32.gmra.mxu0 %vm74_vm0, %v5628_v14  ;;  %v5703_v59 = vld [vmem:[#allocation7 + $0x28] sm:$0xff] }
 0x1b1   :  { %4282 = vmatmul.msk.f32.gmra.mxu1 %vm74_vm0, %v5633_v48 }
 0x1b2   :  { %4288 = vmatmul.msk.f32.gmra.mxu2 %vm74_vm0, %v2309_v50  ;;  %v5705_v50 = vld [vmem:[#allocation7 + $0x8] sm:$0xff] }
 0x1b3   :  { %4294 = vmatmul.msk.f32.gmra.mxu3 %vm74_vm0, %v2375_v6 }
 0x1b4   :  { %2940 = vmatpush.msra.mxu3 %v5705_v50 }
 0x1b5   :  { %v1819_v37 = vpop.f32.mrf.mxu2  ;;  %v1690_v61 = vpop.f32.mrf.mxu0 }
 0x1b6   :  { %v1885_v20 = vpop.f32.mrf.mxu3  ;;  %v1837_v5 = vadd.f32 %v1819_v37, %v1771_v44  ;;  %v1756_v40 = vpop.f32.mrf.mxu1  ;;  %v1706_v10 = vadd.f32 %v1690_v61, %v5561_v41  ;;  %v5712_v37 = vld [vmem:[#allocation7 + $0x20] sm:$0xff]  ;;  %v5724_v61 = vld [vmem:[#allocation7 + $0x58] sm:$0xff] }
 0x1b8   :  { %v5663_v17 = vadd.f32 %v1885_v20, %v1837_v5  ;;  %v1772_v26 = vadd.f32 %v1756_v40, %v1706_v10  ;;  %4277 = vmatmul.msk.f32.gmra.mxu0 %vm74_vm0, %v2178_v42  ;;  %v5714_v20 = vld [vmem:[#allocation7] sm:$0xff]  ;;  %v5726_v40 = vld [vmem:[#allocation7 + $0x78] sm:$0xff] }
 0x1b9   :  { %4283 = vmatmul.msk.f32.gmra.mxu1 %vm74_vm0, %v2244_v21  ;;  %2941 = vmatpush.msra.mxu3 %v5714_v20 }
 0x1ba   :  { %4289 = vmatmul.msk.f32.gmra.mxu2 %vm74_vm0, %v2310_v46 }
 0x1bb   :  { %4295 = vmatmul.msk.f32.gmra.mxu3 %vm74_vm0, %v2376_v9  ;;  %v5738_v9 = vld [vmem:[#allocation7 + $0x48] sm:$0xff] }
 0x1bc   :  { %6483 = vst [vmem:[#allocation17_spill] sm:$0xff] %v5738_v9 }
 0x1bd   :  { %v1822_v41 = vpop.f32.mrf.mxu2  ;;  %v1693_v56 = vpop.f32.mrf.mxu0 }
 0x1be   :  { %v1888_v54 = vpop.f32.mrf.mxu3  ;;  %v1838_v62 = vadd.f32 %v1822_v41, %v1772_v26  ;;  %v1759_v11 = vpop.f32.mrf.mxu1  ;;  %v1707_v31 = vadd.f32 %v1693_v56, %v5581_v24  ;;  %v5740_v26 = vld [vmem:[#allocation7 + $0x68] sm:$0xff]  ;;  %v5749_v56 = vld [vmem:[#allocation7 + $0x60] sm:$0xff] }
 0x1bf   :  { %6484 = vst [vmem:[#allocation12_spill] sm:$0xff] %v5740_v26 }
 0x1c0   :  { %v5670_v22 = vadd.f32 %v1888_v54, %v1838_v62  ;;  %v1773_v27 = vadd.f32 %v1759_v11, %v1707_v31  ;;  %4296 = vmatmul.msk.f32.vlgmr.msrb.gmra.mxu0 %vm74_vm0, %v6475_v45  ;;  %v5747_v62 = vld [vmem:[#allocation7 + $0x40] sm:$0xff]  ;;  %6486 = vst [vmem:[#allocation13_spill] sm:$0xff] %v5749_v56 }
 0x1c1   :  { %4302 = vmatmul.msk.f32.vlgmr.msrb.gmra.mxu1 %vm74_vm0, %v6476_v58  ;;  %6485 = vst [vmem:[#allocation11_spill] sm:$0xff] %v5747_v62  ;;  %v6487_v31 = vld [vmem:[#allocation19_spill] sm:$0xff] }
 0x1c2   :  { %4308 = vmatmul.msk.f32.vlgmr.msrb.gmra.mxu2 %vm74_vm0, %v6477_v38 }
 0x1c3   :  { %4314 = vmatmul.msk.f32.vlgmr.msrb.gmra.mxu3 %vm74_vm0, %v6478_v25 }
 0x1c4   :  { %2995 = vmatpush.msrb.mxu3 %v5726_v40 }
 0x1c5   :  { %v1825_v52 = vpop.f32.mrf.mxu2  ;;  %v1696_v4 = vpop.f32.mrf.mxu0 }
 0x1c6   :  { %v1891_v7 = vpop.f32.mrf.mxu3  ;;  %v1839_v43 = vadd.f32 %v1825_v52, %v1773_v27  ;;  %v1762_v24 = vpop.f32.mrf.mxu1  ;;  %v1708_v60 = vadd.f32 %v1696_v4, %v5598_v2  ;;  %v5697_v2 = vld [vmem:[#allocation7 + $0x30] sm:$0xff]  ;;  %v2639_v52 = vld [vmem:[%s6395_s0 + $0x72] sm:$0xff] }
 0x1c7   :  { %2916 = vmatpush.msra.mxu2 %v5697_v2 }
 0x1c8   :  { %v5681_v51 = vadd.f32 %v1891_v7, %v1839_v43  ;;  %v1774_v28 = vadd.f32 %v1762_v24, %v1708_v60  ;;  %4297 = vmatmul.msk.f32.gmra.mxu0 %vm74_vm0, %v6479_v55  ;;  %v2442_v55 = vld [vmem:[%s6395_s0 + $0x77] sm:$0xf] }
 0x1c9   :  { %4303 = vmatmul.msk.f32.gmra.mxu1 %vm74_vm0, %v5145_v30  ;;  %2917 = vmatpush.msra.mxu2 %v5703_v59 }
 0x1ca   :  { %4309 = vmatmul.msk.f32.gmra.mxu2 %vm74_vm0, %v6480_v34  ;;  %v2508_v34 = vld [vmem:[%s6395_s0 + $0x78] sm:$0xf] }
 0x1cb   :  { %4315 = vmatmul.msk.f32.gmra.mxu3 %vm74_vm0, %v6481_v35  ;;  %2918 = vmatpush.msra.mxu2 %v5712_v37  ;;  %v2574_v35 = vld [vmem:[%s6395_s0 + $0x79] sm:$0xf] }
 0x1cd   :  { %v1828_v16 = vpop.f32.mrf.mxu2  ;;  %v1699_v36 = vpop.f32.mrf.mxu0  ;;  %2966 = vmatpush.msrb.mxu2 %v5724_v61 }
 0x1ce   :  { %v1894_v30 = vpop.f32.mrf.mxu3  ;;  %v1840_v53 = vadd.f32 %v1828_v16, %v1774_v28  ;;  %v1765_v39 = vpop.f32.mrf.mxu1  ;;  %v1709_v6 = vadd.f32 %v1699_v36, %v5613_v12  ;;  %v6482_v12 = vld [vmem:[#allocation16_spill] sm:$0xff] }
 0x1cf   :  { %v2640_v16 = vld [vmem:[%s6395_s0 + $0x7a] sm:$0xf] }
 0x1d0   :  { %v5710_v44 = vadd.f32 %v1894_v30, %v1840_v53  ;;  %v1775_v5 = vadd.f32 %v1765_v39, %v1709_v6  ;;  %4298 = vmatmul.msk.f32.gmra.mxu0 %vm74_vm0, %v5473_v29  ;;  %v5732_v29 = vld [vmem:[#allocation7 + $0x50] sm:$0xff]  ;;  %v5812_v6 = vld [vmem:[#allocation7 + $0x98] sm:$0xff] }
 0x1d1   :  { %4304 = vmatmul.msk.f32.gmra.mxu1 %vm74_vm0, %v5174_v1  ;;  %v5734_v1 = vld [vmem:[#allocation7 + $0x70] sm:$0xff]  ;;  %2967 = vmatpush.msrb.mxu2 %v5732_v29 }
 0x1d2   :  { %4310 = vmatmul.msk.f32.gmra.mxu2 %vm74_vm0, %v5168_v8  ;;  %2996 = vmatpush.msrb.mxu3 %v5734_v1 }
 0x1d3   :  { %4316 = vmatmul.msk.f32.gmra.mxu3 %vm74_vm0, %v6482_v12  ;;  %2968 = vmatpush.msrb.mxu2 %v5738_v9  ;;  %v2895_v12 = vld [vmem:[#allocation3 + $0x1] sm:$0x3] }
 0x1d4   :  { %2997 = vmatpush.msrb.mxu3 %v5740_v26 }
 0x1d5   :  { %v1831_v8 = vpop.f32.mrf.mxu2  ;;  %v1702_v10 = vpop.f32.mrf.mxu0  ;;  %2969 = vmatpush.msrb.mxu2 %v5747_v62 }
 0x1d6   :  { %v1897_v42 = vpop.f32.mrf.mxu3  ;;  %v1841_v21 = vadd.f32 %v1831_v8, %v1775_v5  ;;  %v1768_v46 = vpop.f32.mrf.mxu1  ;;  %v1710_v41 = vadd.f32 %v1702_v10, %v5642_v49  ;;  %2998 = vmatpush.msrb.mxu3 %v5749_v56  ;;  %v5814_v5 = vld [vmem:[#allocation7 + $0xb8] sm:$0xff]  ;;  %v2890_v8 = vld [vmem:[#allocation3] sm:$0x3] }
 0x1d7   :  { %v5828_v10 = vld [vmem:[#allocation7 + $0x88] sm:$0xff] }
 0x1d8   :  { %v5743_v54 = vadd.f32 %v1897_v42, %v1841_v21  ;;  %v1776_v11 = vadd.f32 %v1768_v46, %v1710_v41  ;;  %4299 = vmatmul.msk.f32.gmra.mxu0 %vm74_vm0, %v5499_v18  ;;  %v2441_v18 = vld [vmem:[%s6395_s0 + $0x6f] sm:$0xff]  ;;  %v5822_v42 = vld [vmem:[#allocation7 + $0x90] sm:$0xff]  ;;  %6489 = vst [vmem:[#allocation14_spill] sm:$0xff] %v5828_v10 }
 0x1d9   :  { %4305 = vmatmul.msk.f32.gmra.mxu1 %vm74_vm0, %v5504_v19  ;;  %v2507_v19 = vld [vmem:[%s6395_s0 + $0x70] sm:$0xff]  ;;  %6488 = vst [vmem:[#allocation18_spill] sm:$0xff] %v5822_v42  ;;  %v5824_v21 = vld [vmem:[#allocation7 + $0xb0] sm:$0xff] }
 0x1da   :  { %4311 = vmatmul.msk.f32.gmra.mxu2 %vm74_vm0, %v6487_v31  ;;  %v2946_v31 = vld [vmem:[#allocation3 + $0x2] sm:$0x3] }
 0x1db   :  { %4317 = vmatmul.msk.f32.gmra.mxu3 %vm74_vm0, %v5515_v23  ;;  %v2573_v23 = vld [vmem:[%s6395_s0 + $0x71] sm:$0xff] }
 0x1dd   :  { %v1834_v49 = vpop.f32.mrf.mxu2  ;;  %v1951_v58 = vpop.f32.mrf.mxu0 }
 0x1de   :  { %v1900_v27 = vpop.f32.mrf.mxu3  ;;  %v1842_v45 = vadd.f32 %v1834_v49, %v1776_v11  ;;  %v2017_v38 = vpop.f32.mrf.mxu1  ;;  %v1969_v25 = vadd.f32 %v1951_v58, %v5663_v17  ;;  %v5844_v49 = vld [vmem:[#allocation7 + $0x80] sm:$0xff]  ;;  %v5852_v58 = vld [vmem:[#allocation7 + $0xd8] sm:$0xff] }
 0x1df   :  { %6491 = vst [vmem:[#allocation16_spill] sm:$0xff] %v5844_v49 }
 0x1e0   :  { %v5774_v7 = vadd.f32 %v1900_v27, %v1842_v45  ;;  %v2035_v43 = vadd.f32 %v2017_v38, %v1969_v25  ;;  %4300 = vmatmul.msk.f32.gmra.mxu0 %vm74_vm0, %v2441_v18  ;;  %v5846_v27 = vld [vmem:[#allocation7 + $0xa0] sm:$0xff]  ;;  %v2975_v45 = vld [vmem:[#allocation3 + $0x3] sm:$0x3]  ;;  %6493 = vst [vmem:[#allocation20_spill] sm:$0xff] %v5852_v58  ;;  %v5854_v38 = vld [vmem:[#allocation7 + $0xf8] sm:$0xff] }
 0x1e1   :  { %4306 = vmatmul.msk.f32.gmra.mxu1 %vm74_vm0, %v2507_v19  ;;  %6492 = vst [vmem:[#allocation19_spill] sm:$0xff] %v5846_v27  ;;  %v5858_v18 = vld [vmem:[#allocation7 + $0x198] sm:$0xff]  ;;  %v5870_v25 = vld [vmem:[#allocation7 + $0xc8] sm:$0xff] }
 0x1e2   :  { %4312 = vmatmul.msk.f32.gmra.mxu2 %vm74_vm0, %v2573_v23  ;;  %6494 = vst [vmem:[#allocation21_spill] sm:$0xff] %v5854_v38  ;;  %v5860_v19 = vld [vmem:[#allocation7 + $0x1b8] sm:$0xff]  ;;  %3256 = vmatpush.msrb.mxu0 %v5858_v18 }
 0x1e3   :  { %4318 = vmatmul.msk.f32.gmra.mxu3 %vm74_vm0, %v2639_v52  ;;  %6495 = vst [vmem:[#allocation22_spill] sm:$0xff] %v5858_v18  ;;  %3285 = vmatpush.msrb.mxu1 %v5860_v19  ;;  %v5910_v18 = vld [vmem:[#allocation7 + $0x1a8] sm:$0xff] }
 0x1e4   :  { %6496 = vst [vmem:[#allocation23_spill] sm:$0xff] %v5860_v19  ;;  %v5920_v19 = vld [vmem:[#allocation7 + $0x180] sm:$0xff] }
 0x1e5   :  { %v2083_v17 = vpop.f32.mrf.mxu2  ;;  %v5784_v60 = vpop.f32.mrf.mxu0  ;;  %6499 = vst [vmem:[#allocation26_spill] sm:$0xff] %v5870_v25 }
 0x1e6   :  { %v5780_v4 = vpop.f32.mrf.mxu3  ;;  %v5782_v24 = vadd.f32 %v2083_v17, %v2035_v43  ;;  %v5786_v28 = vpop.f32.mrf.mxu1  ;;  %v5876_v43 = vld [vmem:[#allocation7 + $0xe8] sm:$0xff]  ;;  %v5880_v17 = vld [vmem:[#allocation7 + $0x190] sm:$0xff]  ;;  %6508 = vst [vmem:[#allocation35_spill] sm:$0xff] %v5910_v18 }
 0x1e7   :  { %6500 = vst [vmem:[#allocation27_spill] sm:$0xff] %v5876_v43  ;;  %3257 = vmatpush.msrb.mxu0 %v5880_v17 }
 0x1e8   :  { %4301 = vmatmul.msk.f32.gmra.mxu0 %vm74_vm0, %v2442_v55  ;;  %6501 = vst [vmem:[#allocation28_spill] sm:$0xff] %v5880_v17  ;;  %v5882_v55 = vld [vmem:[#allocation7 + $0x1b0] sm:$0xff]  ;;  %v5904_v17 = vld [vmem:[#allocation7 + $0x138] sm:$0xff] }
 0x1e9   :  { %4307 = vmatmul.msk.f32.gmra.mxu1 %vm74_vm0, %v2508_v34  ;;  %6502 = vst [vmem:[#allocation29_spill] sm:$0xff] %v5882_v55 }
 0x1ea   :  { %4313 = vmatmul.msk.f32.gmra.mxu2 %vm74_vm0, %v2574_v35  ;;  %3286 = vmatpush.msrb.mxu1 %v5882_v55  ;;  %6506 = vst [vmem:[#allocation33_spill] sm:$0xff] %v5904_v17  ;;  %v5908_v55 = vld [vmem:[#allocation7 + $0x188] sm:$0xff] }
 0x1eb   :  { %4319 = vmatmul.msk.f32.gmra.mxu3 %vm74_vm0, %v2640_v16  ;;  %v3004_v16 = vld [vmem:[#allocation3 + $0x4] sm:$0x3]  ;;  %6507 = vst [vmem:[#allocation34_spill] sm:$0xff] %v5908_v55  ;;  %3258 = vmatpush.msrb.mxu0 %v5908_v55  ;;  %v5944_v55 = vld [vmem:[#allocation7 + $0x100] sm:$0xff] }
 0x1ec   :  { %6511 = vst [vmem:[#allocation38_spill] sm:$0xff] %v5920_v19  ;;  %3287 = vmatpush.msrb.mxu1 %v5910_v18  ;;  %v5946_v18 = vld [vmem:[#allocation7 + $0x120] sm:$0xff] }
 0x1ed   :  { %v5804_v30 = vpop.f32.mrf.mxu2  ;;  %v5808_v36 = vpop.f32.mrf.mxu0  ;;  %3259 = vmatpush.msrb.mxu0 %v5920_v19  ;;  %6515 = vst [vmem:[#allocation42_spill] sm:$0xff] %v5944_v55  ;;  %v5954_v19 = vld [vmem:[#allocation7 + $0x178] sm:$0xff] }
 0x1ee   :  { %v5806_v53 = vpop.f32.mrf.mxu3  ;;  %v5810_v39 = vpop.f32.mrf.mxu1  ;;  %6516 = vst [vmem:[#allocation43_spill] sm:$0xff] %v5946_v18 }
 0x1ef   :  { %6518 = vst [vmem:[#allocation45_spill] sm:$0xff] %v5954_v19 }
 0x1f0   :  { %4320 = vmatmul.msk.f32.vlgmr.msra.gmra.mxu0 %vm74_vm0, %v5282_v63  ;;  %v5830_v63 = vld [vmem:[#allocation7 + $0xa8] sm:$0xff] }
 0x1f1   :  { %4326 = vmatmul.msk.f32.vlgmr.msra.gmra.mxu1 %vm74_vm0, %v5287_v57  ;;  %6490 = vst [vmem:[#allocation15_spill] sm:$0xff] %v5830_v63 }
 0x1f2   :  { %4332 = vmatmul.msk.f32.vlgmr.msra.gmra.mxu2 %vm1451_vm1, %v2895_v12  ;;  %v5894_v12 = vld [vmem:[#allocation7 + $0xc0] sm:$0xff] }
 0x1f3   :  { %4333 = vmatmul.msk.f32.vlgmr.msra.gmra.mxu3 %vm1451_vm1, %v2890_v8  ;;  %3024 = vmatpush.msra.mxu2 %v5812_v6  ;;  %6503 = vst [vmem:[#allocation30_spill] sm:$0xff] %v5894_v12  ;;  %v5896_v8 = vld [vmem:[#allocation7 + $0xe0] sm:$0xff] }
 0x1f4   :  { %3053 = vmatpush.msra.mxu3 %v5814_v5  ;;  %6504 = vst [vmem:[#allocation31_spill] sm:$0xff] %v5896_v8 }
 0x1f5   :  { %v5832_v46 = vpop.f32.mrf.mxu2  ;;  %3025 = vmatpush.msra.mxu2 %v5822_v42  ;;  %v5838_v41 = vpop.f32.mrf.mxu0 }
 0x1f6   :  { %v5834_v57 = vpop.f32.mrf.mxu3  ;;  %3054 = vmatpush.msra.mxu3 %v5824_v21  ;;  %v5840_v11 = vpop.f32.mrf.mxu1 }
 0x1f7   :  { %3026 = vmatpush.msra.mxu2 %v5828_v10 }
 0x1f8   :  { %3055 = vmatpush.msra.mxu3 %v5830_v63  ;;  %4321 = vmatmul.msk.f32.gmra.mxu0 %vm74_vm0, %v5317_v13  ;;  %v5864_v13 = vld [vmem:[#allocation7 + $0xd0] sm:$0xff] }
 0x1f9   :  { %4327 = vmatmul.msk.f32.gmra.mxu1 %vm74_vm0, %v5322_v15  ;;  %3027 = vmatpush.msra.mxu2 %v5844_v49  ;;  %6497 = vst [vmem:[#allocation24_spill] sm:$0xff] %v5864_v13  ;;  %v5866_v15 = vld [vmem:[#allocation7 + $0xf0] sm:$0xff] }
 0x1fa   :  { %4334 = vmatmul.msk.f32.vlgmr.msrb.gmra.mxu2 %vm1451_vm1, %v2946_v31  ;;  %3056 = vmatpush.msra.mxu3 %v5846_v27  ;;  %6498 = vst [vmem:[#allocation25_spill] sm:$0xff] %v5866_v15  ;;  %v3033_v31 = vld [vmem:[#allocation3 + $0x5] sm:$0x3]  ;;  %v3149_v49 = vld [vmem:[#allocation3 + $0x9] sm:$0x3] }
 0x1fb   :  { %4335 = vmatmul.msk.f32.vlgmr.msrb.gmra.mxu3 %vm1451_vm1, %v2975_v45  ;;  %3082 = vmatpush.msrb.mxu2 %v5852_v58  ;;  %v5902_v45 = vld [vmem:[#allocation7 + $0x118] sm:$0xff]  ;;  %v3207_v58 = vld [vmem:[#allocation3 + $0xb] sm:$0x3] }
 0x1fc   :  { %3111 = vmatpush.msrb.mxu3 %v5854_v38  ;;  %6505 = vst [vmem:[#allocation32_spill] sm:$0xff] %v5902_v45  ;;  %v5994_v38 = vld [vmem:[#allocation7 + $0x1d8] sm:$0xff]  ;;  %v3236_v27 = vld [vmem:[#allocation3 + $0xc] sm:$0x3] }
 0x1fd   :  { %v5872_v23 = vpop.f32.mrf.mxu2  ;;  %v5884_v34 = vpop.f32.mrf.mxu0  ;;  %3083 = vmatpush.msrb.mxu2 %v5864_v13  ;;  %v5990_v13 = vld [vmem:[#allocation7 + $0x160] sm:$0xff]  ;;  %6525 = vst [vmem:[#allocation52_spill] sm:$0xff] %v5994_v38 }
 0x1fe   :  { %v5874_v52 = vpop.f32.mrf.mxu3  ;;  %v5886_v35 = vpop.f32.mrf.mxu1  ;;  %3112 = vmatpush.msrb.mxu3 %v5866_v15  ;;  %v3062_v15 = vld [vmem:[#allocation3 + $0x6] sm:$0x3]  ;;  %6524 = vst [vmem:[#allocation51_spill] sm:$0xff] %v5990_v13 }
 0x1ff   :  { %3084 = vmatpush.msrb.mxu2 %v5870_v25  ;;  %v5928_v25 = vld [vmem:[#allocation7 + $0x108] sm:$0xff] }
 0x200   :  { %3113 = vmatpush.msrb.mxu3 %v5876_v43  ;;  %4322 = vmatmul.msk.f32.gmra.mxu0 %vm74_vm0, %v5352_v3  ;;  %v5914_v3 = vld [vmem:[#allocation7 + $0x110] sm:$0xff]  ;;  %6513 = vst [vmem:[#allocation40_spill] sm:$0xff] %v5928_v25 }
 0x201   :  { %4328 = vmatmul.msk.f32.gmra.mxu1 %vm74_vm0, %v5357_v47  ;;  %3085 = vmatpush.msrb.mxu2 %v5894_v12  ;;  %6509 = vst [vmem:[#allocation36_spill] sm:$0xff] %v5914_v3  ;;  %v5916_v47 = vld [vmem:[#allocation7 + $0x130] sm:$0xff]  ;;  %v5930_v12 = vld [vmem:[#allocation7 + $0x128] sm:$0xff] }
 0x202   :  { %4336 = vmatmul.msk.f32.vlgmr.msra.gmra.mxu2 %vm1451_vm1, %v3004_v16  ;;  %3114 = vmatpush.msrb.mxu3 %v5896_v8  ;;  %6510 = vst [vmem:[#allocation37_spill] sm:$0xff] %v5916_v47  ;;  %v5922_v16 = vld [vmem:[#allocation7 + $0x1a0] sm:$0xff] }
 0x203   :  { %4337 = vmatmul.msk.f32.vlgmr.msra.gmra.mxu3 %vm1451_vm1, %v3033_v31  ;;  %3140 = vmatpush.msra.mxu2 %v5902_v45  ;;  %6512 = vst [vmem:[#allocation39_spill] sm:$0xff] %v5922_v16 }
 0x204   :  { %3169 = vmatpush.msra.mxu3 %v5904_v17  ;;  %6514 = vst [vmem:[#allocation41_spill] sm:$0xff] %v5930_v12  ;;  %3288 = vmatpush.msrb.mxu1 %v5922_v16  ;;  %v5960_v16 = vld [vmem:[#allocation7 + $0x150] sm:$0xff] }
 0x205   :  { %v5924_v31 = vpop.f32.mrf.mxu2  ;;  %v5934_v8 = vpop.f32.mrf.mxu0  ;;  %3141 = vmatpush.msra.mxu2 %v5914_v3  ;;  %v3091_v3 = vld [vmem:[#allocation3 + $0x7] sm:$0x3]  ;;  %6519 = vst [vmem:[#allocation46_spill] sm:$0xff] %v5960_v16 }
 0x206   :  { %v5926_v43 = vpop.f32.mrf.mxu3  ;;  %v5936_v45 = vpop.f32.mrf.mxu1  ;;  %3170 = vmatpush.msra.mxu3 %v5916_v47  ;;  %v5952_v47 = vld [vmem:[#allocation7 + $0x158] sm:$0xff]  ;;  %v3120_v17 = vld [vmem:[#allocation3 + $0x8] sm:$0x3] }
 0x207   :  { %3142 = vmatpush.msra.mxu2 %v5928_v25  ;;  %6517 = vst [vmem:[#allocation44_spill] sm:$0xff] %v5952_v47  ;;  %v5962_v25 = vld [vmem:[#allocation7 + $0x170] sm:$0xff] }
 0x208   :  { %3171 = vmatpush.msra.mxu3 %v5930_v12  ;;  %4323 = vmatmul.msk.f32.gmra.mxu0 %vm74_vm0, %v5628_v14  ;;  %6520 = vst [vmem:[#allocation47_spill] sm:$0xff] %v5962_v25  ;;  %v5970_v12 = vld [vmem:[#allocation7 + $0x148] sm:$0xff] }
 0x209   :  { %4329 = vmatmul.msk.f32.gmra.mxu1 %vm74_vm0, %v5633_v48  ;;  %3143 = vmatpush.msra.mxu2 %v5944_v55  ;;  %6521 = vst [vmem:[#allocation48_spill] sm:$0xff] %v5970_v12 }
 0x20a   :  { %4338 = vmatmul.msk.f32.vlgmr.msrb.gmra.mxu2 %vm1451_vm1, %v3062_v15  ;;  %3172 = vmatpush.msra.mxu3 %v5946_v18  ;;  %v5972_v15 = vld [vmem:[#allocation7 + $0x168] sm:$0xff] }
 0x20b   :  { %4339 = vmatmul.msk.f32.vlgmr.msrb.gmra.mxu3 %vm1451_vm1, %v3091_v3  ;;  %3198 = vmatpush.msrb.mxu2 %v5952_v47  ;;  %6522 = vst [vmem:[#allocation49_spill] sm:$0xff] %v5972_v15  ;;  %v2705_v18 = vld [vmem:[%s6395_s0 + $0x73] sm:$0xff] }
 0x20c   :  { %3227 = vmatpush.msrb.mxu3 %v5954_v19  ;;  %v2771_v19 = vld [vmem:[%s6395_s0 + $0x74] sm:$0xff] }
 0x20d   :  { %v5966_v14 = vpop.f32.mrf.mxu2  ;;  %v5974_v3 = vpop.f32.mrf.mxu0  ;;  %3199 = vmatpush.msrb.mxu2 %v5960_v16  ;;  %v5988_v47 = vld [vmem:[#allocation7 + $0x140] sm:$0xff]  ;;  %v3178_v16 = vld [vmem:[#allocation3 + $0xa] sm:$0x3] }
 0x20e   :  { %v5968_v48 = vpop.f32.mrf.mxu3  ;;  %v5976_v55 = vpop.f32.mrf.mxu1  ;;  %3228 = vmatpush.msrb.mxu3 %v5962_v25  ;;  %6523 = vst [vmem:[#allocation50_spill] sm:$0xff] %v5988_v47  ;;  %v6009_v25 = vld [vmem:[#allocation7 + $0x1c8] sm:$0xff] }
 0x20f   :  { %3200 = vmatpush.msrb.mxu2 %v5970_v12  ;;  %v1971_v12 = vadd.f32 %v5808_v36, %v5681_v51  ;;  %6527 = vst [vmem:[#allocation54_spill] sm:$0xff] %v6009_v25  ;;  %v2706_v51 = vld [vmem:[%s6395_s0 + $0x7b] sm:$0xf] }
 0x210   :  { %3229 = vmatpush.msrb.mxu3 %v5972_v15  ;;  %4324 = vmatmul.msk.f32.gmra.mxu0 %vm74_vm0, %v2705_v18  ;;  %v6002_v15 = vld [vmem:[#allocation7 + $0x1d0] sm:$0xff]  ;;  %v2772_v36 = vld [vmem:[%s6395_s0 + $0x7c] sm:$0xf] }
 0x211   :  { %4330 = vmatmul.msk.f32.gmra.mxu1 %vm74_vm0, %v2771_v19  ;;  %3201 = vmatpush.msrb.mxu2 %v5988_v47  ;;  %6526 = vst [vmem:[#allocation53_spill] sm:$0xff] %v6002_v15 }
 0x212   :  { %4340 = vmatmul.msk.f32.vlgmr.msra.gmra.mxu2 %vm1451_vm1, %v3120_v17  ;;  %3230 = vmatpush.msrb.mxu3 %v5990_v13  ;;  %v6024_v13 = vld [vmem:[#allocation7 + $0x1c0] sm:$0xff] }
 0x213   :  { %4341 = vmatmul.msk.f32.vlgmr.msra.gmra.mxu3 %vm1451_vm1, %v3149_v49  ;;  %3314 = vmatpush.msra.mxu2 %v5994_v38  ;;  %v2037_v38 = vadd.f32 %v5810_v39, %v1971_v12  ;;  %6528 = vst [vmem:[#allocation55_spill] sm:$0xff] %v6024_v13 }
 0x215   :  { %v6005_v18 = vpop.f32.mrf.mxu2  ;;  %v6011_v17 = vpop.f32.mrf.mxu0  ;;  %3315 = vmatpush.msra.mxu2 %v6002_v15  ;;  %v2103_v47 = vadd.f32 %v5832_v46, %v2037_v38  ;;  %v1972_v15 = vadd.f32 %v5838_v41, %v5710_v44  ;;  %v3294_v44 = vld [vmem:[#allocation3 + $0xe] sm:$0x3] }
 0x216   :  { %v6007_v19 = vpop.f32.mrf.mxu3  ;;  %v6013_v49 = vpop.f32.mrf.mxu1 }
 0x217   :  { %3316 = vmatpush.msra.mxu2 %v6009_v25  ;;  %v2169_v39 = vadd.f32 %v5834_v57, %v2103_v47  ;;  %v1973_v57 = vadd.f32 %v5884_v34, %v5743_v54 }
 0x218   :  { %4325 = vmatmul.msk.f32.gmra.mxu0 %vm74_vm0, %v2706_v51 }
 0x219   :  { %4331 = vmatmul.msk.f32.gmra.mxu1 %vm74_vm0, %v2772_v36  ;;  %3317 = vmatpush.msra.mxu2 %v6024_v13  ;;  %v2038_v36 = vadd.f32 %v5840_v11, %v1972_v15 }
 0x21a   :  { %4342 = vmatmul.msk.f32.vlgmr.msrb.gmra.mxu2 %vm1451_vm1, %v3178_v16  ;;  %v3265_v16 = vld [vmem:[#allocation3 + $0xd] sm:$0x3] }
 0x21b   :  { %4343 = vmatmul.msk.f32.vlgmr.msrb.gmra.mxu3 %vm1451_vm1, %v3207_v58  ;;  %v2104_v58 = vadd.f32 %v5872_v23, %v2038_v36 }
 0x21d   :  { %v6035_v12 = vpop.f32.mrf.mxu2  ;;  %v2221_v38 = vpop.f32.mrf.mxu0  ;;  %v2170_v41 = vadd.f32 %v5874_v52, %v2104_v58 }
 0x21e   :  { %v6037_v46 = vpop.f32.mrf.mxu3  ;;  %v2287_v51 = vpop.f32.mrf.mxu1  ;;  %v2235_v25 = vadd.f32 %v2221_v38, %v2169_v39 }
 0x220   :  { %v6041_v56 = vadd.f32 %v2287_v51, %v2235_v25  ;;  %4344 = vmatmul.msk.f32.vlgmr.msrb.gmra.mxu0 %vm1451_vm1, %v3236_v27  ;;  %v2039_v25 = vadd.f32 %v5886_v35, %v1973_v57  ;;  %v1974_v51 = vadd.f32 %v5934_v8, %v5774_v7 }
 0x221   :  { %4345 = vmatmul.msk.f32.vlgmr.msrb.gmra.mxu1 %vm1451_vm1, %v3265_v16 }
 0x222   :  { %4346 = vmatmul.msk.f32.vlgmr.msra.gmra.mxu2 %vm1451_vm1, %v3294_v44  ;;  %v2105_v27 = vadd.f32 %v5924_v31, %v2039_v25  ;;  %v2040_v58 = vadd.f32 %v5936_v45, %v1974_v51 }
 0x224   :  { %v2171_v54 = vadd.f32 %v5926_v43, %v2105_v27  ;;  %v2106_v35 = vadd.f32 %v5966_v14, %v2040_v58 }
 0x225   :  { %v6049_v11 = vpop.f32.mrf.mxu2  ;;  %v2224_v15 = vpop.f32.mrf.mxu0 }
 0x226   :  { %v6051_v47 = vpop.f32.mrf.mxu3  ;;  %v2290_v23 = vpop.f32.mrf.mxu1  ;;  %v2236_v39 = vadd.f32 %v2224_v15, %v2170_v41  ;;  %v2172_v31 = vadd.f32 %v5968_v48, %v2106_v35  ;;  %v1970_v35 = vadd.f32 %v5784_v60, %v5670_v22 }
 0x228   :  { %v6055_v38 = vadd.f32 %v2290_v23, %v2236_v39  ;;  %v2036_v62 = vadd.f32 %v5786_v28, %v1970_v35 }
 0x22a   :  { %v2102_v63 = vadd.f32 %v5804_v30, %v2036_v62 }
 0x22c   :  { %v2168_v22 = vadd.f32 %v5806_v53, %v2102_v63  ;;  %v6124_v53 = vld [vmem:[#allocation7 + $0x218] sm:$0xff] }
 0x22d   :  { %v6060_v34 = vpop.f32.mrf.mxu2  ;;  %v2227_v36 = vpop.f32.mrf.mxu0  ;;  %3372 = vmatpush.msra.mxu0 %v6124_v53  ;;  %v6130_v63 = vld [vmem:[#allocation7 + $0x258] sm:$0xff] }
 0x22e   :  { %v6062_v52 = vpop.f32.mrf.mxu3  ;;  %v2293_v16 = vpop.f32.mrf.mxu1  ;;  %v2237_v44 = vadd.f32 %v2227_v36, %v2171_v54  ;;  %v2234_v28 = vadd.f32 %v6011_v17, %v2168_v22  ;;  %6529 = vst [vmem:[#allocation56_spill] sm:$0xff] %v6130_v63  ;;  %3430 = vmatpush.msrb.mxu2 %v6130_v63  ;;  %v6139_v17 = vld [vmem:[#allocation7 + $0x1f0] sm:$0xff] }
 0x230   :  { %v6066_v57 = vadd.f32 %v2293_v16, %v2237_v44  ;;  %v2300_v62 = vadd.f32 %v6013_v49, %v2234_v28  ;;  %v6141_v49 = vld [vmem:[#allocation7 + $0x210] sm:$0xff]  ;;  %v6157_v28 = vld [vmem:[#allocation7 + $0x208] sm:$0xff] }
 0x231   :  { %6530 = vst [vmem:[#allocation57_spill] sm:$0xff] %v6141_v49  ;;  %3373 = vmatpush.msra.mxu0 %v6141_v49 }
 0x232   :  { %6533 = vst [vmem:[#allocation60_spill] sm:$0xff] %v6157_v28 }
 0x233   :  { %3374 = vmatpush.msra.mxu0 %v6157_v28  ;;  %v6176_v28 = vld [vmem:[#allocation7 + $0x240] sm:$0xff] }
 0x234   :  { %6537 = vst [vmem:[#allocation64_spill] sm:$0xff] %v6176_v28 }
 0x235   :  { %v6069_v41 = vpop.f32.mrf.mxu2  ;;  %v2230_v43 = vpop.f32.mrf.mxu0 }
 0x236   :  { %v6071_v7 = vpop.f32.mrf.mxu3  ;;  %v2296_v8 = vpop.f32.mrf.mxu1  ;;  %v2238_v15 = vadd.f32 %v2230_v43, %v2172_v31  ;;  %v2167_v31 = vadd.f32 %v5780_v4, %v5782_v24 }
 0x238   :  { %v6073_v23 = vadd.f32 %v2296_v8, %v2238_v15  ;;  %v2233_v10 = vadd.f32 %v5974_v3, %v2167_v31 }
 0x23a   :  { %v2299_v26 = vadd.f32 %v5976_v55, %v2233_v10  ;;  %v6122_v10 = vld [vmem:[#allocation7 + $0x1f8] sm:$0xff]  ;;  %v2366_v55 = vadd.f32 %v6035_v12, %v2300_v62  ;;  %v6151_v12 = vld [vmem:[#allocation7 + $0x250] sm:$0xff]  ;;  %v6163_v62 = vld [vmem:[#allocation7 + $0x248] sm:$0xff] }
 0x23b   :  { %3343 = vmatpush.msra.mxu3 %v6122_v10  ;;  %6532 = vst [vmem:[#allocation59_spill] sm:$0xff] %v6151_v12  ;;  %3431 = vmatpush.msrb.mxu2 %v6151_v12  ;;  %v6172_v12 = vld [vmem:[#allocation7 + $0x220] sm:$0xff] }
 0x23c   :  { %v2365_v4 = vadd.f32 %v6005_v18, %v2299_v26  ;;  %v6126_v26 = vld [vmem:[#allocation7 + $0x238] sm:$0xff]  ;;  %6534 = vst [vmem:[#allocation61_spill] sm:$0xff] %v6163_v62  ;;  %v2432_v49 = vadd.f32 %v6037_v46, %v2366_v55  ;;  %v2367_v55 = vadd.f32 %v6049_v11, %v6041_v56 }
 0x23d   :  { %v6075_v25 = vpop.f32.mrf.mxu2  ;;  %v2479_v45 = vpop.f32.mrf.mxu0  ;;  %3401 = vmatpush.msra.mxu1 %v6126_v26  ;;  %3344 = vmatpush.msra.mxu3 %v6139_v17  ;;  %6536 = vst [vmem:[#allocation63_spill] sm:$0xff] %v6172_v12  ;;  %v6181_v46 = vld [vmem:[#allocation7 + $0x278] sm:$0xff] }
 0x23e   :  { %v6077_v39 = vpop.f32.mrf.mxu3  ;;  %v2545_v27 = vpop.f32.mrf.mxu1  ;;  %v2431_v3 = vadd.f32 %v6007_v19, %v2365_v4  ;;  %v6155_v4 = vld [vmem:[#allocation7 + $0x1e8] sm:$0xff]  ;;  %3432 = vmatpush.msrb.mxu2 %v6163_v62 }
 0x23f   :  { %3345 = vmatpush.msra.mxu3 %v6155_v4 }
 0x240   :  { %v2497_v30 = vadd.f32 %v2479_v45, %v2431_v3  ;;  %v6143_v45 = vld [vmem:[#allocation7 + $0x230] sm:$0xff]  ;;  %v6159_v3 = vld [vmem:[#allocation7 + $0x228] sm:$0xff]  ;;  %3433 = vmatpush.msrb.mxu2 %v6176_v28 }
 0x241   :  { %6531 = vst [vmem:[#allocation58_spill] sm:$0xff] %v6143_v45  ;;  %3402 = vmatpush.msra.mxu1 %v6143_v45  ;;  %v6197_v28 = vld [vmem:[#allocation7 + $0x290] sm:$0xff] }
 0x242   :  { %v2563_v22 = vadd.f32 %v2545_v27, %v2497_v30  ;;  %v6168_v27 = vld [vmem:[#allocation7 + $0x1e0] sm:$0xff]  ;;  %3547 = vmatpush.msra.mxu2 %v5693_v32  ;;  %v6209_v32 = vld [vmem:[#allocation7 + $0x268] sm:$0xff] }
 0x243   :  { %3403 = vmatpush.msra.mxu1 %v6159_v3  ;;  %v6170_v30 = vld [vmem:[#allocation7 + $0x200] sm:$0xff]  ;;  %3346 = vmatpush.msra.mxu3 %v6168_v27 }
 0x244   :  { %6535 = vst [vmem:[#allocation62_spill] sm:$0xff] %v6170_v30  ;;  %3375 = vmatpush.msra.mxu0 %v6170_v30  ;;  %3548 = vmatpush.msra.mxu2 %v5699_v0  ;;  %v6221_v0 = vld [vmem:[#allocation7 + $0x280] sm:$0xff] }
 0x245   :  { %v2611_v14 = vpop.f32.mrf.mxu2  ;;  %v6081_v54 = vpop.f32.mrf.mxu0  ;;  %3404 = vmatpush.msra.mxu1 %v6172_v12  ;;  %3459 = vmatpush.msrb.mxu3 %v6181_v46 }
 0x246   :  { %v6079_v51 = vpop.f32.mrf.mxu3  ;;  %v6083_v48 = vpop.f32.mrf.mxu1  ;;  %v2629_v63 = vadd.f32 %v2611_v14, %v2563_v22  ;;  %v2498_v45 = vadd.f32 %v6081_v54, %v2432_v49  ;;  %v6183_v14 = vld [vmem:[#allocation7 + $0x298] sm:$0xff]  ;;  %v6195_v49 = vld [vmem:[#allocation7 + $0x270] sm:$0xff]  ;;  %3549 = vmatpush.msra.mxu2 %v5705_v50  ;;  %v2368_v50 = vadd.f32 %v6060_v34, %v6055_v38 }
 0x247   :  { %3488 = vmatpush.msrb.mxu0 %v6183_v14  ;;  %3524 = vmatpush.msrb.mxu1 %v5691_v33  ;;  %v2433_v33 = vadd.f32 %v6051_v47, %v2367_v55 }
 0x248   :  { %v2695_v22 = vadd.f32 %v6079_v51, %v2629_v63  ;;  %3460 = vmatpush.msrb.mxu3 %v6195_v49  ;;  %v2564_v56 = vadd.f32 %v6083_v48, %v2498_v45  ;;  %v6206_v51 = vld [vmem:[%s6397_s2] ss:$0 sm:$0xff]  ;;  %3550 = vmatpush.msra.mxu2 %v5714_v20  ;;  %v2434_v20 = vadd.f32 %v6062_v52, %v2368_v50 }
 0x249   :  { %3489 = vmatpush.msrb.mxu0 %v6197_v28  ;;  %v6211_v63 = vld [vmem:[#allocation7 + $0x288] sm:$0xff]  ;;  %3525 = vmatpush.msrb.mxu1 %v5697_v2 }
 0x24a   :  { %3461 = vmatpush.msrb.mxu3 %v6209_v32 }
 0x24b   :  { %3490 = vmatpush.msrb.mxu0 %v6211_v63  ;;  %3526 = vmatpush.msrb.mxu1 %v5703_v59 }
 0x24d   :  { %v6085_v36 = vpop.f32.mrf.mxu2  ;;  %v6089_v58 = vpop.f32.mrf.mxu0  ;;  %3491 = vmatpush.msrb.mxu0 %v6221_v0  ;;  %3527 = vmatpush.msrb.mxu1 %v5712_v37 }
 0x24e   :  { %v6087_v16 = vpop.f32.mrf.mxu3  ;;  %v6091_v44 = vpop.f32.mrf.mxu1  ;;  %v2630_v48 = vadd.f32 %v6085_v36, %v2564_v56  ;;  %v2499_v2 = vadd.f32 %v6089_v58, %v2433_v33 }
 0x250   :  { %v2696_v47 = vadd.f32 %v6087_v16, %v2630_v48  ;;  %v2565_v58 = vadd.f32 %v6091_v44, %v2499_v2  ;;  %v2369_v16 = vadd.f32 %v6069_v41, %v6066_v57 }
 0x255   :  { %v6097_v43 = vpop.f32.mrf.mxu2  ;;  %v6101_v15 = vpop.f32.mrf.mxu0 }
 0x256   :  { %v6099_v8 = vpop.f32.mrf.mxu3  ;;  %v6103_v13 = vpop.f32.mrf.mxu1  ;;  %v2631_v37 = vadd.f32 %v6097_v43, %v2565_v58  ;;  %v2500_v38 = vadd.f32 %v6101_v15, %v2434_v20  ;;  %v2435_v15 = vadd.f32 %v6071_v7, %v2369_v16 }
 0x258   :  { %v2697_v48 = vadd.f32 %v6099_v8, %v2631_v37 }
 0x25d   :  { %v6111_v24 = vpop.f32.mrf.mxu2  ;;  %v6115_v9 = vpop.f32.mrf.mxu0 }
 0x25e   :  { %v6113_v60 = vpop.f32.mrf.mxu3  ;;  %v6117_v42 = vpop.f32.mrf.mxu1  ;;  %v2501_v41 = vadd.f32 %v6115_v9, %v2435_v15 }
 0x265   :  { %v6133_v18 = vpop.f32.mrf.mxu2  ;;  %v6145_v35 = vpop.f32.mrf.mxu0 }
 0x266   :  { %v6135_v19 = vpop.f32.mrf.mxu3  ;;  %v6147_v31 = vpop.f32.mrf.mxu1 }
 0x26d   :  { %v6190_v30 = vpop.f32.mrf.mxu2  ;;  %v2743_v12 = vpop.f32.mrf.mxu0 }
 0x26e   :  { %v6192_v54 = vpop.f32.mrf.mxu3  ;;  %v2809_v62 = vpop.f32.mrf.mxu1  ;;  %v2761_v11 = vadd.f32 %v2743_v12, %v2695_v22  ;;  %v6219_v12 = vld [vmem:[#allocation7 + $0x260] sm:$0xff] }
 0x26f   :  { %3462 = vmatpush.msrb.mxu3 %v6219_v12 }
 0x270   :  { %v2827_v45 = vadd.f32 %v2809_v62, %v2761_v11 }
 0x272   :  { %v2837_v22 = vadd.f32 %v6206_v51, %v2827_v45 }
 0x274   :  { %v2843_v36 = vmax.f32 %v2837_v22, 0.0 }
 0x275   :  { %v2920_v62 = vpop.f32.mrf.mxu2  ;;  %v2746_v56 = vpop.f32.mrf.mxu0 }
 0x276   :  { %v2943_v59 = vpop.f32.mrf.mxu3  ;;  %v2812_v11 = vpop.f32.mrf.mxu1  ;;  %2849 = vst.msk [vmem:[#allocation2 + $0x2c] sm:$0xff] %vm1451_vm1, %v2843_v36  ;;  %v2762_v33 = vadd.f32 %v2746_v56, %v2696_v47  ;;  %v2566_v47 = vadd.f32 %v6103_v13, %v2500_v38 }
 0x277   :  { %v6233_v55 = vadd.f32 %v2943_v59, %v2920_v62  ;;  %v2370_v59 = vadd.f32 %v6075_v25, %v6073_v23 }
 0x278   :  { %v2828_v45 = vadd.f32 %v2812_v11, %v2762_v33  ;;  %v2632_v50 = vadd.f32 %v6111_v24, %v2566_v47  ;;  %v2567_v33 = vadd.f32 %v6117_v42, %v2501_v41  ;;  %v6544_v47 = vld [vmem:[#allocation13_spill] sm:$0xff] }
 0x279   :  { %v2436_v9 = vadd.f32 %v6077_v39, %v2370_v59  ;;  %v6549_v41 = vld [vmem:[#allocation33_spill] sm:$0xff]  ;;  %v6550_v59 = vld [vmem:[#allocation24_spill] sm:$0xff] }
 0x27a   :  { %v2838_v34 = vadd.f32 %v6206_v51, %v2828_v45  ;;  %v2698_v13 = vadd.f32 %v6113_v60, %v2632_v50  ;;  %v2633_v45 = vadd.f32 %v6133_v18, %v2567_v33 }
 0x27b   :  { %v2502_v42 = vadd.f32 %v6145_v35, %v2436_v9 }
 0x27c   :  { %v2844_v22 = vmax.f32 %v2838_v34, 0.0  ;;  %v2699_v39 = vadd.f32 %v6135_v19, %v2633_v45  ;;  %v6539_v19 = vld [vmem:[#allocation17_spill] sm:$0xff] }
 0x27d   :  { %v2859_v62 = vld [vmem:[#allocation2 + $0x20] ss:$2 sm:$0xff]  ;;  %v2871_v44 = vld [vmem:[#allocation2 + $0x21] ss:$2 sm:$0xff]  ;;  %v2749_v2 = vpop.f32.mrf.mxu0 }
 0x27e   :  { %v2815_v36 = vpop.f32.mrf.mxu1  ;;  %v2880_v52 = vmax.f32 %v2859_v62, %v2871_v44  ;;  %2850 = vst.msk [vmem:[#allocation2 + $0x34] sm:$0xff] %vm1451_vm1, %v2844_v22  ;;  %v2763_v43 = vadd.f32 %v2749_v2, %v2697_v48  ;;  %v6540_v48 = vld [vmem:[#allocation12_spill] sm:$0xff]  ;;  %v6541_v22 = vld [vmem:[#allocation15_spill] sm:$0xff]  ;;  %v6542_v62 = vld [vmem:[#allocation14_spill] sm:$0xff] }
 0x27f   :  { %v6543_v2 = vld [vmem:[#allocation11_spill] sm:$0xff] }
 0x280   :  { %2886 = vst.msk [vmem:[#allocation3 + $0x10] sm:$0xff] %vm1451_vm1, %v2880_v52  ;;  %v2829_v57 = vadd.f32 %v2815_v36, %v2763_v43  ;;  %v6545_v52 = vld [vmem:[#allocation19_spill] sm:$0xff]  ;;  %v6546_v43 = vld [vmem:[#allocation20_spill] sm:$0xff] }
 0x282   :  { %v2839_v8 = vadd.f32 %v6206_v51, %v2829_v57  ;;  %v6548_v57 = vld [vmem:[#allocation16_spill] sm:$0xff] }
 0x284   :  { %v2845_v56 = vmax.f32 %v2839_v8, 0.0 }
 0x285   :  { %v2752_v11 = vpop.f32.mrf.mxu0 }
 0x286   :  { %v2818_v58 = vpop.f32.mrf.mxu1  ;;  %2851 = vst.msk [vmem:[#allocation2 + $0x3c] sm:$0xff] %vm1451_vm1, %v2845_v56  ;;  %v2764_v7 = vadd.f32 %v2752_v11, %v2698_v13  ;;  %v6551_v13 = vld [vmem:[#allocation25_spill] sm:$0xff] }
 0x287   :  { %v3323_v24 = vld [vmem:[#allocation3 + $0xf] sm:$0x3]  ;;  %v3381_v37 = vld [vmem:[#allocation3 + $0x11] sm:$0x3] }
 0x288   :  { %v3352_v20 = vld [vmem:[#allocation3 + $0x10] sm:$0x3]  ;;  %v2830_v38 = vadd.f32 %v2818_v58, %v2764_v7  ;;  %4347 = vmatmul.msk.f32.vlgmr.msra.gmra.mxu3 %vm1451_vm1, %v3323_v24  ;;  %v3410_v23 = vld [vmem:[#allocation3 + $0x12] sm:$0x3]  ;;  %4349 = vmatmul.msk.f32.vlgmr.msra.gmra.mxu1 %vm1451_vm1, %v3381_v37 }
 0x289   :  { %4348 = vmatmul.msk.f32.vlgmr.msra.gmra.mxu0 %vm1451_vm1, %v3352_v20  ;;  %4350 = vmatmul.msk.f32.vlgmr.msrb.gmra.mxu2 %vm1451_vm1, %v3410_v23  ;;  %v6552_v11 = vld [vmem:[#allocation37_spill] sm:$0xff]  ;;  %v6554_v20 = vld [vmem:[#allocation27_spill] sm:$0xff] }
 0x28a   :  { %v2840_v25 = vadd.f32 %v6206_v51, %v2830_v38  ;;  %3571 = vmatpush.msra.mxu3 %v5724_v61  ;;  %3596 = vmatpush.msra.mxu0 %v5726_v40  ;;  %v6538_v61 = vld [vmem:[#allocation18_spill] sm:$0xff]  ;;  %v2568_v40 = vadd.f32 %v6147_v31, %v2502_v42  ;;  %v6556_v23 = vld [vmem:[#allocation31_spill] sm:$0xff]  ;;  %v6557_v42 = vld [vmem:[#allocation32_spill] sm:$0xff] }
 0x28b   :  { %3646 = vmatpush.msrb.mxu2 %v5814_v5  ;;  %3621 = vmatpush.msra.mxu1 %v5812_v6  ;;  %v3507_v31 = vld [vmem:[#allocation3 + $0x16] sm:$0x3] }
 0x28c   :  { %v2846_v60 = vmax.f32 %v2840_v25, 0.0  ;;  %3572 = vmatpush.msra.mxu3 %v5732_v29  ;;  %3597 = vmatpush.msra.mxu0 %v5734_v1  ;;  %v3439_v29 = vld [vmem:[#allocation3 + $0x13] sm:$0x3]  ;;  %v6558_v25 = vld [vmem:[#allocation44_spill] sm:$0xff] }
 0x28d   :  { %v2861_v18 = vld [vmem:[#allocation2 + $0x30] ss:$2 sm:$0xff]  ;;  %v2873_v34 = vld [vmem:[#allocation2 + $0x31] ss:$2 sm:$0xff]  ;;  %v2755_v35 = vpop.f32.mrf.mxu0  ;;  %3647 = vmatpush.msrb.mxu2 %v5824_v21  ;;  %3622 = vmatpush.msra.mxu1 %v6538_v61  ;;  %v3468_v1 = vld [vmem:[#allocation3 + $0x14] sm:$0x3]  ;;  %v2634_v21 = vadd.f32 %v6190_v30, %v2568_v40 }
 0x28e   :  { %v2821_v16 = vpop.f32.mrf.mxu1  ;;  %v2881_v5 = vmax.f32 %v2861_v18, %v2873_v34  ;;  %2852 = vst.msk [vmem:[#allocation2 + $0x44] sm:$0xff] %vm1451_vm1, %v2846_v60  ;;  %v2765_v6 = vadd.f32 %v2755_v35, %v2699_v39  ;;  %3573 = vmatpush.msra.mxu3 %v6539_v19  ;;  %3598 = vmatpush.msra.mxu0 %v6540_v48  ;;  %v6547_v30 = vld [vmem:[#allocation21_spill] sm:$0xff]  ;;  %v6555_v38 = vld [vmem:[#allocation30_spill] sm:$0xff]  ;;  %v6563_v40 = vld [vmem:[#allocation47_spill] sm:$0xff] }
 0x28f   :  { %3648 = vmatpush.msrb.mxu2 %v6541_v22  ;;  %3623 = vmatpush.msra.mxu1 %v6542_v62  ;;  %v2700_v15 = vadd.f32 %v6192_v54, %v2634_v21  ;;  %v6553_v54 = vld [vmem:[#allocation26_spill] sm:$0xff]  ;;  %v6559_v60 = vld [vmem:[#allocation45_spill] sm:$0xff]  ;;  %v6565_v48 = vld [vmem:[#allocation40_spill] sm:$0xff] }
 0x290   :  { %2887 = vst.msk [vmem:[#allocation3 + $0x18] sm:$0xff] %vm1451_vm1, %v2881_v5  ;;  %v2831_v44 = vadd.f32 %v2821_v16, %v2765_v6  ;;  %4351 = vmatmul.msk.f32.vlgmr.msrb.gmra.mxu3 %vm1451_vm1, %v3439_v29  ;;  %3599 = vmatpush.msra.mxu0 %v6544_v47  ;;  %v6560_v18 = vld [vmem:[#allocation41_spill] sm:$0xff]  ;;  %v6561_v16 = vld [vmem:[#allocation36_spill] sm:$0xff]  ;;  %v6562_v61 = vld [vmem:[#allocation46_spill] sm:$0xff] }
 0x291   :  { %4352 = vmatmul.msk.f32.vlgmr.msrb.gmra.mxu0 %vm1451_vm1, %v3468_v1  ;;  %4354 = vmatmul.msk.f32.vlgmr.msra.gmra.mxu2 %vm1451_vm1, %v3507_v31  ;;  %v6564_v5 = vld [vmem:[#allocation43_spill] sm:$0xff]  ;;  %v6566_v29 = vld [vmem:[#allocation48_spill] sm:$0xff]  ;;  %v6567_v22 = vld [vmem:[#allocation42_spill] sm:$0xff] }
 0x292   :  { %3574 = vmatpush.msra.mxu3 %v6543_v2  ;;  %v2841_v36 = vadd.f32 %v6206_v51, %v2831_v44  ;;  %3649 = vmatpush.msrb.mxu2 %v6545_v52  ;;  %v6568_v62 = vld [vmem:[#allocation49_spill] sm:$0xff]  ;;  %v6569_v21 = vld [vmem:[#allocation50_spill] sm:$0xff]  ;;  %v6570_v44 = vld [vmem:[#allocation23_spill] sm:$0xff] }
 0x293   :  { %3696 = vmatpush.msrb.mxu0 %v6547_v30  ;;  %3624 = vmatpush.msra.mxu1 %v6548_v57  ;;  %v6571_v31 = vld [vmem:[#allocation22_spill] sm:$0xff]  ;;  %v6572_v2 = vld [vmem:[#allocation51_spill] sm:$0xff]  ;;  %v6576_v57 = vld [vmem:[#allocation53_spill] sm:$0xff] }
 0x294   :  { %3671 = vmatpush.msrb.mxu3 %v6546_v43  ;;  %v2847_v50 = vmax.f32 %v2841_v36, 0.0  ;;  %3746 = vmatpush.msra.mxu2 %v6549_v41  ;;  %v6573_v36 = vld [vmem:[#allocation52_spill] sm:$0xff]  ;;  %v6574_v43 = vld [vmem:[#allocation29_spill] sm:$0xff] }
 0x295   :  { %v2758_v8 = vpop.f32.mrf.mxu0  ;;  %3697 = vmatpush.msrb.mxu0 %v6551_v13  ;;  %v6577_v13 = vld [vmem:[#allocation35_spill] sm:$0xff] }
 0x296   :  { %3672 = vmatpush.msrb.mxu3 %v6550_v59  ;;  %2853 = vst.msk [vmem:[#allocation2 + $0x4c] sm:$0xff] %vm1451_vm1, %v2847_v50  ;;  %v2766_v56 = vadd.f32 %v2758_v8, %v2700_v15  ;;  %3747 = vmatpush.msra.mxu2 %v6552_v11  ;;  %v2824_v58 = vpop.f32.mrf.mxu1  ;;  %v6575_v50 = vld [vmem:[#allocation28_spill] sm:$0xff]  ;;  %v6580_v11 = vld [vmem:[#allocation39_spill] sm:$0xff] }
 0x297   :  { %v3508_v33 = vld [vmem:[#allocation3 + $0x17] sm:$0x3]  ;;  %v3580_v24 = vld [vmem:[#allocation3 + $0x19] sm:$0x3]  ;;  %3698 = vmatpush.msrb.mxu0 %v6554_v20  ;;  %v3630_v9 = vld [vmem:[#allocation3 + $0x1b] sm:$0x3] }
 0x298   :  { %v3555_v7 = vld [vmem:[#allocation3 + $0x18] sm:$0x3]  ;;  %3673 = vmatpush.msrb.mxu3 %v6553_v54  ;;  %v2832_v37 = vadd.f32 %v2824_v58, %v2766_v56  ;;  %4353 = vmatmul.msk.f32.vlgmr.msrb.gmra.mxu1 %vm1451_vm1, %v3508_v33  ;;  %v3605_v6 = vld [vmem:[#allocation3 + $0x1a] sm:$0x3]  ;;  %v3655_v19 = vld [vmem:[#allocation3 + $0x1c] sm:$0x3] }
 0x299   :  { %4355 = vmatmul.msk.f32.vlgmr.msra.gmra.mxu3 %vm1451_vm1, %v3555_v7  ;;  %4356 = vmatmul.msk.f32.vlgmr.msra.gmra.mxu0 %vm1451_vm1, %v3580_v24  ;;  %v3680_v1 = vld [vmem:[#allocation3 + $0x1d] sm:$0x3]  ;;  %v6579_v56 = vld [vmem:[#allocation54_spill] sm:$0xff]  ;;  %v6583_v33 = vld [vmem:[#allocation56_spill] sm:$0xff] }
 0x29a   :  { %4358 = vmatmul.msk.f32.vlgmr.msrb.gmra.mxu2 %vm1451_vm1, %v3630_v9  ;;  %v2842_v45 = vadd.f32 %v6206_v51, %v2832_v37  ;;  %3674 = vmatpush.msrb.mxu3 %v6555_v38  ;;  %v3705_v15 = vld [vmem:[#allocation3 + $0x1e] sm:$0x3]  ;;  %v6584_v54 = vld [vmem:[#allocation58_spill] sm:$0xff] }
 0x29b   :  { %3699 = vmatpush.msrb.mxu0 %v6556_v23  ;;  %3721 = vmatpush.msrb.mxu1 %v6557_v42  ;;  %v6582_v58 = vld [vmem:[#allocation55_spill] sm:$0xff]  ;;  %v6590_v9 = vld [vmem:[#allocation62_spill] sm:$0xff] }
 0x29c   :  { %3771 = vmatpush.msra.mxu3 %v6558_v25  ;;  %v2848_v39 = vmax.f32 %v2842_v45, 0.0  ;;  %3748 = vmatpush.msra.mxu2 %v6560_v18  ;;  %v6589_v37 = vld [vmem:[#allocation63_spill] sm:$0xff]  ;;  %v6591_v45 = vld [vmem:[#allocation64_spill] sm:$0xff] }
 0x29d   :  { %3796 = vmatpush.msra.mxu0 %v6559_v60  ;;  %v2863_v34 = vld [vmem:[#allocation2 + $0x40] ss:$2 sm:$0xff]  ;;  %v2875_v35 = vld [vmem:[#allocation2 + $0x41] ss:$2 sm:$0xff]  ;;  %3722 = vmatpush.msrb.mxu1 %v6561_v16  ;;  %v3261_v16 = vpop.f32.mrf.mxu0 }
 0x29e   :  { %3772 = vmatpush.msra.mxu3 %v6562_v61  ;;  %v2882_v51 = vmax.f32 %v2863_v34, %v2875_v35  ;;  %2854 = vst.msk [vmem:[#allocation2 + $0x54] sm:$0xf] %vm1457_vm2, %v2848_v39  ;;  %3749 = vmatpush.msra.mxu2 %v6564_v5 }
 0x29f   :  { %3797 = vmatpush.msra.mxu0 %v6563_v40  ;;  %3723 = vmatpush.msrb.mxu1 %v6565_v48  ;;  %v3290_v40 = vpop.f32.mrf.mxu1 }
 0x2a0   :  { %3773 = vmatpush.msra.mxu3 %v6566_v29  ;;  %2888 = vst.msk [vmem:[#allocation3 + $0x20] sm:$0xff] %vm1451_vm1, %v2882_v51  ;;  %4357 = vmatmul.msk.f32.vlgmr.msra.gmra.mxu1 %vm1451_vm1, %v3605_v6 }
 0x2a1   :  { %4359 = vmatmul.msk.f32.vlgmr.msrb.gmra.mxu3 %vm1451_vm1, %v3655_v19  ;;  %4360 = vmatmul.msk.f32.vlgmr.msrb.gmra.mxu0 %vm1451_vm1, %v3680_v1 }
 0x2a2   :  { %3724 = vmatpush.msrb.mxu1 %v6567_v22  ;;  %3798 = vmatpush.msra.mxu0 %v6568_v62 }
 0x2a3   :  { %3774 = vmatpush.msra.mxu3 %v6569_v21  ;;  %3846 = vmatpush.msrb.mxu2 %v6570_v44 }
 0x2a4   :  { %3821 = vmatpush.msra.mxu1 %v6571_v31  ;;  %3799 = vmatpush.msra.mxu0 %v6572_v2 }
 0x2a5   :  { %3871 = vmatpush.msrb.mxu3 %v6573_v36  ;;  %v2865_v47 = vld [vmem:[#allocation2 + $0x50] ss:$2 sm:$0xf]  ;;  %v2877_v52 = vld [vmem:[#allocation2 + $0x51] ss:$2 sm:$0xf]  ;;  %3847 = vmatpush.msrb.mxu2 %v6574_v43 }
 0x2a6   :  { %3896 = vmatpush.msrb.mxu0 %v6122_v10  ;;  %v2883_v30 = vmax.f32 %v2865_v47, %v2877_v52  ;;  %3822 = vmatpush.msra.mxu1 %v6575_v50  ;;  %v6578_v10 = vld [vmem:[#allocation34_spill] sm:$0xff] }
 0x2a7   :  { %3872 = vmatpush.msrb.mxu3 %v6576_v57  ;;  %v3730_v41 = vld [vmem:[#allocation3 + $0x1f] sm:$0x3]  ;;  %v3780_v59 = vld [vmem:[#allocation3 + $0x21] sm:$0x3]  ;;  %3848 = vmatpush.msrb.mxu2 %v6577_v13  ;;  %v3830_v24 = vld [vmem:[#allocation3 + $0x23] sm:$0x3] }
 0x2a8   :  { %v3755_v8 = vld [vmem:[#allocation3 + $0x20] sm:$0x3]  ;;  %3897 = vmatpush.msrb.mxu0 %v6139_v17  ;;  %2889 = vst.msk [vmem:[#allocation3 + $0x28] sm:$0xf] %vm1457_vm2, %v2883_v30  ;;  %4361 = vmatmul.msk.f32.vlgmr.msrb.gmra.mxu1 %vm1451_vm1, %v3705_v15  ;;  %v6581_v17 = vld [vmem:[#allocation38_spill] sm:$0xff] }
 0x2a9   :  { %4362 = vmatmul.msk.f32.vlgmr.msra.gmra.mxu2 %vm1451_vm1, %v3730_v41  ;;  %4363 = vmatmul.msk.f32.vlgmr.msra.gmra.mxu3 %vm1451_vm1, %v3755_v8  ;;  %v3805_v7 = vld [vmem:[#allocation3 + $0x22] sm:$0x3]  ;;  %v3880_v20 = vld [vmem:[#allocation3 + $0x25] sm:$0x3] }
 0x2aa   :  { %4364 = vmatmul.msk.f32.vlgmr.msra.gmra.mxu0 %vm1451_vm1, %v3780_v59  ;;  %3823 = vmatpush.msra.mxu1 %v6578_v10  ;;  %v3905_v38 = vld [vmem:[#allocation3 + $0x26] sm:$0x3] }
 0x2ab   :  { %3873 = vmatpush.msrb.mxu3 %v6579_v56  ;;  %3898 = vmatpush.msrb.mxu0 %v6155_v4  ;;  %v3855_v4 = vld [vmem:[#allocation3 + $0x24] sm:$0x3] }
 0x2ac   :  { %3849 = vmatpush.msrb.mxu2 %v6580_v11  ;;  %3824 = vmatpush.msra.mxu1 %v6581_v17 }
 0x2ad   :  { %3874 = vmatpush.msrb.mxu3 %v6582_v58  ;;  %3899 = vmatpush.msrb.mxu0 %v6168_v27  ;;  %v6587_v27 = vld [vmem:[#allocation60_spill] sm:$0xff] }
 0x2ae   :  { %3946 = vmatpush.msra.mxu2 %v6126_v26  ;;  %3921 = vmatpush.msrb.mxu1 %v6124_v53  ;;  %v6585_v26 = vld [vmem:[#allocation57_spill] sm:$0xff]  ;;  %v6586_v53 = vld [vmem:[#allocation59_spill] sm:$0xff] }
 0x2af   :  { %3971 = vmatpush.msra.mxu3 %v6583_v33  ;;  %3996 = vmatpush.msra.mxu0 %v6181_v46  ;;  %v6588_v46 = vld [vmem:[#allocation61_spill] sm:$0xff]  ;;  %v3930_v23 = vld [vmem:[#allocation3 + $0x27] sm:$0x3] }
 0x2b0   :  { %3947 = vmatpush.msra.mxu2 %v6584_v54  ;;  %4365 = vmatmul.msk.f32.vlgmr.msra.gmra.mxu1 %vm1451_vm1, %v3805_v7  ;;  %v4044_v54 = vld [vmem:[%s6400_s5 + $0x18] sm:$0xff] }
 0x2b1   :  { %4366 = vmatmul.msk.f32.vlgmr.msrb.gmra.mxu2 %vm1451_vm1, %v3830_v24  ;;  %4367 = vmatmul.msk.f32.vlgmr.msrb.gmra.mxu3 %vm1451_vm1, %v3855_v4 }
 0x2b2   :  { %4368 = vmatmul.msk.f32.vlgmr.msrb.gmra.mxu0 %vm1451_vm1, %v3880_v20  ;;  %3922 = vmatpush.msrb.mxu1 %v6585_v26 }
 0x2b3   :  { %3972 = vmatpush.msra.mxu3 %v6586_v53  ;;  %3997 = vmatpush.msra.mxu0 %v6195_v49  ;;  %v3980_v49 = vld [vmem:[#allocation3 + $0x29] sm:$0x3]  ;;  %v4043_v53 = vld [vmem:[%s6400_s5 + $0x10] sm:$0xff] }
 0x2b4   :  { %3948 = vmatpush.msra.mxu2 %v6159_v3  ;;  %3923 = vmatpush.msrb.mxu1 %v6587_v27  ;;  %v3955_v3 = vld [vmem:[#allocation3 + $0x28] sm:$0x3] }
 0x2b5   :  { %3973 = vmatpush.msra.mxu3 %v6588_v46  ;;  %3998 = vmatpush.msra.mxu0 %v6209_v32  ;;  %v4005_v32 = vld [vmem:[#allocation3 + $0x2a] sm:$0x3] }
 0x2b6   :  { %3949 = vmatpush.msra.mxu2 %v6589_v37  ;;  %3924 = vmatpush.msrb.mxu1 %v6590_v9  ;;  %v4042_v9 = vld [vmem:[%s6400_s5 + $0x8] sm:$0xff] }
 0x2b7   :  { %3974 = vmatpush.msra.mxu3 %v6591_v45  ;;  %3999 = vmatpush.msra.mxu0 %v6219_v12  ;;  %v3000_v12 = vpop.f32.mrf.mxu3 }
 0x2b8   :  { %4021 = vmatpush.msra.mxu1 %v6183_v14  ;;  %v2971_v14 = vpop.f32.mrf.mxu2  ;;  %4064 = vmatpush.msrb.mxu2 %v4044_v54 }
 0x2b9   :  { %4369 = vmatmul.msk.f32.vlgmr.msrb.gmra.mxu1 %vm1451_vm1, %v3905_v38  ;;  %4370 = vmatmul.msk.f32.vlgmr.msra.gmra.mxu2 %vm1451_vm1, %v3930_v23  ;;  %v2974_v61 = vadd.f32 %v2971_v14, %v6233_v55  ;;  %v4041_v38 = vld [vmem:[%s6400_s5] sm:$0xff] }
 0x2ba   :  { %4371 = vmatmul.msk.f32.vlgmr.msra.gmra.mxu3 %vm1451_vm1, %v3955_v3  ;;  %4372 = vmatmul.msk.f32.vlgmr.msra.gmra.mxu0 %vm1451_vm1, %v3980_v49 }
 0x2bb   :  { %4022 = vmatpush.msra.mxu1 %v6197_v28  ;;  %v3003_v28 = vadd.f32 %v3000_v12, %v2974_v61  ;;  %4065 = vmatpush.msrb.mxu2 %v4043_v53 }
 0x2bd   :  { %4023 = vmatpush.msra.mxu1 %v6211_v63  ;;  %4066 = vmatpush.msrb.mxu2 %v4042_v9 }
 0x2bf   :  { %4024 = vmatpush.msra.mxu1 %v6221_v0  ;;  %v3058_v25 = vpop.f32.mrf.mxu3  ;;  %4067 = vmatpush.msrb.mxu2 %v4041_v38 }
 0x2c0   :  { %v3029_v42 = vpop.f32.mrf.mxu2 }
 0x2c1   :  { %4373 = vmatmul.msk.f32.vlgmr.msra.gmra.mxu1 %vm1451_vm1, %v4005_v32  ;;  %v3032_v63 = vadd.f32 %v3029_v42, %v3003_v28 }
 0x2c3   :  { %v3061_v6 = vadd.f32 %v3058_v25, %v3032_v63 }
 0x2c7   :  { %v3116_v60 = vpop.f32.mrf.mxu3 }
 0x2c8   :  { %v3087_v39 = vpop.f32.mrf.mxu2 }
 0x2c9   :  { %v3090_v19 = vadd.f32 %v3087_v39, %v3061_v6 }
 0x2cb   :  { %v3119_v62 = vadd.f32 %v3116_v60, %v3090_v19 }
 0x2cf   :  { %v3174_v34 = vpop.f32.mrf.mxu3 }
 0x2d0   :  { %v3145_v18 = vpop.f32.mrf.mxu2 }
 0x2d1   :  { %v3148_v21 = vadd.f32 %v3145_v18, %v3119_v62 }
 0x2d3   :  { %v3177_v31 = vadd.f32 %v3174_v34, %v3148_v21 }
 0x2d7   :  { %v3232_v51 = vpop.f32.mrf.mxu3 }
 0x2d8   :  { %v3203_v35 = vpop.f32.mrf.mxu2 }
 0x2d9   :  { %v3206_v36 = vadd.f32 %v3203_v35, %v3177_v31 }
 0x2db   :  { %v3235_v52 = vadd.f32 %v3232_v51, %v3206_v36  ;;  %v4381_v51 = vld [vmem:[%s6399_s4] ss:$0 sm:$0xff] }
 0x2dd   :  { %v3264_v57 = vadd.f32 %v3261_v16, %v3235_v52 }
 0x2df   :  { %v3293_v10 = vadd.f32 %v3290_v40, %v3264_v57 }
 0x2e0   :  { %v3319_v0 = vpop.f32.mrf.mxu2 }
 0x2e1   :  { %v3322_v33 = vadd.f32 %v3319_v0, %v3293_v10 }
 0x305   :  { %v3406_v29 = vpop.f32.mrf.mxu1 }
 0x306   :  { %v3377_v5 = vpop.f32.mrf.mxu0 }
 0x30b   :  { %v3348_v48 = vpop.f32.mrf.mxu3 }
 0x30c   :  { %v3435_v1 = vpop.f32.mrf.mxu2  ;;  %v3351_v24 = vadd.f32 %v3348_v48, %v3322_v33 }
 0x30e   :  { %v3493_v22 = vpop.f32.mrf.mxu0  ;;  %v3380_v27 = vadd.f32 %v3377_v5, %v3351_v24 }
 0x310   :  { %v3409_v3 = vadd.f32 %v3406_v29, %v3380_v27 }
 0x312   :  { %v3438_v12 = vadd.f32 %v3435_v1, %v3409_v3 }
 0x313   :  { %v3464_v44 = vpop.f32.mrf.mxu3 }
 0x314   :  { %v3552_v47 = vpop.f32.mrf.mxu2  ;;  %v3467_v34 = vadd.f32 %v3464_v44, %v3438_v12 }
 0x315   :  { %v3529_v2 = vpop.f32.mrf.mxu1 }
 0x316   :  { %v3601_v55 = vpop.f32.mrf.mxu0  ;;  %v3553_v43 = vadd.f32 %v3552_v47, %v3529_v2  ;;  %v3496_v28 = vadd.f32 %v3493_v22, %v3467_v34 }
 0x318   :  { %v3501_v6 = vadd.f32 %v4381_v51, %v3496_v28 }
 0x31a   :  { %v3502_v1 = vmax.f32 %v3501_v6, 0.0 }
 0x31c   :  { %v3576_v30 = vpop.f32.mrf.mxu3  ;;  %v3504_v44 = vrot.slane %v3502_v1, 1 }
 0x31d   :  { %v3579_v15 = vadd.f32 %v3576_v30, %v3553_v43  ;;  %v3626_v50 = vpop.f32.mrf.mxu1  ;;  %v3651_v59 = vpop.f32.mrf.mxu2 }
 0x31e   :  { %v3701_v13 = vpop.f32.mrf.mxu0  ;;  %v3506_v22 = vmax.f32 %v3502_v1, %v3504_v44 }
 0x31f   :  { %v3604_v41 = vadd.f32 %v3601_v55, %v3579_v15  ;;  %v4382_v55 = vld [vmem:[#allocation4] ss:$0 sm:$0xff] }
 0x321   :  { %v3629_v8 = vadd.f32 %v3626_v50, %v3604_v41 }
 0x323   :  { %v3654_v56 = vadd.f32 %v3651_v59, %v3629_v8 }
 0x324   :  { %v3676_v11 = vpop.f32.mrf.mxu3 }
 0x325   :  { %v3679_v17 = vadd.f32 %v3676_v11, %v3654_v56  ;;  %v3726_v58 = vpop.f32.mrf.mxu1 }
 0x327   :  { %v3704_v7 = vadd.f32 %v3701_v13, %v3679_v17  ;;  %v3801_v20 = vpop.f32.mrf.mxu0 }
 0x329   :  { %v3729_v4 = vadd.f32 %v3726_v58, %v3704_v7 }
 0x32c   :  { %v3751_v26 = vpop.f32.mrf.mxu2  ;;  %v3776_v37 = vpop.f32.mrf.mxu3 }
 0x32d   :  { %v3754_v46 = vadd.f32 %v3751_v26, %v3729_v4  ;;  %v3826_v45 = vpop.f32.mrf.mxu1 }
 0x32f   :  { %v3779_v23 = vadd.f32 %v3776_v37, %v3754_v46  ;;  %v3901_v39 = vpop.f32.mrf.mxu0 }
 0x331   :  { %v3804_v49 = vadd.f32 %v3801_v20, %v3779_v23 }
 0x333   :  { %v3829_v32 = vadd.f32 %v3826_v45, %v3804_v49 }
 0x334   :  { %v3851_v14 = vpop.f32.mrf.mxu2  ;;  %v3876_v25 = vpop.f32.mrf.mxu3 }
 0x335   :  { %v3854_v42 = vadd.f32 %v3851_v14, %v3829_v32 }
 0x336   :  { %v3926_v18 = vpop.f32.mrf.mxu1 }
 0x337   :  { %v3879_v60 = vadd.f32 %v3876_v25, %v3854_v42  ;;  %v4001_v5 = vpop.f32.mrf.mxu0 }
 0x339   :  { %v3904_v35 = vadd.f32 %v3901_v39, %v3879_v60 }
 0x33b   :  { %v3929_v16 = vadd.f32 %v3926_v18, %v3904_v35 }
 0x33c   :  { %v3951_v61 = vpop.f32.mrf.mxu2 }
 0x33d   :  { %v3954_v63 = vadd.f32 %v3951_v61, %v3929_v16  ;;  %v3976_v40 = vpop.f32.mrf.mxu3 }
 0x33e   :  { %v4026_v48 = vpop.f32.mrf.mxu1 }
 0x33f   :  { %v3979_v0 = vadd.f32 %v3976_v40, %v3954_v63 }
 0x341   :  { %v4004_v19 = vadd.f32 %v4001_v5, %v3979_v0 }
 0x343   :  { %v4029_v29 = vadd.f32 %v4026_v48, %v4004_v19 }
 0x345   :  { %v4030_v62 = vadd.f32 %v4381_v51, %v4029_v29 }
 0x347   :  { %v4031_v21 = vmax.f32 %v4030_v62, 0.0 }
 0x349   :  { %v4033_v31 = vrot.slane %v4031_v21, 1 }
 0x34b   :  { %v4035_v2 = vmax.f32 %v4031_v21, %v4033_v31 }
 0x34d   :  { %v4037_v36 = vrot.slane %v4035_v2, 7 }
 0x34f   :  { %v4040_v47 = vsel %vm4039_vm3, %v3506_v22, %v4037_v36 }
 0x350   :  { %4374 = vmatmul.msk.f32.vlgmr.msrb.gmra.mxu2 %vm1451_vm1, %v4040_v47 }
 0x3d3   :  { %v4069_v52 = vpop.f32.mrf.mxu2 }
 0x3d4   :  { %v4070_v43 = vadd.f32 %v4382_v55, %v4069_v52 }
 0x3d6   :  { %4073 = vst.msk [vmem:[%s6402_s7] sm:$0x3] %vm4072_vm4, %v4070_v43 }
 0x3d7   :  { %4078 = vsyncpa [#allocation6], 1 }
 0x3d8   :  { %4079 = vsyncpa [#allocation8], 1 }

</bundles_post_ra>
